<compile_context>
chip_gen: v6e
topology: v6e:2x2x1
jax: 0.10.0
libtpu: 0.0.40
codegen_flags: <defaults>
</compile_context>

<pallas_src>
import math

import jax
import jax.numpy as jnp
from jax.experimental import pallas as pl
from jax.experimental.pallas import tpu as pltpu


def _dgm_kernel(x_ref, pd_ref, w0t_ref, b0_ref, uall_ref, wzgr_ref, wh_ref,
                bzgr_ref, bh_ref, w4_ref, out_ref):
    """One batch tile of the full DGMNet forward.

    x_ref    : [TB, D]      clamped input (column 0 already boxed at xp)
    pd_ref   : [TB, 1]      payoff + S_diff (added to the net output)
    w0t_ref  : [D, H]       W.weight^T
    b0_ref   : [1, H]       W.bias
    uall_ref : [D, 12H]     per layer [Uz|Ug|Ur|Uh]^T, layers concatenated
    wzgr_ref : [3, H, 3H]   per layer [Wz|Wg|Wr]^T
    wh_ref   : [3, H, H]    per layer Wh^T
    bzgr_ref : [3, 3H]      per layer [bz|bg|br]
    bh_ref   : [3, H]       per layer bh
    w4_ref   : [1, H]       W4.weight row (all ones)
    out_ref  : [TB, 1]
    """
    H = w0t_ref.shape[1]
    X = x_ref[...]                                                   # [TB, D]

    S = jnp.tanh(
        jnp.dot(X, w0t_ref[...], preferred_element_type=jnp.float32)
        + b0_ref[...])                                               # [TB, H]

    # X never changes across layers: do all 12 X@U gate matmuls as one
    # lane-dense matmul and slice the result per layer/gate.
    UX = jnp.dot(X, uall_ref[...], preferred_element_type=jnp.float32)  # [TB, 12H]

    # Three DGM "LSTM" layers; gate order within a layer: z, g, r, h.
    for layer in range(3):
        off = layer * 4 * H
        ux_zgr = UX[:, off:off + 3 * H]                              # [TB, 3H]
        ux_h = UX[:, off + 3 * H:off + 4 * H]                        # [TB, H]

        zgr = jnp.tanh(
            ux_zgr
            + jnp.dot(S, wzgr_ref[layer], preferred_element_type=jnp.float32)
            + bzgr_ref[layer:layer + 1, :])                          # [TB, 3H]
        Z = zgr[:, 0:H]
        G = zgr[:, H:2 * H]
        R = zgr[:, 2 * H:3 * H]

        Hg = jnp.tanh(
            ux_h
            + jnp.dot(S * R, wh_ref[layer], preferred_element_type=jnp.float32)
            + bh_ref[layer:layer + 1, :])                            # [TB, H]

        S = (1.0 - G) * Hg + Z * S

    # W4 has output width 1 (and weight == ones): lane reduction instead of a
    # degenerate N=1 MXU matmul.
    w4 = jnp.sum(S * w4_ref[...], axis=-1, keepdims=True)            # [TB, 1]

    # payoff + S_diff + softplus(W4(S3)); stable form of log(exp(x)+1).
    sp = jnp.maximum(w4, 0.0) + jnp.log(jnp.exp(-jnp.abs(w4)) + 1.0)
    out_ref[...] = pd_ref[...] + sp
    # NOTE: for very large batches the output could be emitted lane-dense as
    # (1, TB) to avoid masked width-1 stores; negligible at these sizes.


def init_dgm_params(key, layer_width, input_dim):
    """Deterministic synthetic init matching the PyTorch parameter shapes,
    packed into the fused-gate layouts the kernel expects."""
    H, D = layer_width, input_dim
    keys = iter(jax.random.split(key, 64))

    def xavier(out_dim, in_dim):
        bound = math.sqrt(6.0 / (in_dim + out_dim))
        return jax.random.uniform(next(keys), (out_dim, in_dim),
                                  jnp.float32, -bound, bound)

    def bias(fan_in, n):
        bound = 1.0 / math.sqrt(fan_in)
        return jax.random.uniform(next(keys), (n,), jnp.float32, -bound, bound)

    w0 = xavier(H, D)          # W.weight  [H, D]
    b0 = bias(D, H)            # W.bias    [H]

    u_blocks, wzgr, wh, bzgr, bh = [], [], [], [], []
    for _ in range(3):         # LSTMLayer1..3
        Uz, Ug, Ur, Uh = (xavier(H, D).T for _ in range(4))          # [D, H] each
        u_blocks.append(jnp.concatenate([Uz, Ug, Ur, Uh], axis=1))   # [D, 4H]
        Wz, Wg, Wr, Wh = (xavier(H, H).T for _ in range(4))          # [H, H] each
        bz, bg, br, bhh = (bias(H, H) for _ in range(4))             # [H] each
        wzgr.append(jnp.concatenate([Wz, Wg, Wr], axis=1))           # [H, 3H]
        wh.append(Wh)                                                # [H, H]
        bzgr.append(jnp.concatenate([bz, bg, br]))                   # [3H]
        bh.append(bhh)                                               # [H]

    return dict(
        w0t=w0.T,                               # [D, H]
        b0=b0[None, :],                         # [1, H]
        u_all=jnp.concatenate(u_blocks, axis=1),  # [D, 12H]
        wzgr=jnp.stack(wzgr),                   # [3, H, 3H]
        wh=jnp.stack(wh),                       # [3, H, H]
        bzgr=jnp.stack(bzgr),                   # [3, 3H]
        bh=jnp.stack(bh),                       # [3, H]
        w4=jnp.ones((1, H), jnp.float32),       # W4.weight = ones((1, H))
    )


def dgmnet_forward(params, args, *, r=0.0, t=0.0, CP=1, xp_cap=2.0, tb=128):
    """Mirrors DGMNet.forward(*args)."""
    x = jnp.concatenate(list(args), axis=1).astype(jnp.float32)   # [B, D]
    B, D = x.shape
    H = params["w0t"].shape[1]
    S = x[:, 0:1]                                                 # [B, 1]

    if CP == 1:
        S_box = jnp.where(S > xp_cap, jnp.full_like(S, xp_cap), S)
        S_diff = S - S_box
        x = x.at[:, 0:1].set(S_box)
        # In PyTorch self.S is a *view* of x, so the in-place write means the
        # payoff is computed from the boxed S.
        S_eff = S_box
        extra = S_diff
    else:
        S_eff = S
        extra = jnp.zeros_like(S)

    payoff = jnp.maximum(0.0, CP * (S_eff - math.exp(-r * t)))    # [B, 1]

    if t == 0.0:
        # forward_main short-circuits to the payoff (plus S_diff if CP==1).
        return payoff + extra

    pd = payoff + extra                                           # folded into kernel

    # Pad the batch to a multiple of the batch tile (also satisfies the
    # 8-sublane constraint); padded rows are zeros and are sliced off below.
    TB = tb
    B_pad = pl.cdiv(B, TB) * TB
    if B_pad != B:
        x = jnp.pad(x, ((0, B_pad - B), (0, 0)))
        pd = jnp.pad(pd, ((0, B_pad - B), (0, 0)))

    grid = (B_pad // TB,)

    batch_map = lambda i: (i, 0)
    const2 = lambda i: (0, 0)
    const3 = lambda i: (0, 0, 0)

    flops_per_row = (2 * D * H                 # initial Linear
                     + 2 * D * 12 * H          # fused X @ U_all
                     + 3 * (2 * H * 3 * H      # fused z/g/r recurrent matmul
                            + 2 * H * H)       # Wh matmul
                     + 2 * H)                  # W4 lane reduction
    weight_bytes = sum(int(v.size) * 4 for v in params.values())
    cost = pl.CostEstimate(
        flops=int(B_pad * flops_per_row),
        transcendentals=int(B_pad * (13 * H + 2)),
        bytes_accessed=int(B_pad * (D + 2) * 4 + weight_bytes),
    )

    out = pl.pallas_call(
        _dgm_kernel,
        out_shape=jax.ShapeDtypeStruct((B_pad, 1), jnp.float32),
        grid=grid,
        in_specs=[
            pl.BlockSpec((TB, D), batch_map),                  # x
            pl.BlockSpec((TB, 1), batch_map),                  # pd
            pl.BlockSpec(params["w0t"].shape, const2),         # weights stay
            pl.BlockSpec(params["b0"].shape, const2),          # resident in VMEM
            pl.BlockSpec(params["u_all"].shape, const2),
            pl.BlockSpec(params["wzgr"].shape, const3),
            pl.BlockSpec(params["wh"].shape, const3),
            pl.BlockSpec(params["bzgr"].shape, const2),
            pl.BlockSpec(params["bh"].shape, const2),
            pl.BlockSpec(params["w4"].shape, const2),
        ],
        out_specs=pl.BlockSpec((TB, 1), batch_map),
        compiler_params=pltpu.CompilerParams(
            dimension_semantics=("parallel",),
            vmem_limit_bytes=32 * 1024 * 1024,
        ),
        cost_estimate=cost,
    )(x, pd, params["w0t"], params["b0"], params["u_all"], params["wzgr"],
      params["wh"], params["bzgr"], params["bh"], params["w4"])

    return out[:B]


if __name__ == "__main__":
    key = jax.random.PRNGKey(0)
    k_params, k_a0, k_a1 = jax.random.split(key, 3)

    layer_width = 32
    input_dim = 4
    batch = 8

    params = init_dgm_params(k_params, layer_width, input_dim)

    # Two input tensors concatenated along dim 1 (as DGMNet.forward(*args) does).
    # Column 0 is the asset price S; scale it so some values exceed xp=2.0.
    arg0 = jax.random.uniform(k_a0, (batch, 2), jnp.float32, 0.0, 3.0)
    arg1 = jax.random.uniform(k_a1, (batch, 2), jnp.float32, 0.0, 1.0)

    # Use t != 0 so the full LSTM path is exercised (t == 0 returns payoff only).
    out = dgmnet_forward(params, (arg0, arg1), r=0.05, t=1.0, CP=1, xp_cap=2.0)
    jax.block_until_ready(out)

    assert out.shape == (batch, 1) and out.dtype == jnp.float32
    assert bool(jnp.all(jnp.isfinite(out)))
    print("KERNEL_OK")
</pallas_src>

<mosaic_0001>
module attributes {stable_mosaic.version = 11 : i64} {
  func.func @_dgm_kernel(%arg0: i32, %arg1: memref<128x4xf32, #tpu.memory_space<vmem>>, %arg2: memref<128x1xf32, #tpu.memory_space<vmem>>, %arg3: memref<4x32xf32, #tpu.memory_space<vmem>>, %arg4: memref<1x32xf32, #tpu.memory_space<vmem>>, %arg5: memref<4x384xf32, #tpu.memory_space<vmem>>, %arg6: memref<3x32x96xf32, #tpu.memory_space<vmem>>, %arg7: memref<3x32x32xf32, #tpu.memory_space<vmem>>, %arg8: memref<3x96xf32, #tpu.memory_space<vmem>>, %arg9: memref<3x32xf32, #tpu.memory_space<vmem>>, %arg10: memref<1x32xf32, #tpu.memory_space<vmem>>, %arg11: memref<128x1xf32, #tpu.memory_space<vmem>>) attributes {dimension_semantics = [#tpu.dimension_semantics<parallel>], iteration_bounds = array<i64: 1>, scalar_prefetch = 0 : i64, scratch_operands = 0 : i64, tpu.core_type = #tpu.core_type<tc>, window_params = [{transform_indices = @transform_0, window_bounds = array<i64: 128, 4>}, {transform_indices = @transform_1, window_bounds = array<i64: 128, 1>}, {pipeline_mode = #tpu.pipeline_mode<synchronous>, transform_indices = @transform_2, window_bounds = array<i64: 4, 32>}, {pipeline_mode = #tpu.pipeline_mode<synchronous>, transform_indices = @transform_3, window_bounds = array<i64: 1, 32>}, {pipeline_mode = #tpu.pipeline_mode<synchronous>, transform_indices = @transform_4, window_bounds = array<i64: 4, 384>}, {pipeline_mode = #tpu.pipeline_mode<synchronous>, transform_indices = @transform_5, window_bounds = array<i64: 3, 32, 96>}, {pipeline_mode = #tpu.pipeline_mode<synchronous>, transform_indices = @transform_6, window_bounds = array<i64: 3, 32, 32>}, {pipeline_mode = #tpu.pipeline_mode<synchronous>, transform_indices = @transform_7, window_bounds = array<i64: 3, 96>}, {pipeline_mode = #tpu.pipeline_mode<synchronous>, transform_indices = @transform_8, window_bounds = array<i64: 3, 32>}, {pipeline_mode = #tpu.pipeline_mode<synchronous>, transform_indices = @transform_9, window_bounds = array<i64: 1, 32>}, {transform_indices = @transform_10, window_bounds = array<i64: 128, 1>}]} {
    %c0 = arith.constant 0 : index
    %c0_0 = arith.constant 0 : index
    %0 = vector.load %arg1[%c0, %c0_0] : memref<128x4xf32, #tpu.memory_space<vmem>>, vector<128x4xf32>
    %c0_1 = arith.constant 0 : index
    %c0_2 = arith.constant 0 : index
    %1 = vector.load %arg3[%c0_1, %c0_2] : memref<4x32xf32, #tpu.memory_space<vmem>>, vector<4x32xf32>
    %cst = arith.constant dense<0.000000e+00> : vector<128x32xf32>
    %2 = tpu.matmul %0, %1, %cst {dimension_numbers = #tpu.dot_dimension_numbers<[1], [0], [0], [1], [0, 0, 1, 1], [], []>} : vector<128x4xf32>, vector<4x32xf32>, vector<128x32xf32> -> vector<128x32xf32>
    %c0_3 = arith.constant 0 : index
    %c0_4 = arith.constant 0 : index
    %3 = vector.load %arg4[%c0_3, %c0_4] : memref<1x32xf32, #tpu.memory_space<vmem>>, vector<1x32xf32>
    %4 = vector.broadcast %3 : vector<1x32xf32> to vector<128x32xf32>
    %5 = arith.addf %2, %4 : vector<128x32xf32>
    %6 = math.tanh %5 : vector<128x32xf32>
    %c0_5 = arith.constant 0 : index
    %c0_6 = arith.constant 0 : index
    %7 = vector.load %arg5[%c0_5, %c0_6] : memref<4x384xf32, #tpu.memory_space<vmem>>, vector<4x384xf32>
    %cst_7 = arith.constant dense<0.000000e+00> : vector<128x384xf32>
    %8 = tpu.matmul %0, %7, %cst_7 {dimension_numbers = #tpu.dot_dimension_numbers<[1], [0], [0], [1], [0, 0, 1, 1], [], []>} : vector<128x4xf32>, vector<4x384xf32>, vector<128x384xf32> -> vector<128x384xf32>
    %9 = vector.extract_strided_slice %8 {offsets = [0, 0], sizes = [128, 96], strides = [1, 1]} : vector<128x384xf32> to vector<128x96xf32>
    %10 = vector.extract_strided_slice %8 {offsets = [0, 96], sizes = [128, 32], strides = [1, 1]} : vector<128x384xf32> to vector<128x32xf32>
    %c0_8 = arith.constant 0 : index
    %c0_9 = arith.constant 0 : index
    %c0_10 = arith.constant 0 : index
    %11 = vector.load %arg6[%c0_8, %c0_9, %c0_10] : memref<3x32x96xf32, #tpu.memory_space<vmem>>, vector<1x32x96xf32>
    %12 = vector.shape_cast %11 : vector<1x32x96xf32> to vector<32x96xf32>
    %cst_11 = arith.constant dense<0.000000e+00> : vector<128x96xf32>
    %13 = tpu.matmul %6, %12, %cst_11 {dimension_numbers = #tpu.dot_dimension_numbers<[1], [0], [0], [1], [0, 0, 1, 1], [], []>} : vector<128x32xf32>, vector<32x96xf32>, vector<128x96xf32> -> vector<128x96xf32>
    %14 = arith.addf %9, %13 : vector<128x96xf32>
    %c0_12 = arith.constant 0 : index
    %c0_13 = arith.constant 0 : index
    %15 = vector.load %arg8[%c0_12, %c0_13] : memref<3x96xf32, #tpu.memory_space<vmem>>, vector<1x96xf32>
    %16 = vector.broadcast %15 : vector<1x96xf32> to vector<128x96xf32>
    %17 = arith.addf %14, %16 : vector<128x96xf32>
    %18 = math.tanh %17 : vector<128x96xf32>
    %19 = vector.extract_strided_slice %18 {offsets = [0, 0], sizes = [128, 32], strides = [1, 1]} : vector<128x96xf32> to vector<128x32xf32>
    %20 = vector.extract_strided_slice %18 {offsets = [0, 32], sizes = [128, 32], strides = [1, 1]} : vector<128x96xf32> to vector<128x32xf32>
    %21 = vector.extract_strided_slice %18 {offsets = [0, 64], sizes = [128, 32], strides = [1, 1]} : vector<128x96xf32> to vector<128x32xf32>
    %22 = arith.mulf %6, %21 : vector<128x32xf32>
    %c0_14 = arith.constant 0 : index
    %c0_15 = arith.constant 0 : index
    %c0_16 = arith.constant 0 : index
    %23 = vector.load %arg7[%c0_14, %c0_15, %c0_16] : memref<3x32x32xf32, #tpu.memory_space<vmem>>, vector<1x32x32xf32>
    %24 = vector.shape_cast %23 : vector<1x32x32xf32> to vector<32x32xf32>
    %cst_17 = arith.constant dense<0.000000e+00> : vector<128x32xf32>
    %25 = tpu.matmul %22, %24, %cst_17 {dimension_numbers = #tpu.dot_dimension_numbers<[1], [0], [0], [1], [0, 0, 1, 1], [], []>} : vector<128x32xf32>, vector<32x32xf32>, vector<128x32xf32> -> vector<128x32xf32>
    %26 = arith.addf %10, %25 : vector<128x32xf32>
    %c0_18 = arith.constant 0 : index
    %c0_19 = arith.constant 0 : index
    %27 = vector.load %arg9[%c0_18, %c0_19] : memref<3x32xf32, #tpu.memory_space<vmem>>, vector<1x32xf32>
    %28 = vector.broadcast %27 : vector<1x32xf32> to vector<128x32xf32>
    %29 = arith.addf %26, %28 : vector<128x32xf32>
    %30 = math.tanh %29 : vector<128x32xf32>
    %cst_20 = arith.constant 1.000000e+00 : f32
    %31 = vector.broadcast %cst_20 : f32 to vector<128x32xf32>
    %32 = arith.subf %31, %20 : vector<128x32xf32>
    %33 = arith.mulf %32, %30 : vector<128x32xf32>
    %34 = arith.mulf %19, %6 : vector<128x32xf32>
    %35 = arith.addf %33, %34 : vector<128x32xf32>
    %36 = vector.extract_strided_slice %8 {offsets = [0, 128], sizes = [128, 96], strides = [1, 1]} : vector<128x384xf32> to vector<128x96xf32>
    %37 = vector.extract_strided_slice %8 {offsets = [0, 224], sizes = [128, 32], strides = [1, 1]} : vector<128x384xf32> to vector<128x32xf32>
    %c1 = arith.constant 1 : index
    %c0_21 = arith.constant 0 : index
    %c0_22 = arith.constant 0 : index
    %38 = vector.load %arg6[%c1, %c0_21, %c0_22] : memref<3x32x96xf32, #tpu.memory_space<vmem>>, vector<1x32x96xf32>
    %39 = vector.shape_cast %38 : vector<1x32x96xf32> to vector<32x96xf32>
    %cst_23 = arith.constant dense<0.000000e+00> : vector<128x96xf32>
    %40 = tpu.matmul %35, %39, %cst_23 {dimension_numbers = #tpu.dot_dimension_numbers<[1], [0], [0], [1], [0, 0, 1, 1], [], []>} : vector<128x32xf32>, vector<32x96xf32>, vector<128x96xf32> -> vector<128x96xf32>
    %41 = arith.addf %36, %40 : vector<128x96xf32>
    %c1_24 = arith.constant 1 : index
    %c0_25 = arith.constant 0 : index
    %42 = vector.load %arg8[%c1_24, %c0_25] : memref<3x96xf32, #tpu.memory_space<vmem>>, vector<1x96xf32>
    %43 = vector.broadcast %42 : vector<1x96xf32> to vector<128x96xf32>
    %44 = arith.addf %41, %43 : vector<128x96xf32>
    %45 = math.tanh %44 : vector<128x96xf32>
    %46 = vector.extract_strided_slice %45 {offsets = [0, 0], sizes = [128, 32], strides = [1, 1]} : vector<128x96xf32> to vector<128x32xf32>
    %47 = vector.extract_strided_slice %45 {offsets = [0, 32], sizes = [128, 32], strides = [1, 1]} : vector<128x96xf32> to vector<128x32xf32>
    %48 = vector.extract_strided_slice %45 {offsets = [0, 64], sizes = [128, 32], strides = [1, 1]} : vector<128x96xf32> to vector<128x32xf32>
    %49 = arith.mulf %35, %48 : vector<128x32xf32>
    %c1_26 = arith.constant 1 : index
    %c0_27 = arith.constant 0 : index
    %c0_28 = arith.constant 0 : index
    %50 = vector.load %arg7[%c1_26, %c0_27, %c0_28] : memref<3x32x32xf32, #tpu.memory_space<vmem>>, vector<1x32x32xf32>
    %51 = vector.shape_cast %50 : vector<1x32x32xf32> to vector<32x32xf32>
    %cst_29 = arith.constant dense<0.000000e+00> : vector<128x32xf32>
    %52 = tpu.matmul %49, %51, %cst_29 {dimension_numbers = #tpu.dot_dimension_numbers<[1], [0], [0], [1], [0, 0, 1, 1], [], []>} : vector<128x32xf32>, vector<32x32xf32>, vector<128x32xf32> -> vector<128x32xf32>
    %53 = arith.addf %37, %52 : vector<128x32xf32>
    %c1_30 = arith.constant 1 : index
    %c0_31 = arith.constant 0 : index
    %54 = vector.load %arg9[%c1_30, %c0_31] : memref<3x32xf32, #tpu.memory_space<vmem>>, vector<1x32xf32>
    %55 = vector.broadcast %54 : vector<1x32xf32> to vector<128x32xf32>
    %56 = arith.addf %53, %55 : vector<128x32xf32>
    %57 = math.tanh %56 : vector<128x32xf32>
    %cst_32 = arith.constant 1.000000e+00 : f32
    %58 = vector.broadcast %cst_32 : f32 to vector<128x32xf32>
    %59 = arith.subf %58, %47 : vector<128x32xf32>
    %60 = arith.mulf %59, %57 : vector<128x32xf32>
    %61 = arith.mulf %46, %35 : vector<128x32xf32>
    %62 = arith.addf %60, %61 : vector<128x32xf32>
    %63 = vector.extract_strided_slice %8 {offsets = [0, 256], sizes = [128, 96], strides = [1, 1]} : vector<128x384xf32> to vector<128x96xf32>
    %64 = vector.extract_strided_slice %8 {offsets = [0, 352], sizes = [128, 32], strides = [1, 1]} : vector<128x384xf32> to vector<128x32xf32>
    %c2 = arith.constant 2 : index
    %c0_33 = arith.constant 0 : index
    %c0_34 = arith.constant 0 : index
    %65 = vector.load %arg6[%c2, %c0_33, %c0_34] : memref<3x32x96xf32, #tpu.memory_space<vmem>>, vector<1x32x96xf32>
    %66 = vector.shape_cast %65 : vector<1x32x96xf32> to vector<32x96xf32>
    %cst_35 = arith.constant dense<0.000000e+00> : vector<128x96xf32>
    %67 = tpu.matmul %62, %66, %cst_35 {dimension_numbers = #tpu.dot_dimension_numbers<[1], [0], [0], [1], [0, 0, 1, 1], [], []>} : vector<128x32xf32>, vector<32x96xf32>, vector<128x96xf32> -> vector<128x96xf32>
    %68 = arith.addf %63, %67 : vector<128x96xf32>
    %c2_36 = arith.constant 2 : index
    %c0_37 = arith.constant 0 : index
    %69 = vector.load %arg8[%c2_36, %c0_37] : memref<3x96xf32, #tpu.memory_space<vmem>>, vector<1x96xf32>
    %70 = vector.broadcast %69 : vector<1x96xf32> to vector<128x96xf32>
    %71 = arith.addf %68, %70 : vector<128x96xf32>
    %72 = math.tanh %71 : vector<128x96xf32>
    %73 = vector.extract_strided_slice %72 {offsets = [0, 0], sizes = [128, 32], strides = [1, 1]} : vector<128x96xf32> to vector<128x32xf32>
    %74 = vector.extract_strided_slice %72 {offsets = [0, 32], sizes = [128, 32], strides = [1, 1]} : vector<128x96xf32> to vector<128x32xf32>
    %75 = vector.extract_strided_slice %72 {offsets = [0, 64], sizes = [128, 32], strides = [1, 1]} : vector<128x96xf32> to vector<128x32xf32>
    %76 = arith.mulf %62, %75 : vector<128x32xf32>
    %c2_38 = arith.constant 2 : index
    %c0_39 = arith.constant 0 : index
    %c0_40 = arith.constant 0 : index
    %77 = vector.load %arg7[%c2_38, %c0_39, %c0_40] : memref<3x32x32xf32, #tpu.memory_space<vmem>>, vector<1x32x32xf32>
    %78 = vector.shape_cast %77 : vector<1x32x32xf32> to vector<32x32xf32>
    %cst_41 = arith.constant dense<0.000000e+00> : vector<128x32xf32>
    %79 = tpu.matmul %76, %78, %cst_41 {dimension_numbers = #tpu.dot_dimension_numbers<[1], [0], [0], [1], [0, 0, 1, 1], [], []>} : vector<128x32xf32>, vector<32x32xf32>, vector<128x32xf32> -> vector<128x32xf32>
    %80 = arith.addf %64, %79 : vector<128x32xf32>
    %c2_42 = arith.constant 2 : index
    %c0_43 = arith.constant 0 : index
    %81 = vector.load %arg9[%c2_42, %c0_43] : memref<3x32xf32, #tpu.memory_space<vmem>>, vector<1x32xf32>
    %82 = vector.broadcast %81 : vector<1x32xf32> to vector<128x32xf32>
    %83 = arith.addf %80, %82 : vector<128x32xf32>
    %84 = math.tanh %83 : vector<128x32xf32>
    %cst_44 = arith.constant 1.000000e+00 : f32
    %85 = vector.broadcast %cst_44 : f32 to vector<128x32xf32>
    %86 = arith.subf %85, %74 : vector<128x32xf32>
    %87 = arith.mulf %86, %84 : vector<128x32xf32>
    %88 = arith.mulf %73, %62 : vector<128x32xf32>
    %89 = arith.addf %87, %88 : vector<128x32xf32>
    %c0_45 = arith.constant 0 : index
    %c0_46 = arith.constant 0 : index
    %90 = vector.load %arg10[%c0_45, %c0_46] : memref<1x32xf32, #tpu.memory_space<vmem>>, vector<1x32xf32>
    %91 = vector.broadcast %90 : vector<1x32xf32> to vector<128x32xf32>
    %92 = arith.mulf %89, %91 : vector<128x32xf32>
    %cst_47 = arith.constant dense<0.000000e+00> : vector<128xf32>
    %93 = vector.multi_reduction <add>, %92, %cst_47 [1] : vector<128x32xf32> to vector<128xf32>
    %94 = vector.shape_cast %93 : vector<128xf32> to vector<128x1xf32>
    %cst_48 = arith.constant 0.000000e+00 : f32
    %95 = vector.broadcast %cst_48 : f32 to vector<128x1xf32>
    %96 = arith.maximumf %94, %95 : vector<128x1xf32>
    %97 = math.absf %94 : vector<128x1xf32>
    %cst_49 = arith.constant 0.000000e+00 : f32
    %98 = vector.broadcast %cst_49 : f32 to vector<128x1xf32>
    %99 = arith.subf %98, %97 : vector<128x1xf32>
    %100 = math.exp %99 : vector<128x1xf32>
    %cst_50 = arith.constant 1.000000e+00 : f32
    %101 = vector.broadcast %cst_50 : f32 to vector<128x1xf32>
    %102 = arith.addf %100, %101 : vector<128x1xf32>
    %103 = math.log %102 : vector<128x1xf32>
    %104 = arith.addf %96, %103 : vector<128x1xf32>
    %c0_51 = arith.constant 0 : index
    %c0_52 = arith.constant 0 : index
    %105 = vector.load %arg2[%c0_51, %c0_52] : memref<128x1xf32, #tpu.memory_space<vmem>>, vector<128x1xf32>
    %106 = arith.addf %105, %104 : vector<128x1xf32>
    %c0_53 = arith.constant 0 : index
    %c0_54 = arith.constant 0 : index
    %107 = vector.load %arg11[%c0_53, %c0_54] : memref<128x1xf32, #tpu.memory_space<vmem>>, vector<128x1xf32>
    tpu.vector_store %arg11[%c0_53, %c0_54], %106 {strides = array<i32>} : memref<128x1xf32, #tpu.memory_space<vmem>>, vector<128x1xf32>,
    return
  }
  func.func @transform_0(%arg0: i32) -> (i32, i32) {
    %c0_i32 = arith.constant 0 : i32
    %c0_i32_0 = arith.constant 0 : i32
    return %arg0, %c0_i32 : i32, i32
  }
  func.func @transform_1(%arg0: i32) -> (i32, i32) {
    %c0_i32 = arith.constant 0 : i32
    %c0_i32_0 = arith.constant 0 : i32
    return %arg0, %c0_i32 : i32, i32
  }
  func.func @transform_2(%arg0: i32) -> (i32, i32) {
    %c0_i32 = arith.constant 0 : i32
    %c0_i32_0 = arith.constant 0 : i32
    %c0_i32_1 = arith.constant 0 : i32
    return %c0_i32, %c0_i32_0 : i32, i32
  }
  func.func @transform_3(%arg0: i32) -> (i32, i32) {
    %c0_i32 = arith.constant 0 : i32
    %c0_i32_0 = arith.constant 0 : i32
    %c0_i32_1 = arith.constant 0 : i32
    return %c0_i32, %c0_i32_0 : i32, i32
  }
  func.func @transform_4(%arg0: i32) -> (i32, i32) {
    %c0_i32 = arith.constant 0 : i32
    %c0_i32_0 = arith.constant 0 : i32
    %c0_i32_1 = arith.constant 0 : i32
    return %c0_i32, %c0_i32_0 : i32, i32
  }
  func.func @transform_5(%arg0: i32) -> (i32, i32, i32) {
    %c0_i32 = arith.constant 0 : i32
    %c0_i32_0 = arith.constant 0 : i32
    %c0_i32_1 = arith.constant 0 : i32
    %c0_i32_2 = arith.constant 0 : i32
    return %c0_i32, %c0_i32_0, %c0_i32_1 : i32, i32, i32
  }
  func.func @transform_6(%arg0: i32) -> (i32, i32, i32) {
    %c0_i32 = arith.constant 0 : i32
    %c0_i32_0 = arith.constant 0 : i32
    %c0_i32_1 = arith.constant 0 : i32
    %c0_i32_2 = arith.constant 0 : i32
    return %c0_i32, %c0_i32_0, %c0_i32_1 : i32, i32, i32
  }
  func.func @transform_7(%arg0: i32) -> (i32, i32) {
    %c0_i32 = arith.constant 0 : i32
    %c0_i32_0 = arith.constant 0 : i32
    %c0_i32_1 = arith.constant 0 : i32
    return %c0_i32, %c0_i32_0 : i32, i32
  }
  func.func @transform_8(%arg0: i32) -> (i32, i32) {
    %c0_i32 = arith.constant 0 : i32
    %c0_i32_0 = arith.constant 0 : i32
    %c0_i32_1 = arith.constant 0 : i32
    return %c0_i32, %c0_i32_0 : i32, i32
  }
  func.func @transform_9(%arg0: i32) -> (i32, i32) {
    %c0_i32 = arith.constant 0 : i32
    %c0_i32_0 = arith.constant 0 : i32
    %c0_i32_1 = arith.constant 0 : i32
    return %c0_i32, %c0_i32_0 : i32, i32
  }
  func.func @transform_10(%arg0: i32) -> (i32, i32) {
    %c0_i32 = arith.constant 0 : i32
    %c0_i32_0 = arith.constant 0 : i32
    return %arg0, %c0_i32 : i32, i32
  }
}

</mosaic_0001>

<bundles_post_ra>
// kernel: tpu_custom_call.1
= control target key start
LH: loop header
LB: loop body
LE: loop exit
PB: predicated region body
PF: predicated region fallthrough
CT: control target
= control target key end

     0   :  { %vm108_vm0 = vcmask 1043456   ;;  %vm59_vm1 = vcmask 31744   ;;  %v4472_v3 = vmov 0.0   ;;  %vm594_vm2 = vcmask 261120   ;;  %s4473_s24 = smov 64   ;;  %s4474_s25 = smov 96   ;;  %s6236_s2 = inlined_call_operand.vmem [shape: f32[4,32], index: 2, kind: input, shape index: {}]   ;;  %s6237_s0 = inlined_call_operand.vmem [shape: f32[128,4], index: 0, kind: input, shape index: {}]   ;;  %s6238_s4 = inlined_call_operand.vmem [shape: f32[4,384], index: 4, kind: input, shape index: {}]   ;;  %s6239_s5 = inlined_call_operand.vmem [shape: f32[3,32,96], index: 5, kind: input, shape index: {}]   ;;  %s6240_s3 = inlined_call_operand.vmem [shape: f32[1,32], index: 3, kind: input, shape index: {}]   ;;  %s6241_s6 = inlined_call_operand.vmem [shape: f32[3,32,32], index: 6, kind: input, shape index: {}]   ;;  %s6242_s7 = inlined_call_operand.vmem [shape: f32[3,96], index: 7, kind: input, shape index: {}]   ;;  %s6243_s8 = inlined_call_operand.vmem [shape: f32[3,32], index: 8, kind: input, shape index: {}]   ;;  %s6244_s9 = inlined_call_operand.vmem [shape: f32[1,32], index: 9, kind: input, shape index: {}]   ;;  %s6245_s1 = inlined_call_operand.vmem [shape: f32[128,1], index: 1, kind: input, shape index: {}]   ;;  %s6246_s10 = inlined_call_operand.vmem [shape: f32[128,1], index: 10, kind: output, shape index: {}]  }
   0x1   :  { %v51_v0 = vld [vmem:[%s6236_s2] sm:$0xf]  ;;  %v36_v2 = vld [vmem:[%s6237_s0 + $0x8] sm:$0xff]  ;;  %348 = vmatprep.mubr.f32.mxu1 %v4472_v3  ;;  %v37_v4 = vld [vmem:[%s6237_s0 + $0x10] sm:$0xff]  ;;  %s4475_s28 = smov 32   ;;  %vm3588_vm3 = vcmask 7168  }
   0x2   :  { %v35_v1 = vld [vmem:[%s6237_s0] sm:$0xff]  ;;  %3935 = vmatprep.subr.msk.mxu0 %vm108_vm0, %v51_v0  ;;  %v38_v5 = vld [vmem:[%s6237_s0 + $0x18] sm:$0xff]  ;;  %v274_v7 = vld [vmem:[%s6238_s4 + $0x8] sm:$0xf] }
   0x3   :  { %3937 = vmatprep.mubr.msk.f32.mxu0 %vm59_vm1, %v35_v1  ;;  %3936 = vmatpush3.msk.msra.mxu0 %vm108_vm0, %v51_v0  ;;  %v39_v6 = vld [vmem:[%s6237_s0 + $0x20] sm:$0xff]  ;;  %v593_v9 = vld [vmem:[%s6239_s5 + $0x18] sm:$0xff]  ;;  %v40_v11 = vld [vmem:[%s6237_s0 + $0x28] sm:$0xff] }
   0x4   :  { %3938 = vmatmul.mubr.msk.f32.vlgmr.msra.gmra.mxu0 %vm59_vm1, %v36_v2  ;;  %3961 = vmatprep.subr.msk.mxu0 %vm108_vm0, %v274_v7  ;;  %v273_v8 = vld [vmem:[%s6238_s4] sm:$0xff]  ;;  %v41_v12 = vld [vmem:[%s6237_s0 + $0x30] sm:$0xff]  ;;  %v42_v13 = vld [vmem:[%s6237_s0 + $0x38] sm:$0xff] }
   0x5   :  { %3940 = vmatprep.mubr.msk.f32.mxu0 %vm59_vm1, %v37_v4  ;;  %v277_v10 = vcombine.high %v273_v8, %v273_v8  ;;  %3962 = vmatpush3.msk.msra.mxu0 %vm108_vm0, %v274_v7  ;;  %v43_v14 = vld [vmem:[%s6237_s0 + $0x40] sm:$0xff]  ;;  %v44_v15 = vld [vmem:[%s6237_s0 + $0x48] sm:$0xff]  ;;  %v45_v16 = vld [vmem:[%s6237_s0 + $0x50] sm:$0xff] }
   0x6   :  { %3987 = vmatprep.subr.mxu0 %v593_v9  ;;  %v46_v17 = vld [vmem:[%s6237_s0 + $0x58] sm:$0xff]  ;;  %v47_v18 = vld [vmem:[%s6237_s0 + $0x60] sm:$0xff]  ;;  %v48_v19 = vld [vmem:[%s6237_s0 + $0x68] sm:$0xff] }
   0x7   :  { %3627 = vmatprep.subr.msk.mxu1 %vm108_vm0, %v277_v10  ;;  %v49_v20 = vld [vmem:[%s6237_s0 + $0x70] sm:$0xff]  ;;  %v50_v21 = vld [vmem:[%s6237_s0 + $0x78] sm:$0xff]  ;;  %v591_v23 = vld [vmem:[%s6239_s5 + $0x8] sm:$0xff] }
   0x8   :  { %3941 = vmatmul.mubr.msk.f32.gmra.mxu0 %vm59_vm1, %v38_v5  ;;  %3628 = vmatpush1.msk.msra.mxu1 %vm108_vm0, %v273_v8  ;;  %v592_v22 = vld [vmem:[%s6239_s5 + $0x10] sm:$0xff]  ;;  %v590_v24 = vld [vmem:[%s6239_s5] sm:$0xff] }
   0x9   :  { %3943 = vmatprep.mubr.msk.f32.mxu0 %vm59_vm1, %v39_v6  ;;  %3629 = vmatmul.mubr.msk.f32.vlgmr.msra.gmra.mxu1 %vm59_vm1, %v35_v1  ;;  %v3609_v25 = vld [vmem:[%s6240_s3] ss:$0 sm:$0xff] }
   0xa   :  { %354 = vmatprep.mubr.f32.mxu1 %v4472_v3 }
   0xc   :  { %3944 = vmatmul.mubr.msk.f32.gmra.mxu0 %vm59_vm1, %v40_v11 }
   0xd   :  { %3946 = vmatprep.mubr.msk.f32.mxu0 %vm59_vm1, %v41_v12  ;;  %3630 = vmatmul.mubr.msk.f32.gmra.mxu1 %vm59_vm1, %v36_v2 }
   0xe   :  { %360 = vmatprep.mubr.f32.mxu1 %v4472_v3 }
  0x10   :  { %3947 = vmatmul.mubr.msk.f32.gmra.mxu0 %vm59_vm1, %v42_v13 }
  0x11   :  { %3949 = vmatprep.mubr.msk.f32.mxu0 %vm59_vm1, %v43_v14  ;;  %3631 = vmatmul.mubr.msk.f32.gmra.mxu1 %vm59_vm1, %v37_v4 }
  0x12   :  { %366 = vmatprep.mubr.f32.mxu1 %v4472_v3 }
  0x14   :  { %3950 = vmatmul.mubr.msk.f32.gmra.mxu0 %vm59_vm1, %v44_v15 }
  0x15   :  { %3952 = vmatprep.mubr.msk.f32.mxu0 %vm59_vm1, %v45_v16  ;;  %3632 = vmatmul.mubr.msk.f32.gmra.mxu1 %vm59_vm1, %v38_v5 }
  0x16   :  { %372 = vmatprep.mubr.f32.mxu1 %v4472_v3 }
  0x18   :  { %3953 = vmatmul.mubr.msk.f32.gmra.mxu0 %vm59_vm1, %v46_v17 }
  0x19   :  { %3955 = vmatprep.mubr.msk.f32.mxu0 %vm59_vm1, %v47_v18  ;;  %3633 = vmatmul.mubr.msk.f32.gmra.mxu1 %vm59_vm1, %v39_v6 }
  0x1a   :  { %378 = vmatprep.mubr.f32.mxu1 %v4472_v3 }
  0x1c   :  { %3956 = vmatmul.mubr.msk.f32.gmra.mxu0 %vm59_vm1, %v48_v19 }
  0x1d   :  { %3958 = vmatprep.mubr.msk.f32.mxu0 %vm59_vm1, %v49_v20  ;;  %3634 = vmatmul.mubr.msk.f32.gmra.mxu1 %vm59_vm1, %v40_v11 }
  0x1e   :  { %384 = vmatprep.mubr.f32.mxu1 %v4472_v3 }
  0x20   :  { %3959 = vmatmul.mubr.msk.f32.gmra.mxu0 %vm59_vm1, %v50_v21 }
  0x21   :  { %3963 = vmatprep.mubr.msk.f32.mxu0 %vm59_vm1, %v35_v1  ;;  %3635 = vmatmul.mubr.msk.f32.gmra.mxu1 %vm59_vm1, %v41_v12 }
  0x22   :  { %390 = vmatprep.mubr.f32.mxu1 %v4472_v3 }
  0x24   :  { %3964 = vmatmul.mubr.msk.f32.vlgmr.msra.gmra.mxu0 %vm59_vm1, %v36_v2 }
  0x25   :  { %3988 = vmatpush3.msra.mxu0 %v593_v9  ;;  %3966 = vmatprep.mubr.msk.f32.mxu0 %vm59_vm1, %v37_v4 }
  0x26   :  { %3989 = vmatprep.subr.mxu0 %v592_v22  ;;  %3636 = vmatmul.mubr.msk.f32.gmra.mxu1 %vm59_vm1, %v42_v13 }
  0x27   :  { %3990 = vmatpush3.msra.mxu0 %v592_v22  ;;  %396 = vmatprep.mubr.f32.mxu1 %v4472_v3 }
  0x28   :  { %3967 = vmatmul.mubr.msk.f32.gmra.mxu0 %vm59_vm1, %v38_v5  ;;  %3991 = vmatprep.subr.mxu0 %v591_v23 }
  0x29   :  { %3969 = vmatprep.mubr.msk.f32.mxu0 %vm59_vm1, %v39_v6  ;;  %3992 = vmatpush3.msra.mxu0 %v591_v23 }
  0x2a   :  { %3637 = vmatmul.mubr.msk.f32.gmra.mxu1 %vm59_vm1, %v43_v14  ;;  %3993 = vmatprep.subr.mxu0 %v590_v24 }
  0x2b   :  { %402 = vmatprep.mubr.f32.mxu1 %v4472_v3  ;;  %3994 = vmatpush3.msra.mxu0 %v590_v24 }
  0x2c   :  { %3970 = vmatmul.mubr.msk.f32.gmra.mxu0 %vm59_vm1, %v40_v11 }
  0x2d   :  { %3972 = vmatprep.mubr.msk.f32.mxu0 %vm59_vm1, %v41_v12 }
  0x2e   :  { %3638 = vmatmul.mubr.msk.f32.gmra.mxu1 %vm59_vm1, %v44_v15 }
  0x2f   :  { %408 = vmatprep.mubr.f32.mxu1 %v4472_v3 }
  0x30   :  { %3973 = vmatmul.mubr.msk.f32.gmra.mxu0 %vm59_vm1, %v42_v13 }
  0x31   :  { %3975 = vmatprep.mubr.msk.f32.mxu0 %vm59_vm1, %v43_v14 }
  0x32   :  { %3639 = vmatmul.mubr.msk.f32.gmra.mxu1 %vm59_vm1, %v45_v16 }
  0x33   :  { %414 = vmatprep.mubr.f32.mxu1 %v4472_v3 }
  0x34   :  { %3976 = vmatmul.mubr.msk.f32.gmra.mxu0 %vm59_vm1, %v44_v15  ;;  %v924_v15 = vld [vmem:[%s6241_s6 + $0x18] sm:$0xff] }
  0x35   :  { %3978 = vmatprep.mubr.msk.f32.mxu0 %vm59_vm1, %v45_v16  ;;  %v923_v16 = vld [vmem:[%s6241_s6 + $0x10] sm:$0xff]  ;;  %4019 = vmatprep.subr.mxu1 %v924_v15 }
  0x36   :  { %3640 = vmatmul.mubr.msk.f32.gmra.mxu1 %vm59_vm1, %v46_v17 }
  0x37   :  { %420 = vmatprep.mubr.f32.mxu1 %v4472_v3  ;;  %4020 = vmatpush3.msra.mxu1 %v924_v15 }
  0x38   :  { %3979 = vmatmul.mubr.msk.f32.gmra.mxu0 %vm59_vm1, %v46_v17  ;;  %4021 = vmatprep.subr.mxu1 %v923_v16 }
  0x39   :  { %3981 = vmatprep.mubr.msk.f32.mxu0 %vm59_vm1, %v47_v18  ;;  %4022 = vmatpush3.msra.mxu1 %v923_v16 }
  0x3a   :  { %3641 = vmatmul.mubr.msk.f32.gmra.mxu1 %vm59_vm1, %v47_v18  ;;  %v922_v18 = vld [vmem:[%s6241_s6 + $0x8] sm:$0xff] }
  0x3b   :  { %426 = vmatprep.mubr.f32.mxu1 %v4472_v3  ;;  %4023 = vmatprep.subr.mxu1 %v922_v18 }
  0x3c   :  { %3982 = vmatmul.mubr.msk.f32.gmra.mxu0 %vm59_vm1, %v48_v19  ;;  %4024 = vmatpush3.msra.mxu1 %v922_v18 }
  0x3d   :  { %3984 = vmatprep.mubr.msk.f32.mxu0 %vm59_vm1, %v49_v20 }
  0x3e   :  { %3642 = vmatmul.mubr.msk.f32.gmra.mxu1 %vm59_vm1, %v48_v19  ;;  %v921_v19 = vld [vmem:[%s6241_s6] sm:$0xff] }
  0x3f   :  { %432 = vmatprep.mubr.f32.mxu1 %v4472_v3  ;;  %4025 = vmatprep.subr.mxu1 %v921_v19 }
  0x40   :  { %3985 = vmatmul.mubr.msk.f32.gmra.mxu0 %vm59_vm1, %v50_v21  ;;  %4026 = vmatpush3.msra.mxu1 %v921_v19 }
  0x42   :  { %3643 = vmatmul.mubr.msk.f32.gmra.mxu1 %vm59_vm1, %v49_v20 }
  0x43   :  { %438 = vmatprep.mubr.f32.mxu1 %v4472_v3 }
  0x46   :  { %3644 = vmatmul.mubr.msk.f32.gmra.mxu1 %vm59_vm1, %v50_v21 }
  0xc4   :  { %v3939_v26 = vpop.f32.mrf.mxu0 }
  0xc5   :  { %v184_v27 = vadd.f32 %v3939_v26, %v3609_v25 }
  0xc6   :  { %v178_v28 = vpop.f32.mrf.mxu0 }
  0xc7   :  { %v179_v29 = vadd.f32 %v3609_v25, %v178_v28 }
  0xc8   :  { %v3942_v30 = vpop.f32.mrf.mxu0 }
  0xc9   :  { %4184 = vtanh.f32 %v179_v29  ;;  %v194_v31 = vadd.f32 %v3942_v30, %v3609_v25  ;;  %v4737_v10 = vpop.f32.mrf.mxu1 }
  0xca   :  { %4186 = vtanh.f32 %v184_v27  ;;  %v188_v32 = vpop.f32.mrf.mxu0 }
  0xcb   :  { %v189_v33 = vadd.f32 %v3609_v25, %v188_v32  ;;  %4188 = vtanh.f32 %v194_v31  ;;  %v4739_v11 = vpop.f32.mrf.mxu1 }
  0xcc   :  { %v3945_v34 = vpop.f32.mrf.mxu0 }
  0xcd   :  { %4190 = vtanh.f32 %v189_v33  ;;  %v204_v35 = vadd.f32 %v3945_v34, %v3609_v25  ;;  %v4741_v12 = vpop.f32.mrf.mxu1 }
  0xce   :  { %v198_v36 = vpop.f32.mrf.mxu0 }
  0xcf   :  { %v199_v37 = vadd.f32 %v3609_v25, %v198_v36  ;;  %4192 = vtanh.f32 %v204_v35  ;;  %v4743_v13 = vpop.f32.mrf.mxu1 }
  0xd0   :  { %v3948_v38 = vpop.f32.mrf.mxu0 }
  0xd1   :  { %4194 = vtanh.f32 %v199_v37  ;;  %v214_v39 = vadd.f32 %v3948_v38, %v3609_v25  ;;  %v4745_v14 = vpop.f32.mrf.mxu1 }
  0xd2   :  { %v208_v40 = vpop.f32.mrf.mxu0 }
  0xd3   :  { %v209_v41 = vadd.f32 %v3609_v25, %v208_v40  ;;  %4196 = vtanh.f32 %v214_v39  ;;  %v4753_v17 = vpop.f32.mrf.mxu1 }
  0xd4   :  { %v3951_v42 = vpop.f32.mrf.mxu0 }
  0xd5   :  { %4198 = vtanh.f32 %v209_v41  ;;  %v224_v43 = vadd.f32 %v3951_v42, %v3609_v25  ;;  %v4761_v20 = vpop.f32.mrf.mxu1 }
  0xd6   :  { %v4673_v44 = vpop.eup %4184  ;;  %v218_v45 = vpop.f32.mrf.mxu0 }
  0xd7   :  { %v4675_v46 = vpop.eup %4186  ;;  %v219_v47 = vadd.f32 %v3609_v25, %v218_v45  ;;  %3995 = vmatprep.mubr.msk.f32.mxu0 %vm594_vm2, %v4673_v44  ;;  %4200 = vtanh.f32 %v224_v43  ;;  %v4763_v21 = vpop.f32.mrf.mxu1 }
  0xd8   :  { %v3954_v48 = vpop.f32.mrf.mxu0  ;;  %3996 = vmatmul.mubr.msk.f32.vlgmr.msra.gmra.mxu0 %vm594_vm2, %v4675_v46  ;;  %v4681_v49 = vpop.eup %4188 }
  0xd9   :  { %4202 = vtanh.f32 %v219_v47  ;;  %v234_v50 = vadd.f32 %v3954_v48, %v3609_v25  ;;  %v4767_v23 = vpop.f32.mrf.mxu1 }
  0xda   :  { %v4683_v51 = vpop.eup %4190  ;;  %v228_v52 = vpop.f32.mrf.mxu0 }
  0xdb   :  { %v229_v53 = vadd.f32 %v3609_v25, %v228_v52  ;;  %3998 = vmatprep.mubr.msk.f32.mxu0 %vm594_vm2, %v4683_v51  ;;  %4204 = vtanh.f32 %v234_v50 }
  0xdc   :  { %v3957_v54 = vpop.f32.mrf.mxu0  ;;  %3999 = vmatmul.mubr.msk.f32.gmra.mxu0 %vm594_vm2, %v4681_v49  ;;  %v4689_v55 = vpop.eup %4192 }
  0xdd   :  { %4206 = vtanh.f32 %v229_v53  ;;  %v244_v56 = vadd.f32 %v3957_v54, %v3609_v25 }
  0xde   :  { %v4691_v57 = vpop.eup %4194  ;;  %v238_v58 = vpop.f32.mrf.mxu0 }
  0xdf   :  { %v239_v59 = vadd.f32 %v3609_v25, %v238_v58  ;;  %4001 = vmatprep.mubr.msk.f32.mxu0 %vm594_vm2, %v4691_v57  ;;  %4208 = vtanh.f32 %v244_v56 }
  0xe0   :  { %v3960_v60 = vpop.f32.mrf.mxu0  ;;  %4002 = vmatmul.mubr.msk.f32.gmra.mxu0 %vm594_vm2, %v4689_v55  ;;  %v4697_v61 = vpop.eup %4196 }
  0xe1   :  { %4210 = vtanh.f32 %v239_v59  ;;  %v254_v62 = vadd.f32 %v3960_v60, %v3609_v25 }
  0xe2   :  { %v4699_v63 = vpop.eup %4198  ;;  %v248_v0 = vpop.f32.mrf.mxu0 }
  0xe3   :  { %v249_v1 = vadd.f32 %v3609_v25, %v248_v0  ;;  %4004 = vmatprep.mubr.msk.f32.mxu0 %vm594_vm2, %v4699_v63  ;;  %4212 = vtanh.f32 %v254_v62  ;;  %v4771_v25 = vpop.f32.mrf.mxu1 }
  0xe4   :  { %4005 = vmatmul.mubr.msk.f32.gmra.mxu0 %vm594_vm2, %v4697_v61  ;;  %v4705_v2 = vpop.eup %4200  ;;  %v4765_v22 = vpop.f32.mrf.mxu0 }
  0xe5   :  { %4214 = vtanh.f32 %v249_v1  ;;  %6282 = vst [vmem:[#allocation2_spill] sm:$0xff] %v4765_v22  ;;  %v4775_v27 = vpop.f32.mrf.mxu1  ;;  %v4833_v1 = vld [vmem:[%s6242_s7] ss:$0 sm:$0xff] }
  0xe6   :  { %v4707_v3 = vpop.eup %4202  ;;  %v4769_v24 = vpop.f32.mrf.mxu0 }
  0xe7   :  { %4007 = vmatprep.mubr.msk.f32.mxu0 %vm594_vm2, %v4707_v3  ;;  %6283 = vst [vmem:[#allocation3_spill] sm:$0xff] %v4769_v24  ;;  %v4779_v29 = vpop.f32.mrf.mxu1 }
  0xe8   :  { %4008 = vmatmul.mubr.msk.f32.gmra.mxu0 %vm594_vm2, %v4705_v2  ;;  %v4713_v4 = vpop.eup %4204  ;;  %v4773_v26 = vpop.f32.mrf.mxu0 }
  0xe9   :  { %6284 = vst [vmem:[#allocation4_spill] sm:$0xff] %v4773_v26  ;;  %v4783_v31 = vpop.f32.mrf.mxu1 }
  0xea   :  { %v4715_v5 = vpop.eup %4206  ;;  %v4777_v28 = vpop.f32.mrf.mxu0 }
  0xeb   :  { %4010 = vmatprep.mubr.msk.f32.mxu0 %vm594_vm2, %v4715_v5  ;;  %6285 = vst [vmem:[#allocation5_spill] sm:$0xff] %v4777_v28  ;;  %v4787_v33 = vpop.f32.mrf.mxu1 }
  0xec   :  { %4011 = vmatmul.mubr.msk.f32.gmra.mxu0 %vm594_vm2, %v4713_v4  ;;  %v4721_v6 = vpop.eup %4208  ;;  %v4781_v30 = vpop.f32.mrf.mxu0  ;;  %6288 = vst [vmem:[#allocation8_spill] sm:$0xff] %v4787_v33 }
  0xed   :  { %6286 = vst [vmem:[#allocation6_spill] sm:$0xff] %v4781_v30  ;;  %v4791_v35 = vpop.f32.mrf.mxu1 }
  0xee   :  { %v4723_v7 = vpop.eup %4210  ;;  %v4785_v32 = vpop.f32.mrf.mxu0 }
  0xef   :  { %4013 = vmatprep.mubr.msk.f32.mxu0 %vm594_vm2, %v4723_v7  ;;  %6287 = vst [vmem:[#allocation7_spill] sm:$0xff] %v4785_v32  ;;  %v4795_v37 = vpop.f32.mrf.mxu1 }
  0xf0   :  { %4014 = vmatmul.mubr.msk.f32.gmra.mxu0 %vm594_vm2, %v4721_v6  ;;  %v4729_v8 = vpop.eup %4212  ;;  %v4789_v34 = vpop.f32.mrf.mxu0  ;;  %6291 = vst [vmem:[#allocation11_spill] sm:$0xff] %v4795_v37 }
  0xf1   :  { %6289 = vst [vmem:[#allocation9_spill] sm:$0xff] %v4789_v34  ;;  %v4799_v39 = vpop.f32.mrf.mxu1 }
  0xf2   :  { %v4731_v9 = vpop.eup %4214  ;;  %v4793_v36 = vpop.f32.mrf.mxu0 }
  0xf3   :  { %4016 = vmatprep.mubr.msk.f32.mxu0 %vm594_vm2, %v4731_v9  ;;  %6290 = vst [vmem:[#allocation10_spill] sm:$0xff] %v4793_v36  ;;  %v4803_v41 = vpop.f32.mrf.mxu1 }
  0xf4   :  { %4017 = vmatmul.mubr.msk.f32.gmra.mxu0 %vm594_vm2, %v4729_v8  ;;  %v4797_v38 = vpop.f32.mrf.mxu0  ;;  %6294 = vst [vmem:[#allocation14_spill] sm:$0xff] %v4803_v41 }
  0xf5   :  { %6292 = vst [vmem:[#allocation12_spill] sm:$0xff] %v4797_v38  ;;  %v4807_v43 = vpop.f32.mrf.mxu1 }
  0xf6   :  { %v4801_v40 = vpop.f32.mrf.mxu0 }
  0xf7   :  { %6293 = vst [vmem:[#allocation13_spill] sm:$0xff] %v4801_v40  ;;  %v4811_v47 = vpop.f32.mrf.mxu1 }
  0xf8   :  { %v4805_v42 = vpop.f32.mrf.mxu0  ;;  %6297 = vst [vmem:[#allocation17_spill] sm:$0xff] %v4811_v47 }
  0xf9   :  { %6295 = vst [vmem:[#allocation15_spill] sm:$0xff] %v4805_v42  ;;  %v4815_v50 = vpop.f32.mrf.mxu1 }
  0xfa   :  { %v4809_v45 = vpop.f32.mrf.mxu0 }
  0xfb   :  { %6296 = vst [vmem:[#allocation16_spill] sm:$0xff] %v4809_v45  ;;  %v4819_v53 = vpop.f32.mrf.mxu1 }
  0xfc   :  { %v4813_v48 = vpop.f32.mrf.mxu0  ;;  %6300 = vst [vmem:[#allocation20_spill] sm:$0xff] %v4819_v53 }
  0xfd   :  { %6298 = vst [vmem:[#allocation18_spill] sm:$0xff] %v4813_v48  ;;  %v4823_v56 = vpop.f32.mrf.mxu1 }
  0xfe   :  { %v4817_v52 = vpop.f32.mrf.mxu0 }
  0xff   :  { %6299 = vst [vmem:[#allocation19_spill] sm:$0xff] %v4817_v52  ;;  %v4827_v60 = vpop.f32.mrf.mxu1 }
 0x100   :  { %v4821_v54 = vpop.f32.mrf.mxu0  ;;  %6303 = vst [vmem:[#allocation23_spill] sm:$0xff] %v4827_v60 }
 0x101   :  { %6301 = vst [vmem:[#allocation21_spill] sm:$0xff] %v4821_v54  ;;  %v4836_v18 = vpop.f32.mrf.mxu1 }
 0x102   :  { %v4825_v58 = vpop.f32.mrf.mxu0 }
 0x103   :  { %6302 = vst [vmem:[#allocation22_spill] sm:$0xff] %v4825_v58  ;;  %v4842_v45 = vpop.f32.mrf.mxu1 }
 0x104   :  { %6304 = vst [vmem:[#allocation24_spill] sm:$0xff] %v4842_v45 }
 0x198   :  { %v3997_v59 = vpop.f32.mrf.mxu0 }
 0x199   :  { %v789_v62 = vadd.f32 %v3997_v59, %v4741_v12 }
 0x19a   :  { %v709_v0 = vpop.f32.mrf.mxu0 }
 0x19b   :  { %v788_v15 = vadd.f32 %v709_v0, %v4737_v10  ;;  %v810_v58 = vadd.f32 %v4833_v1, %v789_v62 }
 0x19c   :  { %v4000_v16 = vpop.f32.mrf.mxu0 }
 0x19d   :  { %v809_v19 = vadd.f32 %v4833_v1, %v788_v15  ;;  %v791_v54 = vadd.f32 %v4000_v16, %v4761_v20  ;;  %v4848_v16 = vpop.f32.mrf.mxu1 }
 0x19e   :  { %v719_v52 = vpop.f32.mrf.mxu0 }
 0x19f   :  { %4216 = vtanh.f32 %v809_v19  ;;  %v790_v59 = vadd.f32 %v719_v52, %v4745_v14  ;;  %v812_v0 = vadd.f32 %v4833_v1, %v791_v54 }
 0x1a0   :  { %v4003_v48 = vpop.f32.mrf.mxu0  ;;  %4218 = vtanh.f32 %v810_v58 }
 0x1a1   :  { %v811_v42 = vadd.f32 %v4833_v1, %v790_v59  ;;  %v793_v40 = vadd.f32 %v4003_v48, %v4775_v27  ;;  %v4854_v48 = vpop.f32.mrf.mxu1 }
 0x1a2   :  { %v729_v38 = vpop.f32.mrf.mxu0  ;;  %6305 = vst [vmem:[#allocation25_spill] sm:$0xff] %v4854_v48 }
 0x1a3   :  { %4220 = vtanh.f32 %v811_v42  ;;  %v792_v62 = vadd.f32 %v729_v38, %v4767_v23  ;;  %v814_v52 = vadd.f32 %v4833_v1, %v793_v40 }
 0x1a4   :  { %v4006_v15 = vpop.f32.mrf.mxu0  ;;  %4222 = vtanh.f32 %v812_v0 }
 0x1a5   :  { %v813_v19 = vadd.f32 %v4833_v1, %v792_v62  ;;  %v795_v36 = vadd.f32 %v4006_v15, %v4791_v35 }
 0x1a6   :  { %v739_v59 = vpop.f32.mrf.mxu0 }
 0x1a7   :  { %4224 = vtanh.f32 %v813_v19  ;;  %v794_v54 = vadd.f32 %v739_v59, %v4783_v31  ;;  %v816_v38 = vadd.f32 %v4833_v1, %v795_v36  ;;  %v4862_v19 = vpop.f32.mrf.mxu1 }
 0x1a8   :  { %v4009_v58 = vpop.f32.mrf.mxu0  ;;  %4226 = vtanh.f32 %v814_v52 }
 0x1a9   :  { %v815_v42 = vadd.f32 %v4833_v1, %v794_v54  ;;  %v797_v34 = vadd.f32 %v4009_v58, %v4807_v43  ;;  %v4874_v30 = vpop.f32.mrf.mxu1 }
 0x1aa   :  { %v749_v62 = vpop.f32.mrf.mxu0  ;;  %6306 = vst [vmem:[#allocation26_spill] sm:$0xff] %v4874_v30 }
 0x1ab   :  { %4228 = vtanh.f32 %v815_v42  ;;  %v796_v40 = vadd.f32 %v749_v62, %v4799_v39  ;;  %v818_v36 = vadd.f32 %v4833_v1, %v797_v34 }
 0x1ac   :  { %v4860_v0 = vpop.eup %4216  ;;  %v4012_v15 = vpop.f32.mrf.mxu0  ;;  %4230 = vtanh.f32 %v816_v38 }
 0x1ad   :  { %v817_v59 = vadd.f32 %v4833_v1, %v796_v40  ;;  %857 = vrot.lane.b32.xlu0 %v4860_v0, %s4473_s24  ;;  %v799_v52 = vadd.f32 %v4012_v15, %v4823_v56  ;;  %v4869_v58 = vpop.eup %4218 }
 0x1ae   :  { %v759_v54 = vpop.f32.mrf.mxu0 }
 0x1af   :  { %4232 = vtanh.f32 %v817_v59  ;;  %v798_v42 = vadd.f32 %v759_v54, %v4815_v50  ;;  %v820_v34 = vadd.f32 %v4833_v1, %v799_v52 }
 0x1b0   :  { %v4872_v62 = vpop.eup %4220  ;;  %v4015_v32 = vpop.f32.mrf.mxu0  ;;  %4234 = vtanh.f32 %v818_v36 }
 0x1b1   :  { %v819_v40 = vadd.f32 %v4833_v1, %v798_v42  ;;  %859 = vrot.lane.b32.xlu0 %v4869_v58, %s4473_s24  ;;  %861 = vrot.lane.b32.xlu1 %v4872_v62, %s4473_s24  ;;  %v801_v38 = vadd.f32 %v4015_v32, %v4848_v16  ;;  %v4883_v59 = vpop.eup %4222  ;;  %v4888_v42 = vpop.f32.mrf.mxu1 }
 0x1b2   :  { %v769_v15 = vpop.f32.mrf.mxu0 }
 0x1b3   :  { %4236 = vtanh.f32 %v819_v40  ;;  %v800_v54 = vadd.f32 %v769_v15, %v4836_v18  ;;  %v822_v32 = vadd.f32 %v4833_v1, %v801_v38 }
 0x1b4   :  { %v4886_v28 = vpop.eup %4224  ;;  %v4018_v26 = vpop.f32.mrf.mxu0  ;;  %4238 = vtanh.f32 %v820_v34 }
 0x1b5   :  { %v821_v24 = vadd.f32 %v4833_v1, %v800_v54  ;;  %863 = vrot.lane.b32.xlu1 %v4883_v59, %s4473_s24  ;;  %865 = vrot.lane.b32.xlu0 %v4886_v28, %s4473_s24  ;;  %v4896_v52 = vpop.eup %4226  ;;  %v803_v40 = vadd.f32 %v4018_v26, %v4888_v42 }
 0x1b6   :  { %v779_v36 = vpop.f32.mrf.mxu0 }
 0x1b7   :  { %4240 = vtanh.f32 %v821_v24  ;;  %v802_v15 = vadd.f32 %v779_v36, %v4862_v19  ;;  %v824_v38 = vadd.f32 %v4833_v1, %v803_v40 }
 0x1b8   :  { %v4900_v22 = vpop.eup %4228  ;;  %4242 = vtanh.f32 %v822_v32 }
 0x1b9   :  { %v823_v54 = vadd.f32 %v4833_v1, %v802_v15  ;;  %867 = vrot.lane.b32.xlu1 %v4896_v52, %s4473_s24  ;;  %869 = vrot.lane.b32.xlu0 %v4900_v22, %s4473_s24  ;;  %v4907_v34 = vpop.eup %4230 }
 0x1bb   :  { %4244 = vtanh.f32 %v823_v54 }
 0x1bc   :  { %v4910_v24 = vpop.eup %4232  ;;  %4246 = vtanh.f32 %v824_v38 }
 0x1bd   :  { %871 = vrot.lane.b32.xlu1 %v4907_v34, %s4473_s24  ;;  %873 = vrot.lane.b32.xlu0 %v4910_v24, %s4473_s24  ;;  %v4916_v26 = vpop.eup %4234 }
 0x1c0   :  { %v4918_v36 = vpop.eup %4236 }
 0x1c1   :  { %875 = vrot.lane.b32.xlu1 %v4916_v26, %s4473_s24  ;;  %877 = vrot.lane.b32.xlu0 %v4918_v36, %s4473_s24  ;;  %v4924_v1 = vpop.eup %4238 }
 0x1c4   :  { %v4926_v32 = vpop.eup %4240 }
 0x1c5   :  { %879 = vrot.lane.b32.xlu1 %v4924_v1, %s4473_s24  ;;  %881 = vrot.lane.b32.xlu0 %v4926_v32, %s4473_s24  ;;  %v4932_v40 = vpop.eup %4242 }
 0x1c8   :  { %v4934_v15 = vpop.eup %4244 }
 0x1c9   :  { %883 = vrot.lane.b32.xlu1 %v4932_v40, %s4473_s24  ;;  %885 = vrot.lane.b32.xlu0 %v4934_v15, %s4473_s24  ;;  %v4940_v54 = vpop.eup %4246 }
 0x1cd   :  { %887 = vrot.lane.b32.xlu1 %v4940_v54, %s4473_s24 }
 0x21f   :  { %v858_v38 = vpop.permute.xlu0 %857 }
 0x220   :  { %v905_v30 = vmul.f32 %v4673_v44, %v858_v38 }
 0x222   :  { %4027 = vmatprep.mubr.msk.f32.mxu1 %vm594_vm2, %v905_v30 }
 0x223   :  { %v860_v45 = vpop.permute.xlu0 %859  ;;  %v862_v48 = vpop.permute.xlu1 %861 }
 0x224   :  { %v906_v53 = vmul.f32 %v4675_v46, %v860_v45  ;;  %v907_v60 = vmul.f32 %v4683_v51, %v862_v48 }
 0x226   :  { %4028 = vmatmul.mubr.msk.f32.vlgmr.msra.gmra.mxu1 %vm594_vm2, %v906_v53 }
 0x227   :  { %4030 = vmatprep.mubr.msk.f32.mxu1 %vm594_vm2, %v907_v60  ;;  %v864_v41 = vpop.permute.xlu1 %863  ;;  %v866_v47 = vpop.permute.xlu0 %865 }
 0x228   :  { %v908_v33 = vmul.f32 %v4681_v49, %v864_v41  ;;  %v909_v37 = vmul.f32 %v4691_v57, %v866_v47 }
 0x22a   :  { %4031 = vmatmul.mubr.msk.f32.gmra.mxu1 %vm594_vm2, %v908_v33 }
 0x22b   :  { %v868_v38 = vpop.permute.xlu1 %867  ;;  %4033 = vmatprep.mubr.msk.f32.mxu1 %vm594_vm2, %v909_v37  ;;  %v870_v30 = vpop.permute.xlu0 %869 }
 0x22c   :  { %v910_v45 = vmul.f32 %v4689_v55, %v868_v38  ;;  %v911_v48 = vmul.f32 %v4699_v63, %v870_v30 }
 0x22e   :  { %4034 = vmatmul.mubr.msk.f32.gmra.mxu1 %vm594_vm2, %v910_v45 }
 0x22f   :  { %v872_v53 = vpop.permute.xlu1 %871  ;;  %4036 = vmatprep.mubr.msk.f32.mxu1 %vm594_vm2, %v911_v48  ;;  %v874_v60 = vpop.permute.xlu0 %873 }
 0x230   :  { %v912_v41 = vmul.f32 %v4697_v61, %v872_v53  ;;  %v913_v47 = vmul.f32 %v4707_v3, %v874_v60 }
 0x232   :  { %4037 = vmatmul.mubr.msk.f32.gmra.mxu1 %vm594_vm2, %v912_v41 }
 0x233   :  { %v876_v33 = vpop.permute.xlu1 %875  ;;  %4039 = vmatprep.mubr.msk.f32.mxu1 %vm594_vm2, %v913_v47  ;;  %v878_v37 = vpop.permute.xlu0 %877 }
 0x234   :  { %v914_v38 = vmul.f32 %v4705_v2, %v876_v33  ;;  %v915_v30 = vmul.f32 %v4715_v5, %v878_v37 }
 0x236   :  { %4040 = vmatmul.mubr.msk.f32.gmra.mxu1 %vm594_vm2, %v914_v38 }
 0x237   :  { %v880_v45 = vpop.permute.xlu1 %879  ;;  %4042 = vmatprep.mubr.msk.f32.mxu1 %vm594_vm2, %v915_v30  ;;  %v882_v48 = vpop.permute.xlu0 %881 }
 0x238   :  { %v916_v53 = vmul.f32 %v4713_v4, %v880_v45  ;;  %v917_v60 = vmul.f32 %v4723_v7, %v882_v48  ;;  %v4976_v45 = vpop.f32.mrf.mxu1 }
 0x239   :  { %6307 = vst [vmem:[#allocation27_spill] sm:$0xff] %v4976_v45 }
 0x23a   :  { %4043 = vmatmul.mubr.msk.f32.gmra.mxu1 %vm594_vm2, %v916_v53 }
 0x23b   :  { %v884_v41 = vpop.permute.xlu1 %883  ;;  %4045 = vmatprep.mubr.msk.f32.mxu1 %vm594_vm2, %v917_v60  ;;  %v886_v47 = vpop.permute.xlu0 %885 }
 0x23c   :  { %v918_v33 = vmul.f32 %v4721_v6, %v884_v41  ;;  %v919_v37 = vmul.f32 %v4731_v9, %v886_v47  ;;  %v3695_v41 = vld [vmem:[%s6243_s8] ss:$0 sm:$0xff] }
 0x23e   :  { %4046 = vmatmul.mubr.msk.f32.gmra.mxu1 %vm594_vm2, %v918_v33 }
 0x23f   :  { %v888_v38 = vpop.permute.xlu1 %887  ;;  %4048 = vmatprep.mubr.msk.f32.mxu1 %vm594_vm2, %v919_v37 }
 0x240   :  { %v920_v30 = vmul.f32 %v4729_v8, %v888_v38 }
 0x242   :  { %4049 = vmatmul.mubr.msk.f32.gmra.mxu1 %vm594_vm2, %v920_v30 }
 0x2e6   :  { %v4029_v48 = vpop.f32.mrf.mxu1 }
 0x2e7   :  { %1136 = vrot.lane.b32.xlu1 %v4029_v48, %s4474_s25 }
 0x2e8   :  { %v1039_v53 = vpop.f32.mrf.mxu1 }
 0x2e9   :  { %1134 = vrot.lane.b32.xlu0 %v1039_v53, %s4474_s25 }
 0x2ea   :  { %v4032_v60 = vpop.f32.mrf.mxu1 }
 0x2ec   :  { %v1049_v47 = vpop.f32.mrf.mxu1 }
 0x2ed   :  { %1138 = vrot.lane.b32.xlu1 %v1049_v47, %s4474_s25  ;;  %1204 = vrot.lane.b32.xlu0 %v3695_v41, %s4474_s25 }
 0x2ee   :  { %v4035_v33 = vpop.f32.mrf.mxu1 }
 0x2f0   :  { %v1059_v37 = vpop.f32.mrf.mxu1 }
 0x2f1   :  { %1142 = vrot.lane.b32.xlu1 %v1059_v37, %s4474_s25  ;;  %1140 = vrot.lane.b32.xlu0 %v4032_v60, %s4474_s25 }
 0x2f2   :  { %v4038_v38 = vpop.f32.mrf.mxu1 }
 0x2f4   :  { %v1069_v30 = vpop.f32.mrf.mxu1 }
 0x2f5   :  { %1146 = vrot.lane.b32.xlu1 %v1069_v30, %s4474_s25  ;;  %1144 = vrot.lane.b32.xlu0 %v4035_v33, %s4474_s25 }
 0x2f6   :  { %v4041_v48 = vpop.f32.mrf.mxu1 }
 0x2f8   :  { %v1079_v53 = vpop.f32.mrf.mxu1 }
 0x2f9   :  { %1150 = vrot.lane.b32.xlu1 %v1079_v53, %s4474_s25  ;;  %1148 = vrot.lane.b32.xlu0 %v4038_v38, %s4474_s25  ;;  %v1335_v38 = vmul.f32 %v4860_v0, %v4673_v44  ;;  %v1337_v53 = vmul.f32 %v4872_v62, %v4683_v51  ;;  %v1339_v44 = vmul.f32 %v4886_v28, %v4691_v57 }
 0x2fa   :  { %v4044_v47 = vpop.f32.mrf.mxu1  ;;  %v1341_v51 = vmul.f32 %v4900_v22, %v4699_v63  ;;  %v1343_v57 = vmul.f32 %v4910_v24, %v4707_v3  ;;  %v1345_v63 = vmul.f32 %v4918_v36, %v4715_v5  ;;  %v1347_v3 = vmul.f32 %v4926_v32, %v4723_v7 }
 0x2fc   :  { %v1089_v41 = vpop.f32.mrf.mxu1 }
 0x2fd   :  { %1154 = vrot.lane.b32.xlu1 %v1089_v41, %s4474_s25  ;;  %1152 = vrot.lane.b32.xlu0 %v4041_v48, %s4474_s25  ;;  %v1336_v48 = vmul.f32 %v4869_v58, %v4675_v46  ;;  %v1340_v46 = vmul.f32 %v4896_v52, %v4689_v55  ;;  %v1344_v55 = vmul.f32 %v4916_v26, %v4705_v2 }
 0x2fe   :  { %v4047_v37 = vpop.f32.mrf.mxu1  ;;  %v1348_v2 = vmul.f32 %v4932_v40, %v4721_v6 }
 0x300   :  { %v1099_v60 = vpop.f32.mrf.mxu1 }
 0x301   :  { %1158 = vrot.lane.b32.xlu1 %v1099_v60, %s4474_s25  ;;  %1156 = vrot.lane.b32.xlu0 %v4044_v47, %s4474_s25  ;;  %v1338_v47 = vmul.f32 %v4883_v59, %v4681_v49  ;;  %v1342_v49 = vmul.f32 %v4907_v34, %v4697_v61  ;;  %v1346_v61 = vmul.f32 %v4924_v1, %v4713_v4 }
 0x302   :  { %v4050_v30 = vpop.f32.mrf.mxu1 }
 0x304   :  { %v1109_v33 = vpop.f32.mrf.mxu1 }
 0x305   :  { %1160 = vrot.lane.b32.xlu0 %v4047_v37, %s4474_s25  ;;  %1162 = vrot.lane.b32.xlu1 %v1109_v33, %s4474_s25 }
 0x309   :  { %1164 = vrot.lane.b32.xlu0 %v4050_v30, %s4474_s25  ;;  %1367 = vrot.lane.b32.xlu1 %v1335_v38, %s4475_s28 }
 0x30d   :  { %1369 = vrot.lane.b32.xlu0 %v1336_v48, %s4475_s28  ;;  %1371 = vrot.lane.b32.xlu1 %v1337_v53, %s4475_s28 }
 0x311   :  { %1373 = vrot.lane.b32.xlu0 %v1338_v47, %s4475_s28  ;;  %1375 = vrot.lane.b32.xlu1 %v1339_v44, %s4475_s28 }
 0x315   :  { %1377 = vrot.lane.b32.xlu0 %v1340_v46, %s4475_s28  ;;  %1379 = vrot.lane.b32.xlu1 %v1341_v51, %s4475_s28 }
 0x319   :  { %1381 = vrot.lane.b32.xlu0 %v1342_v49, %s4475_s28  ;;  %1383 = vrot.lane.b32.xlu1 %v1343_v57, %s4475_s28 }
 0x31d   :  { %1385 = vrot.lane.b32.xlu0 %v1344_v55, %s4475_s28  ;;  %1387 = vrot.lane.b32.xlu1 %v1345_v63, %s4475_s28 }
 0x321   :  { %1389 = vrot.lane.b32.xlu0 %v1346_v61, %s4475_s28  ;;  %1391 = vrot.lane.b32.xlu1 %v1347_v3, %s4475_s28 }
 0x325   :  { %1393 = vrot.lane.b32.xlu0 %v1348_v2, %s4475_s28 }
 0x359   :  { %v1137_v5 = vpop.permute.xlu1 %1136 }
 0x35a   :  { %v1183_v37 = vadd.f32 %v1137_v5, %v4741_v12 }
 0x35b   :  { %v1135_v41 = vpop.permute.xlu0 %1134 }
 0x35c   :  { %v1182_v60 = vadd.f32 %v1135_v41, %v4737_v10 }
 0x35f   :  { %v1139_v30 = vpop.permute.xlu1 %1138  ;;  %v5042_v4 = vpop.permute.xlu0 %1204 }
 0x360   :  { %v1184_v7 = vadd.f32 %v1139_v30, %v4745_v14  ;;  %v1208_v33 = vadd.f32 %v5042_v4, %v1183_v37  ;;  %v1207_v38 = vadd.f32 %v5042_v4, %v1182_v60 }
 0x362   :  { %4248 = vtanh.f32 %v1208_v33  ;;  %v1209_v53 = vadd.f32 %v5042_v4, %v1184_v7 }
 0x363   :  { %v1143_v48 = vpop.permute.xlu1 %1142  ;;  %v1141_v6 = vpop.permute.xlu0 %1140  ;;  %4250 = vtanh.f32 %v1207_v38 }
 0x364   :  { %v1186_v47 = vadd.f32 %v1143_v48, %v4767_v23  ;;  %v1185_v12 = vadd.f32 %v1141_v6, %v4761_v20  ;;  %4252 = vtanh.f32 %v1209_v53 }
 0x366   :  { %v1210_v10 = vadd.f32 %v5042_v4, %v1185_v12  ;;  %v1211_v44 = vadd.f32 %v5042_v4, %v1186_v47 }
 0x367   :  { %v1147_v46 = vpop.permute.xlu1 %1146  ;;  %v1145_v14 = vpop.permute.xlu0 %1144 }
 0x368   :  { %v1188_v51 = vadd.f32 %v1147_v46, %v4783_v31  ;;  %v1187_v49 = vadd.f32 %v1145_v14, %v4775_v27  ;;  %4254 = vtanh.f32 %v1210_v10 }
 0x369   :  { %4256 = vtanh.f32 %v1211_v44 }
 0x36a   :  { %v1212_v57 = vadd.f32 %v5042_v4, %v1187_v49  ;;  %v1213_v55 = vadd.f32 %v5042_v4, %v1188_v51 }
 0x36b   :  { %v1151_v23 = vpop.permute.xlu1 %1150  ;;  %v1149_v63 = vpop.permute.xlu0 %1148 }
 0x36c   :  { %v1190_v20 = vadd.f32 %v1151_v23, %v4799_v39  ;;  %v1189_v61 = vadd.f32 %v1149_v63, %v4791_v35  ;;  %4258 = vtanh.f32 %v1212_v57 }
 0x36d   :  { %4260 = vtanh.f32 %v1213_v55 }
 0x36e   :  { %v1214_v3 = vadd.f32 %v5042_v4, %v1189_v61  ;;  %v1215_v31 = vadd.f32 %v5042_v4, %v1190_v20  ;;  %v3698_v20 = vld [vmem:[%s6239_s5 + $0x30] sm:$0xff] }
 0x36f   :  { %v4249_v2 = vpop.eup %4248  ;;  %v1155_v27 = vpop.permute.xlu1 %1154 }
 0x370   :  { %v1153_v5 = vpop.permute.xlu0 %1152  ;;  %v4251_v41 = vpop.eup %4250  ;;  %v1192_v37 = vadd.f32 %v1155_v27, %v4815_v50  ;;  %1273 = vrot.lane.b32.xlu0 %v4249_v2, %s4473_s24  ;;  %4262 = vtanh.f32 %v1214_v3  ;;  %v3697_v3 = vld [vmem:[%s6239_s5 + $0x28] sm:$0xff] }
 0x371   :  { %v1191_v60 = vadd.f32 %v1153_v5, %v4807_v43  ;;  %1271 = vrot.lane.b32.xlu1 %v4251_v41, %s4473_s24  ;;  %4264 = vtanh.f32 %v1215_v31  ;;  %v4253_v33 = vpop.eup %4252  ;;  %v3696_v31 = vld [vmem:[%s6239_s5 + $0x20] sm:$0xff]  ;;  %v1349_v5 = vmul.f32 %v4934_v15, %v4731_v9  ;;  %v1350_v41 = vmul.f32 %v4940_v54, %v4729_v8 }
 0x372   :  { %v1217_v39 = vadd.f32 %v5042_v4, %v1192_v37  ;;  %v1240_v8 = vsub.f32 1.0, %v4869_v58 }
 0x373   :  { %v1216_v35 = vadd.f32 %v5042_v4, %v1191_v60  ;;  %v1159_v30 = vpop.permute.xlu1 %1158 }
 0x374   :  { %v1157_v7 = vpop.permute.xlu0 %1156  ;;  %v1194_v38 = vadd.f32 %v1159_v30, %v4836_v18 }
 0x375   :  { %v1193_v48 = vadd.f32 %v1157_v7, %v4823_v56  ;;  %4266 = vtanh.f32 %v1216_v35  ;;  %1275 = vrot.lane.b32.xlu1 %v4253_v33, %s4473_s24  ;;  %v4255_v43 = vpop.eup %4254 }
 0x376   :  { %4268 = vtanh.f32 %v1217_v39  ;;  %v1219_v6 = vadd.f32 %v5042_v4, %v1194_v38  ;;  %1277 = vrot.lane.b32.xlu0 %v4255_v43, %s4473_s24  ;;  %v4257_v12 = vpop.eup %4256 }
 0x377   :  { %v1218_v50 = vadd.f32 %v5042_v4, %v1193_v48  ;;  %v1163_v53 = vpop.permute.xlu1 %1162 }
 0x378   :  { %v1161_v47 = vpop.permute.xlu0 %1160  ;;  %v1196_v10 = vadd.f32 %v1163_v53, %v4862_v19 }
 0x379   :  { %v1195_v18 = vadd.f32 %v1161_v47, %v4848_v16  ;;  %4270 = vtanh.f32 %v1218_v50  ;;  %1279 = vrot.lane.b32.xlu1 %v4257_v12, %s4473_s24  ;;  %v4259_v56 = vpop.eup %4258  ;;  %v1239_v47 = vsub.f32 1.0, %v4860_v0  ;;  %v1242_v0 = vsub.f32 1.0, %v4883_v59 }
 0x37a   :  { %4272 = vtanh.f32 %v1219_v6  ;;  %v1221_v46 = vadd.f32 %v5042_v4, %v1196_v10  ;;  %1281 = vrot.lane.b32.xlu0 %v4259_v56, %s4473_s24  ;;  %v4261_v51 = vpop.eup %4260  ;;  %v1245_v59 = vsub.f32 1.0, %v4900_v22 }
 0x37b   :  { %v1220_v44 = vadd.f32 %v5042_v4, %v1195_v18  ;;  %v1368_v60 = vpop.permute.xlu1 %1367 }
 0x37c   :  { %v1165_v14 = vpop.permute.xlu0 %1164 }
 0x37d   :  { %v1197_v49 = vadd.f32 %v1165_v14, %v4888_v42  ;;  %4274 = vtanh.f32 %v1220_v44  ;;  %1283 = vrot.lane.b32.xlu1 %v4261_v51, %s4473_s24  ;;  %v4263_v19 = vpop.eup %4262  ;;  %v1241_v14 = vsub.f32 1.0, %v4872_v62 }
 0x37e   :  { %4276 = vtanh.f32 %v1221_v46  ;;  %1285 = vrot.lane.b32.xlu0 %v4263_v19, %s4473_s24  ;;  %v4265_v57 = vpop.eup %4264 }
 0x37f   :  { %v1222_v16 = vadd.f32 %v5042_v4, %v1197_v49  ;;  %v3699_v4 = vld [vmem:[%s6239_s5 + $0x38] sm:$0xff]  ;;  %v1372_v39 = vpop.permute.xlu1 %1371 }
 0x380   :  { %4051 = vmatprep.subr.mxu0 %v3699_v4  ;;  %v1370_v37 = vpop.permute.xlu0 %1369 }
 0x381   :  { %4278 = vtanh.f32 %v1222_v16  ;;  %1287 = vrot.lane.b32.xlu1 %v4265_v57, %s4473_s24  ;;  %4052 = vmatpush3.msra.mxu0 %v3699_v4  ;;  %v1243_v57 = vsub.f32 1.0, %v4886_v28 }
 0x382   :  { %v4267_v55 = vpop.eup %4266  ;;  %4053 = vmatprep.subr.mxu0 %v3698_v20 }
 0x383   :  { %1289 = vrot.lane.b32.xlu0 %v4267_v55, %s4473_s24  ;;  %v4269_v23 = vpop.eup %4268  ;;  %4054 = vmatpush3.msra.mxu0 %v3698_v20  ;;  %v1376_v7 = vpop.permute.xlu1 %1375 }
 0x384   :  { %4055 = vmatprep.subr.mxu0 %v3697_v3  ;;  %v1374_v35 = vpop.permute.xlu0 %1373 }
 0x385   :  { %1291 = vrot.lane.b32.xlu1 %v4269_v23, %s4473_s24  ;;  %4056 = vmatpush3.msra.mxu0 %v3697_v3 }
 0x386   :  { %v4271_v42 = vpop.eup %4270  ;;  %4057 = vmatprep.subr.mxu0 %v3696_v31 }
 0x387   :  { %1293 = vrot.lane.b32.xlu0 %v4271_v42, %s4473_s24  ;;  %v4273_v63 = vpop.eup %4272  ;;  %4058 = vmatpush3.msra.mxu0 %v3696_v31  ;;  %v1380_v38 = vpop.permute.xlu1 %1379  ;;  %v1244_v42 = vsub.f32 1.0, %v4896_v52 }
 0x388   :  { %v1378_v30 = vpop.permute.xlu0 %1377 }
 0x389   :  { %1295 = vrot.lane.b32.xlu1 %v4273_v63, %s4473_s24 }
 0x38a   :  { %v4275_v61 = vpop.eup %4274 }
 0x38b   :  { %1297 = vrot.lane.b32.xlu0 %v4275_v61, %s4473_s24  ;;  %v4277_v2 = vpop.eup %4276  ;;  %v1384_v43 = vpop.permute.xlu1 %1383 }
 0x38c   :  { %v1382_v33 = vpop.permute.xlu0 %1381 }
 0x38d   :  { %1299 = vrot.lane.b32.xlu1 %v4277_v2, %s4473_s24  ;;  %v1246_v2 = vsub.f32 1.0, %v4907_v34 }
 0x38e   :  { %v4279_v27 = vpop.eup %4278 }
 0x38f   :  { %1301 = vrot.lane.b32.xlu0 %v4279_v27, %s4473_s24  ;;  %v1388_v50 = vpop.permute.xlu1 %1387 }
 0x390   :  { %v1386_v48 = vpop.permute.xlu0 %1385 }
 0x391   :  { %1395 = vrot.lane.b32.xlu1 %v1349_v5, %s4475_s28  ;;  %v1247_v5 = vsub.f32 1.0, %v4910_v24 }
 0x393   :  { %1397 = vrot.lane.b32.xlu0 %v1350_v41, %s4475_s28  ;;  %v5112_v53 = vpop.permute.xlu1 %1391 }
 0x394   :  { %v5108_v9 = vpop.permute.xlu0 %1389 }
 0x398   :  { %v5110_v6 = vpop.permute.xlu0 %1393 }
 0x3e2   :  { %v1274_v12 = vpop.permute.xlu0 %1273 }
 0x3e3   :  { %v1272_v10 = vpop.permute.xlu1 %1271  ;;  %v1320_v18 = vmul.f32 %v1274_v12, %v1240_v8 }
 0x3e4   :  { %v1319_v56 = vmul.f32 %v1272_v10, %v1239_v47  ;;  %v1251_v47 = vsub.f32 1.0, %v4926_v32  ;;  %v1252_v10 = vsub.f32 1.0, %v4932_v40  ;;  %v1254_v40 = vsub.f32 1.0, %v4940_v54 }
 0x3e5   :  { %v5116_v44 = vadd.f32 %v1370_v37, %v1320_v18 }
 0x3e6   :  { %v5118_v46 = vadd.f32 %v1368_v60, %v1319_v56  ;;  %v1248_v60 = vsub.f32 1.0, %v4916_v26 }
 0x3e7   :  { %v1276_v51 = vpop.permute.xlu1 %1275  ;;  %1454 = vrot.lane.b32.xlu0 %v5116_v44, %s4474_s25 }
 0x3e8   :  { %v1321_v49 = vmul.f32 %v1276_v51, %v1241_v14  ;;  %1452 = vrot.lane.b32.xlu1 %v5118_v46, %s4474_s25  ;;  %v1278_v58 = vpop.permute.xlu0 %1277 }
 0x3e9   :  { %v1322_v16 = vmul.f32 %v1278_v58, %v1242_v0 }
 0x3ea   :  { %v5126_v19 = vadd.f32 %v1372_v39, %v1321_v49 }
 0x3eb   :  { %v1280_v55 = vpop.permute.xlu1 %1279  ;;  %v5129_v23 = vadd.f32 %v1374_v35, %v1322_v16 }
 0x3ec   :  { %v1323_v62 = vmul.f32 %v1280_v55, %v1243_v57  ;;  %1456 = vrot.lane.b32.xlu1 %v5126_v19, %s4474_s25  ;;  %v1282_v63 = vpop.permute.xlu0 %1281 }
 0x3ed   :  { %v1324_v20 = vmul.f32 %v1282_v63, %v1244_v42  ;;  %1458 = vrot.lane.b32.xlu0 %v5129_v23, %s4474_s25 }
 0x3ee   :  { %v5134_v4 = vadd.f32 %v1376_v7, %v1323_v62 }
 0x3ef   :  { %v1284_v61 = vpop.permute.xlu1 %1283  ;;  %v5139_v28 = vadd.f32 %v1378_v30, %v1324_v20  ;;  %v1249_v30 = vsub.f32 1.0, %v4918_v36 }
 0x3f0   :  { %v1325_v3 = vmul.f32 %v1284_v61, %v1245_v59  ;;  %1460 = vrot.lane.b32.xlu1 %v5134_v4, %s4474_s25  ;;  %v1286_v31 = vpop.permute.xlu0 %1285 }
 0x3f1   :  { %v1326_v27 = vmul.f32 %v1286_v31, %v1246_v2  ;;  %1462 = vrot.lane.b32.xlu0 %v5139_v28, %s4474_s25 }
 0x3f2   :  { %v5144_v52 = vadd.f32 %v1380_v38, %v1325_v3  ;;  %v1250_v38 = vsub.f32 1.0, %v4924_v1 }
 0x3f3   :  { %v1288_v41 = vpop.permute.xlu1 %1287  ;;  %v5149_v22 = vadd.f32 %v1382_v33, %v1326_v27 }
 0x3f4   :  { %v1327_v37 = vmul.f32 %v1288_v41, %v1247_v5  ;;  %1464 = vrot.lane.b32.xlu1 %v5144_v52, %s4474_s25 }
 0x3f5   :  { %v1290_v35 = vpop.permute.xlu0 %1289  ;;  %1466 = vrot.lane.b32.xlu0 %v5149_v22, %s4474_s25 }
 0x3f6   :  { %v5154_v34 = vadd.f32 %v1384_v43, %v1327_v37  ;;  %v1328_v39 = vmul.f32 %v1290_v35, %v1248_v60  ;;  %v5264_v37 = vld [vmem:[%s6242_s7 + $0x1] ss:$0 sm:$0xff] }
 0x3f7   :  { %v1292_v7 = vpop.permute.xlu1 %1291 }
 0x3f8   :  { %v5159_v24 = vadd.f32 %v1386_v48, %v1328_v39  ;;  %v1329_v33 = vmul.f32 %v1292_v7, %v1249_v30  ;;  %1468 = vrot.lane.b32.xlu1 %v5154_v34, %s4474_s25 }
 0x3f9   :  { %v1294_v8 = vpop.permute.xlu0 %1293 }
 0x3fa   :  { %v5164_v26 = vadd.f32 %v1388_v50, %v1329_v33  ;;  %v1330_v43 = vmul.f32 %v1294_v8, %v1250_v38  ;;  %1470 = vrot.lane.b32.xlu0 %v5159_v24, %s4474_s25 }
 0x3fb   :  { %v1296_v12 = vpop.permute.xlu1 %1295 }
 0x3fc   :  { %v5170_v36 = vadd.f32 %v5108_v9, %v1330_v43  ;;  %v1331_v48 = vmul.f32 %v1296_v12, %v1251_v47  ;;  %1472 = vrot.lane.b32.xlu1 %v5164_v26, %s4474_s25  ;;  %v1253_v9 = vsub.f32 1.0, %v4934_v15 }
 0x3fd   :  { %v1298_v1 = vpop.permute.xlu0 %1297 }
 0x3fe   :  { %v5176_v50 = vadd.f32 %v5112_v53, %v1331_v48  ;;  %v1332_v18 = vmul.f32 %v1298_v1, %v1252_v10  ;;  %1474 = vrot.lane.b32.xlu0 %v5170_v36, %s4474_s25 }
 0x3ff   :  { %v1300_v56 = vpop.permute.xlu1 %1299 }
 0x400   :  { %v5181_v32 = vadd.f32 %v5110_v6, %v1332_v18  ;;  %1476 = vrot.lane.b32.xlu1 %v5176_v50, %s4474_s25  ;;  %v1333_v51 = vmul.f32 %v1300_v56, %v1253_v9 }
 0x401   :  { %v1302_v14 = vpop.permute.xlu0 %1301 }
 0x402   :  { %1478 = vrot.lane.b32.xlu0 %v5181_v32, %s4474_s25  ;;  %v1334_v49 = vmul.f32 %v1302_v14, %v1254_v40 }
 0x403   :  { %v1396_v53 = vpop.permute.xlu1 %1395 }
 0x404   :  { %v5189_v0 = vadd.f32 %v1396_v53, %v1333_v51  ;;  %v6310_v51 = vld [vmem:[#allocation11_spill] sm:$0xff] }
 0x405   :  { %v1398_v58 = vpop.permute.xlu0 %1397 }
 0x406   :  { %v5191_v16 = vadd.f32 %v1398_v58, %v1334_v49  ;;  %1480 = vrot.lane.b32.xlu1 %v5189_v0, %s4474_s25  ;;  %v6311_v58 = vld [vmem:[#allocation8_spill] sm:$0xff] }
 0x408   :  { %1482 = vrot.lane.b32.xlu0 %v5191_v16, %s4474_s25 }
 0x459   :  { %v5197_v15 = vpop.permute.xlu0 %1454 }
 0x45a   :  { %v5199_v6 = vpop.permute.xlu1 %1452 }
 0x45b   :  { %4059 = vmatprep.mubr.msk.f32.mxu0 %vm594_vm2, %v5199_v6 }
 0x45c   :  { %4060 = vmatmul.mubr.msk.f32.vlgmr.msra.gmra.mxu0 %vm594_vm2, %v5197_v15 }
 0x45e   :  { %v5205_v54 = vpop.permute.xlu1 %1456 }
 0x45f   :  { %4062 = vmatprep.mubr.msk.f32.mxu0 %vm594_vm2, %v5205_v54  ;;  %v5209_v57 = vpop.permute.xlu0 %1458 }
 0x460   :  { %4063 = vmatmul.mubr.msk.f32.gmra.mxu0 %vm594_vm2, %v5209_v57 }
 0x462   :  { %v5213_v55 = vpop.permute.xlu1 %1460 }
 0x463   :  { %4065 = vmatprep.mubr.msk.f32.mxu0 %vm594_vm2, %v5213_v55  ;;  %v5217_v62 = vpop.permute.xlu0 %1462 }
 0x464   :  { %4066 = vmatmul.mubr.msk.f32.gmra.mxu0 %vm594_vm2, %v5217_v62 }
 0x466   :  { %v5221_v42 = vpop.permute.xlu1 %1464 }
 0x467   :  { %4068 = vmatprep.mubr.msk.f32.mxu0 %vm594_vm2, %v5221_v42  ;;  %v5225_v63 = vpop.permute.xlu0 %1466 }
 0x468   :  { %4069 = vmatmul.mubr.msk.f32.gmra.mxu0 %vm594_vm2, %v5225_v63 }
 0x46a   :  { %v5229_v20 = vpop.permute.xlu1 %1468 }
 0x46b   :  { %4071 = vmatprep.mubr.msk.f32.mxu0 %vm594_vm2, %v5229_v20 }
 0x46c   :  { %v5233_v59 = vpop.permute.xlu0 %1470 }
 0x46d   :  { %4072 = vmatmul.mubr.msk.f32.gmra.mxu0 %vm594_vm2, %v5233_v59 }
 0x46e   :  { %v5237_v61 = vpop.permute.xlu1 %1472 }
 0x46f   :  { %4074 = vmatprep.mubr.msk.f32.mxu0 %vm594_vm2, %v5237_v61 }
 0x470   :  { %v5241_v3 = vpop.permute.xlu0 %1474 }
 0x471   :  { %4075 = vmatmul.mubr.msk.f32.gmra.mxu0 %vm594_vm2, %v5241_v3 }
 0x472   :  { %v5245_v2 = vpop.permute.xlu1 %1476 }
 0x473   :  { %4077 = vmatprep.mubr.msk.f32.mxu0 %vm594_vm2, %v5245_v2 }
 0x474   :  { %v5249_v31 = vpop.permute.xlu0 %1478 }
 0x475   :  { %4078 = vmatmul.mubr.msk.f32.gmra.mxu0 %vm594_vm2, %v5249_v31 }
 0x478   :  { %v5253_v27 = vpop.permute.xlu1 %1480 }
 0x479   :  { %6308 = vst [vmem:[#allocation28_spill] sm:$0xff] %v5253_v27  ;;  %4080 = vmatprep.mubr.msk.f32.mxu0 %vm594_vm2, %v5253_v27  ;;  %v3717_v27 = vld [vmem:[%s6241_s6 + $0x20] sm:$0xff] }
 0x47a   :  { %v5257_v5 = vpop.permute.xlu0 %1482 }
 0x47b   :  { %6309 = vst [vmem:[#allocation29_spill] sm:$0xff] %v5257_v5  ;;  %4081 = vmatmul.mubr.msk.f32.gmra.mxu0 %vm594_vm2, %v5257_v5 }
 0x51c   :  { %v4061_v41 = vpop.f32.mrf.mxu0 }
 0x51d   :  { %v1662_v60 = vadd.f32 %v4061_v41, %v4743_v13 }
 0x51e   :  { %v1582_v35 = vpop.f32.mrf.mxu0 }
 0x51f   :  { %v1683_v39 = vadd.f32 %v5264_v37, %v1662_v60  ;;  %v1661_v30 = vadd.f32 %v1582_v35, %v4739_v11 }
 0x520   :  { %v4064_v33 = vpop.f32.mrf.mxu0 }
 0x521   :  { %4280 = vtanh.f32 %v1683_v39  ;;  %v1682_v7 = vadd.f32 %v5264_v37, %v1661_v30  ;;  %v1664_v38 = vadd.f32 %v4064_v33, %v4763_v21  ;;  %v6312_v30 = vld [vmem:[#allocation17_spill] sm:$0xff] }
 0x522   :  { %v1592_v8 = vpop.f32.mrf.mxu0 }
 0x523   :  { %4282 = vtanh.f32 %v1682_v7  ;;  %v1685_v43 = vadd.f32 %v5264_v37, %v1664_v38  ;;  %v1663_v47 = vadd.f32 %v1592_v8, %v4753_v17 }
 0x524   :  { %v4067_v12 = vpop.f32.mrf.mxu0 }
 0x525   :  { %4284 = vtanh.f32 %v1685_v43  ;;  %v1684_v48 = vadd.f32 %v5264_v37, %v1663_v47  ;;  %v1666_v10 = vadd.f32 %v4067_v12, %v4779_v29  ;;  %v6313_v43 = vld [vmem:[#allocation14_spill] sm:$0xff] }
 0x526   :  { %v1602_v1 = vpop.f32.mrf.mxu0 }
 0x527   :  { %4286 = vtanh.f32 %v1684_v48  ;;  %v1687_v18 = vadd.f32 %v5264_v37, %v1666_v10  ;;  %v1665_v56 = vadd.f32 %v1602_v1, %v4771_v25  ;;  %v6314_v10 = vld [vmem:[#allocation23_spill] sm:$0xff] }
 0x528   :  { %v4070_v9 = vpop.f32.mrf.mxu0 }
 0x529   :  { %4288 = vtanh.f32 %v1687_v18  ;;  %v1686_v14 = vadd.f32 %v5264_v37, %v1665_v56  ;;  %v1668_v40 = vadd.f32 %v4070_v9, %v6310_v51 }
 0x52a   :  { %v1612_v53 = vpop.f32.mrf.mxu0 }
 0x52b   :  { %4290 = vtanh.f32 %v1686_v14  ;;  %v1689_v49 = vadd.f32 %v5264_v37, %v1668_v40  ;;  %v1667_v41 = vadd.f32 %v1612_v53, %v6311_v58  ;;  %v6315_v14 = vld [vmem:[#allocation20_spill] sm:$0xff] }
 0x52d   :  { %v4073_v60 = vpop.f32.mrf.mxu0  ;;  %4292 = vtanh.f32 %v1689_v49  ;;  %v1688_v39 = vadd.f32 %v5264_v37, %v1667_v41 }
 0x52e   :  { %v5281_v35 = vpop.eup %4280  ;;  %v1670_v7 = vadd.f32 %v4073_v60, %v6312_v30  ;;  %v6316_v60 = vld [vmem:[#allocation25_spill] sm:$0xff] }
 0x52f   :  { %1732 = vrot.lane.b32.xlu0 %v5281_v35, %s4474_s25  ;;  %v1622_v33 = vpop.f32.mrf.mxu0  ;;  %4294 = vtanh.f32 %v1688_v39 }
 0x530   :  { %v5287_v38 = vpop.eup %4282  ;;  %v1691_v8 = vadd.f32 %v5264_v37, %v1670_v7  ;;  %v1669_v47 = vadd.f32 %v1622_v33, %v6313_v43 }
 0x531   :  { %v4076_v12 = vpop.f32.mrf.mxu0  ;;  %1730 = vrot.lane.b32.xlu1 %v5287_v38, %s4474_s25 }
 0x532   :  { %4296 = vtanh.f32 %v1691_v8  ;;  %v1690_v48 = vadd.f32 %v5264_v37, %v1669_v47  ;;  %v1672_v1 = vadd.f32 %v4076_v12, %v6314_v10  ;;  %v5295_v18 = vpop.eup %4284  ;;  %v6317_v47 = vld [vmem:[#allocation24_spill] sm:$0xff] }
 0x533   :  { %v1632_v56 = vpop.f32.mrf.mxu0  ;;  %1736 = vrot.lane.b32.xlu0 %v5295_v18, %s4474_s25 }
 0x534   :  { %4298 = vtanh.f32 %v1690_v48  ;;  %v1693_v9 = vadd.f32 %v5264_v37, %v1672_v1  ;;  %v1671_v40 = vadd.f32 %v1632_v56, %v6315_v14  ;;  %v5301_v53 = vpop.eup %4286 }
 0x535   :  { %v4079_v49 = vpop.f32.mrf.mxu0  ;;  %1734 = vrot.lane.b32.xlu1 %v5301_v53, %s4474_s25 }
 0x536   :  { %4300 = vtanh.f32 %v1693_v9  ;;  %v1692_v41 = vadd.f32 %v5264_v37, %v1671_v40  ;;  %v1674_v39 = vadd.f32 %v4079_v49, %v6316_v60  ;;  %v5307_v7 = vpop.eup %4288 }
 0x537   :  { %v1642_v33 = vpop.f32.mrf.mxu0  ;;  %1740 = vrot.lane.b32.xlu0 %v5307_v7, %s4474_s25 }
 0x538   :  { %4302 = vtanh.f32 %v1692_v41  ;;  %v1695_v8 = vadd.f32 %v5264_v37, %v1674_v39  ;;  %v1673_v12 = vadd.f32 %v1642_v33, %v6317_v47  ;;  %v5313_v48 = vpop.eup %4290  ;;  %v6318_v33 = vld [vmem:[#allocation26_spill] sm:$0xff] }
 0x539   :  { %1738 = vrot.lane.b32.xlu1 %v5313_v48, %s4474_s25 }
 0x53a   :  { %4304 = vtanh.f32 %v1695_v8  ;;  %v1694_v1 = vadd.f32 %v5264_v37, %v1673_v12  ;;  %v5318_v56 = vpop.eup %4292 }
 0x53b   :  { %v4082_v9 = vpop.f32.mrf.mxu0  ;;  %1744 = vrot.lane.b32.xlu0 %v5318_v56, %s4474_s25 }
 0x53c   :  { %4306 = vtanh.f32 %v1694_v1  ;;  %v1676_v40 = vadd.f32 %v4082_v9, %v4976_v45  ;;  %v5323_v49 = vpop.eup %4294 }
 0x53d   :  { %v1652_v41 = vpop.f32.mrf.mxu0  ;;  %1742 = vrot.lane.b32.xlu1 %v5323_v49, %s4474_s25 }
 0x53e   :  { %v1697_v39 = vadd.f32 %v5264_v37, %v1676_v40  ;;  %v1675_v8 = vadd.f32 %v1652_v41, %v6318_v33 }
 0x53f   :  { %v5329_v12 = vpop.eup %4296 }
 0x540   :  { %4308 = vtanh.f32 %v1697_v39  ;;  %v1696_v1 = vadd.f32 %v5264_v37, %v1675_v8  ;;  %1748 = vrot.lane.b32.xlu0 %v5329_v12, %s4474_s25  ;;  %v3720_v37 = vld [vmem:[%s6241_s6 + $0x38] sm:$0xff]  ;;  %v3719_v39 = vld [vmem:[%s6241_s6 + $0x30] sm:$0xff] }
 0x541   :  { %v5334_v9 = vpop.eup %4298  ;;  %4083 = vmatprep.subr.mxu1 %v3720_v37 }
 0x542   :  { %4310 = vtanh.f32 %v1696_v1  ;;  %1746 = vrot.lane.b32.xlu1 %v5334_v9, %s4474_s25  ;;  %4084 = vmatpush3.msra.mxu1 %v3720_v37  ;;  %v3718_v1 = vld [vmem:[%s6241_s6 + $0x28] sm:$0xff] }
 0x543   :  { %v5338_v40 = vpop.eup %4300  ;;  %4085 = vmatprep.subr.mxu1 %v3719_v39 }
 0x544   :  { %1752 = vrot.lane.b32.xlu0 %v5338_v40, %s4474_s25  ;;  %4086 = vmatpush3.msra.mxu1 %v3719_v39 }
 0x545   :  { %v5342_v41 = vpop.eup %4302  ;;  %4087 = vmatprep.subr.mxu1 %v3718_v1 }
 0x546   :  { %1750 = vrot.lane.b32.xlu1 %v5342_v41, %s4474_s25  ;;  %4088 = vmatpush3.msra.mxu1 %v3718_v1 }
 0x547   :  { %v5352_v8 = vpop.eup %4304  ;;  %4089 = vmatprep.subr.mxu1 %v3717_v27 }
 0x548   :  { %1756 = vrot.lane.b32.xlu0 %v5352_v8, %s4474_s25  ;;  %4090 = vmatpush3.msra.mxu1 %v3717_v27 }
 0x549   :  { %v5359_v5 = vpop.eup %4306 }
 0x54a   :  { %1754 = vrot.lane.b32.xlu1 %v5359_v5, %s4474_s25 }
 0x54d   :  { %v5366_v37 = vpop.eup %4308 }
 0x54e   :  { %6319 = vst [vmem:[#allocation11_spill] sm:$0xff] %v5366_v37  ;;  %1760 = vrot.lane.b32.xlu0 %v5366_v37, %s4474_s25 }
 0x54f   :  { %v5370_v45 = vpop.eup %4310 }
 0x550   :  { %6320 = vst [vmem:[#allocation8_spill] sm:$0xff] %v5370_v45  ;;  %1758 = vrot.lane.b32.xlu1 %v5370_v45, %s4474_s25 }
 0x5a1   :  { %v1733_v39 = vpop.permute.xlu0 %1732 }
 0x5a2   :  { %v1779_v33 = vmul.f32 %v1733_v39, %v5116_v44 }
 0x5a3   :  { %v1731_v60 = vpop.permute.xlu1 %1730 }
 0x5a4   :  { %v1778_v47 = vmul.f32 %v1731_v60, %v5118_v46  ;;  %1817 = vrot.lane.b32.xlu0 %v1779_v33, %s4474_s25 }
 0x5a5   :  { %v1737_v1 = vpop.permute.xlu0 %1736 }
 0x5a6   :  { %1815 = vrot.lane.b32.xlu1 %v1778_v47, %s4474_s25  ;;  %v1781_v27 = vmul.f32 %v1737_v1, %v5129_v23 }
 0x5a7   :  { %v1735_v10 = vpop.permute.xlu1 %1734 }
 0x5a8   :  { %v1780_v37 = vmul.f32 %v1735_v10, %v5126_v19  ;;  %1821 = vrot.lane.b32.xlu0 %v1781_v27, %s4474_s25 }
 0x5a9   :  { %v1741_v14 = vpop.permute.xlu0 %1740 }
 0x5aa   :  { %v1783_v45 = vmul.f32 %v1741_v14, %v5139_v28  ;;  %1819 = vrot.lane.b32.xlu1 %v1780_v37, %s4474_s25 }
 0x5ab   :  { %v1739_v44 = vpop.permute.xlu1 %1738 }
 0x5ac   :  { %v1782_v46 = vmul.f32 %v1739_v44, %v5134_v4  ;;  %1825 = vrot.lane.b32.xlu0 %v1783_v45, %s4474_s25 }
 0x5ad   :  { %v1745_v60 = vpop.permute.xlu0 %1744 }
 0x5ae   :  { %v1785_v47 = vmul.f32 %v1745_v60, %v5149_v22  ;;  %1823 = vrot.lane.b32.xlu1 %v1782_v46, %s4474_s25 }
 0x5af   :  { %v1743_v23 = vpop.permute.xlu1 %1742 }
 0x5b0   :  { %v1784_v19 = vmul.f32 %v1743_v23, %v5144_v52  ;;  %1829 = vrot.lane.b32.xlu0 %v1785_v47, %s4474_s25 }
 0x5b2   :  { %v1749_v10 = vpop.permute.xlu0 %1748  ;;  %1827 = vrot.lane.b32.xlu1 %v1784_v19, %s4474_s25 }
 0x5b3   :  { %v1787_v28 = vmul.f32 %v1749_v10, %v5159_v24 }
 0x5b4   :  { %v1747_v14 = vpop.permute.xlu1 %1746 }
 0x5b5   :  { %v1786_v4 = vmul.f32 %v1747_v14, %v5154_v34  ;;  %1833 = vrot.lane.b32.xlu0 %v1787_v28, %s4474_s25 }
 0x5b6   :  { %v1753_v45 = vpop.permute.xlu0 %1752 }
 0x5b7   :  { %v1789_v22 = vmul.f32 %v1753_v45, %v5170_v36  ;;  %1831 = vrot.lane.b32.xlu1 %v1786_v4, %s4474_s25 }
 0x5b8   :  { %v1751_v33 = vpop.permute.xlu1 %1750 }
 0x5b9   :  { %v1788_v52 = vmul.f32 %v1751_v33, %v5164_v26  ;;  %1837 = vrot.lane.b32.xlu0 %v1789_v22, %s4474_s25 }
 0x5ba   :  { %v1757_v37 = vpop.permute.xlu0 %1756 }
 0x5bb   :  { %v1791_v24 = vmul.f32 %v1757_v37, %v5181_v32  ;;  %1835 = vrot.lane.b32.xlu1 %v1788_v52, %s4474_s25  ;;  %v3737_v37 = vld [vmem:[%s6243_s8 + $0x1] ss:$0 sm:$0xff] }
 0x5bc   :  { %v1755_v39 = vpop.permute.xlu1 %1754 }
 0x5bd   :  { %v1790_v34 = vmul.f32 %v1755_v39, %v5176_v50  ;;  %1841 = vrot.lane.b32.xlu0 %v1791_v24, %s4474_s25 }
 0x5bf   :  { %1839 = vrot.lane.b32.xlu1 %v1790_v34, %s4474_s25 }
 0x5c0   :  { %v1761_v36 = vpop.permute.xlu0 %1760 }
 0x5c1   :  { %v1793_v1 = vmul.f32 %v1761_v36, %v5191_v16 }
 0x5c2   :  { %v1759_v27 = vpop.permute.xlu1 %1758 }
 0x5c3   :  { %v1792_v26 = vmul.f32 %v1759_v27, %v5189_v0  ;;  %1845 = vrot.lane.b32.xlu0 %v1793_v1, %s4474_s25 }
 0x5c5   :  { %1843 = vrot.lane.b32.xlu1 %v1792_v26, %s4474_s25 }
 0x616   :  { %v1818_v32 = vpop.permute.xlu0 %1817 }
 0x618   :  { %v1816_v44 = vpop.permute.xlu1 %1815 }
 0x619   :  { %4091 = vmatprep.mubr.msk.f32.mxu1 %vm594_vm2, %v1816_v44 }
 0x61a   :  { %4092 = vmatmul.mubr.msk.f32.vlgmr.msra.gmra.mxu1 %vm594_vm2, %v1818_v32  ;;  %v1822_v50 = vpop.permute.xlu0 %1821 }
 0x61c   :  { %v1820_v46 = vpop.permute.xlu1 %1819 }
 0x61d   :  { %4094 = vmatprep.mubr.msk.f32.mxu1 %vm594_vm2, %v1820_v46 }
 0x61e   :  { %v1826_v60 = vpop.permute.xlu0 %1825  ;;  %4095 = vmatmul.mubr.msk.f32.gmra.mxu1 %vm594_vm2, %v1822_v50 }
 0x620   :  { %v1824_v16 = vpop.permute.xlu1 %1823 }
 0x621   :  { %4097 = vmatprep.mubr.msk.f32.mxu1 %vm594_vm2, %v1824_v16 }
 0x622   :  { %v1830_v0 = vpop.permute.xlu0 %1829  ;;  %4098 = vmatmul.mubr.msk.f32.gmra.mxu1 %vm594_vm2, %v1826_v60 }
 0x624   :  { %v1828_v47 = vpop.permute.xlu1 %1827 }
 0x625   :  { %4100 = vmatprep.mubr.msk.f32.mxu1 %vm594_vm2, %v1828_v47  ;;  %v2257_v47 = vmul.f32 %v5287_v38, %v5199_v6  ;;  %v2261_v6 = vmul.f32 %v5313_v48, %v5213_v55  ;;  %v2265_v55 = vmul.f32 %v5334_v9, %v5229_v20  ;;  %v2269_v20 = vmul.f32 %v5359_v5, %v5245_v2 }
 0x626   :  { %4101 = vmatmul.mubr.msk.f32.gmra.mxu1 %vm594_vm2, %v1830_v0 }
 0x627   :  { %v1834_v23 = vpop.permute.xlu0 %1833 }
 0x629   :  { %v1832_v19 = vpop.permute.xlu1 %1831 }
 0x62a   :  { %4103 = vmatprep.mubr.msk.f32.mxu1 %vm594_vm2, %v1832_v19  ;;  %v2259_v19 = vmul.f32 %v5301_v53, %v5205_v54  ;;  %v2263_v54 = vmul.f32 %v5323_v49, %v5221_v42  ;;  %v2267_v42 = vmul.f32 %v5342_v41, %v5237_v61 }
 0x62b   :  { %4104 = vmatmul.mubr.msk.f32.gmra.mxu1 %vm594_vm2, %v1834_v23  ;;  %v1838_v10 = vpop.permute.xlu0 %1837  ;;  %v2258_v23 = vmul.f32 %v5281_v35, %v5197_v15  ;;  %v2262_v15 = vmul.f32 %v5307_v7, %v5217_v62  ;;  %v2266_v62 = vmul.f32 %v5329_v12, %v5233_v59  ;;  %v2270_v59 = vmul.f32 %v5352_v8, %v5249_v31 }
 0x62d   :  { %v1836_v28 = vpop.permute.xlu1 %1835 }
 0x62e   :  { %4106 = vmatprep.mubr.msk.f32.mxu1 %vm594_vm2, %v1836_v28 }
 0x62f   :  { %4107 = vmatmul.mubr.msk.f32.gmra.mxu1 %vm594_vm2, %v1838_v10  ;;  %v1842_v4 = vpop.permute.xlu0 %1841  ;;  %v2260_v10 = vmul.f32 %v5295_v18, %v5209_v57  ;;  %v2264_v57 = vmul.f32 %v5318_v56, %v5225_v63  ;;  %v2268_v63 = vmul.f32 %v5338_v40, %v5241_v3 }
 0x631   :  { %v1840_v14 = vpop.permute.xlu1 %1839 }
 0x632   :  { %4109 = vmatprep.mubr.msk.f32.mxu1 %vm594_vm2, %v1840_v14 }
 0x633   :  { %4110 = vmatmul.mubr.msk.f32.gmra.mxu1 %vm594_vm2, %v1842_v4 }
 0x635   :  { %v1846_v22 = vpop.permute.xlu0 %1845 }
 0x637   :  { %v1844_v45 = vpop.permute.xlu1 %1843 }
 0x638   :  { %4112 = vmatprep.mubr.msk.f32.mxu1 %vm594_vm2, %v1844_v45 }
 0x639   :  { %4113 = vmatmul.mubr.msk.f32.gmra.mxu1 %vm594_vm2, %v1846_v22 }
 0x6da   :  { %v4093_v33 = vpop.f32.mrf.mxu1 }
 0x6db   :  { %2042 = vrot.lane.b32.xlu0 %v4093_v33, %s4474_s25 }
 0x6dc   :  { %v1945_v52 = vpop.f32.mrf.mxu1 }
 0x6dd   :  { %2040 = vrot.lane.b32.xlu1 %v1945_v52, %s4474_s25 }
 0x6de   :  { %v4096_v24 = vpop.f32.mrf.mxu1 }
 0x6e0   :  { %v1955_v39 = vpop.f32.mrf.mxu1 }
 0x6e1   :  { %2110 = vrot.lane.b32.xlu1 %v3737_v37, %s4474_s25  ;;  %2044 = vrot.lane.b32.xlu0 %v1955_v39, %s4474_s25 }
 0x6e2   :  { %v4099_v34 = vpop.f32.mrf.mxu1 }
 0x6e4   :  { %v1965_v36 = vpop.f32.mrf.mxu1 }
 0x6e5   :  { %2046 = vrot.lane.b32.xlu1 %v4096_v24, %s4474_s25  ;;  %2048 = vrot.lane.b32.xlu0 %v1965_v36, %s4474_s25 }
 0x6e6   :  { %v4102_v1 = vpop.f32.mrf.mxu1 }
 0x6e8   :  { %v1975_v27 = vpop.f32.mrf.mxu1 }
 0x6e9   :  { %2050 = vrot.lane.b32.xlu1 %v4099_v34, %s4474_s25  ;;  %2052 = vrot.lane.b32.xlu0 %v1975_v27, %s4474_s25 }
 0x6eb   :  { %v4105_v26 = vpop.f32.mrf.mxu1 }
 0x6ed   :  { %2054 = vrot.lane.b32.xlu1 %v4102_v1, %s4474_s25  ;;  %v1985_v32 = vpop.f32.mrf.mxu1 }
 0x6ee   :  { %2056 = vrot.lane.b32.xlu0 %v1985_v32, %s4474_s25 }
 0x6ef   :  { %v4108_v44 = vpop.f32.mrf.mxu1 }
 0x6f1   :  { %2058 = vrot.lane.b32.xlu1 %v4105_v26, %s4474_s25  ;;  %v1995_v50 = vpop.f32.mrf.mxu1 }
 0x6f2   :  { %2060 = vrot.lane.b32.xlu0 %v1995_v50, %s4474_s25 }
 0x6f3   :  { %v4111_v46 = vpop.f32.mrf.mxu1 }
 0x6f5   :  { %2062 = vrot.lane.b32.xlu1 %v4108_v44, %s4474_s25  ;;  %v2005_v60 = vpop.f32.mrf.mxu1 }
 0x6f6   :  { %2064 = vrot.lane.b32.xlu0 %v2005_v60, %s4474_s25 }
 0x6f9   :  { %2066 = vrot.lane.b32.xlu1 %v4111_v46, %s4474_s25  ;;  %v4114_v16 = vpop.f32.mrf.mxu1 }
 0x6fb   :  { %v2015_v0 = vpop.f32.mrf.mxu1 }
 0x6fc   :  { %2068 = vrot.lane.b32.xlu0 %v2015_v0, %s4474_s25 }
 0x6fd   :  { %2070 = vrot.lane.b32.xlu1 %v4114_v16, %s4474_s25 }
 0x700   :  { %2289 = vrot.lane.b32.xlu0 %v2257_v47, %s4475_s28  ;;  %v6321_v47 = vld [vmem:[#allocation20_spill] sm:$0xff] }
 0x701   :  { %2291 = vrot.lane.b32.xlu1 %v2258_v23, %s4475_s28 }
 0x704   :  { %2293 = vrot.lane.b32.xlu0 %v2259_v19, %s4475_s28 }
 0x705   :  { %2295 = vrot.lane.b32.xlu1 %v2260_v10, %s4475_s28 }
 0x708   :  { %2297 = vrot.lane.b32.xlu0 %v2261_v6, %s4475_s28  ;;  %v6322_v6 = vld [vmem:[#allocation23_spill] sm:$0xff] }
 0x709   :  { %2299 = vrot.lane.b32.xlu1 %v2262_v15, %s4475_s28 }
 0x70c   :  { %2301 = vrot.lane.b32.xlu0 %v2263_v54, %s4475_s28 }
 0x70d   :  { %2303 = vrot.lane.b32.xlu1 %v2264_v57, %s4475_s28 }
 0x710   :  { %2305 = vrot.lane.b32.xlu0 %v2265_v55, %s4475_s28 }
 0x711   :  { %2307 = vrot.lane.b32.xlu1 %v2266_v62, %s4475_s28 }
 0x714   :  { %2309 = vrot.lane.b32.xlu0 %v2267_v42, %s4475_s28 }
 0x715   :  { %2311 = vrot.lane.b32.xlu1 %v2268_v63, %s4475_s28 }
 0x718   :  { %2313 = vrot.lane.b32.xlu0 %v2269_v20, %s4475_s28 }
 0x719   :  { %2315 = vrot.lane.b32.xlu1 %v2270_v59, %s4475_s28  ;;  %v6324_v59 = vld [vmem:[#allocation25_spill] sm:$0xff] }
 0x74d   :  { %v2043_v28 = vpop.permute.xlu0 %2042 }
 0x74e   :  { %v2089_v61 = vadd.f32 %v2043_v28, %v4743_v13 }
 0x74f   :  { %v2041_v14 = vpop.permute.xlu1 %2040 }
 0x750   :  { %v2088_v3 = vadd.f32 %v2041_v14, %v4739_v11 }
 0x753   :  { %v5486_v4 = vpop.permute.xlu1 %2110  ;;  %v2045_v45 = vpop.permute.xlu0 %2044 }
 0x754   :  { %v2114_v22 = vadd.f32 %v5486_v4, %v2089_v61  ;;  %v2113_v2 = vadd.f32 %v5486_v4, %v2088_v3  ;;  %v2090_v33 = vadd.f32 %v2045_v45, %v4753_v17 }
 0x756   :  { %4312 = vtanh.f32 %v2114_v22  ;;  %v2115_v31 = vadd.f32 %v5486_v4, %v2090_v33  ;;  %v6325_v22 = vld [vmem:[#allocation26_spill] sm:$0xff] }
 0x757   :  { %v2047_v52 = vpop.permute.xlu1 %2046  ;;  %4314 = vtanh.f32 %v2113_v2  ;;  %v2049_v24 = vpop.permute.xlu0 %2048 }
 0x758   :  { %v2091_v37 = vadd.f32 %v2047_v52, %v4763_v21  ;;  %4316 = vtanh.f32 %v2115_v31  ;;  %v2092_v11 = vadd.f32 %v2049_v24, %v4771_v25  ;;  %v6326_v31 = vld [vmem:[#allocation27_spill] sm:$0xff] }
 0x75a   :  { %v2116_v13 = vadd.f32 %v5486_v4, %v2091_v37  ;;  %v2117_v39 = vadd.f32 %v5486_v4, %v2092_v11 }
 0x75b   :  { %v2051_v34 = vpop.permute.xlu1 %2050  ;;  %v2053_v17 = vpop.permute.xlu0 %2052 }
 0x75c   :  { %4318 = vtanh.f32 %v2116_v13  ;;  %v2093_v36 = vadd.f32 %v2051_v34, %v4779_v29  ;;  %v2094_v1 = vadd.f32 %v2053_v17, %v6311_v58 }
 0x75d   :  { %4320 = vtanh.f32 %v2117_v39 }
 0x75e   :  { %v2118_v27 = vadd.f32 %v5486_v4, %v2093_v36  ;;  %v2119_v21 = vadd.f32 %v5486_v4, %v2094_v1  ;;  %v3740_v1 = vld [vmem:[%s6239_s5 + $0x50] sm:$0xff] }
 0x75f   :  { %v2055_v26 = vpop.permute.xlu1 %2054 }
 0x760   :  { %4322 = vtanh.f32 %v2118_v27  ;;  %v2095_v25 = vadd.f32 %v2055_v26, %v6310_v51  ;;  %v2057_v32 = vpop.permute.xlu0 %2056  ;;  %v3738_v26 = vld [vmem:[%s6239_s5 + $0x40] sm:$0xff] }
 0x761   :  { %4324 = vtanh.f32 %v2119_v21  ;;  %v2096_v44 = vadd.f32 %v2057_v32, %v6313_v43  ;;  %v3739_v21 = vld [vmem:[%s6239_s5 + $0x48] sm:$0xff] }
 0x762   :  { %v2120_v50 = vadd.f32 %v5486_v4, %v2095_v25 }
 0x763   :  { %v4313_v46 = vpop.eup %4312  ;;  %v2121_v29 = vadd.f32 %v5486_v4, %v2096_v44  ;;  %v2059_v60 = vpop.permute.xlu1 %2058  ;;  %v6327_v44 = vld [vmem:[#allocation28_spill] sm:$0xff] }
 0x764   :  { %v4315_v16 = vpop.eup %4314  ;;  %4326 = vtanh.f32 %v2120_v50  ;;  %v2097_v58 = vadd.f32 %v2059_v60, %v6312_v30  ;;  %v2061_v0 = vpop.permute.xlu0 %2060  ;;  %2179 = vrot.lane.b32.xlu1 %v4313_v46, %s4473_s24  ;;  %v6323_v30 = vld [vmem:[#allocation24_spill] sm:$0xff]  ;;  %v6330_v60 = vld [vmem:[#allocation11_spill] sm:$0xff] }
 0x765   :  { %4328 = vtanh.f32 %v2121_v29  ;;  %v2098_v51 = vadd.f32 %v2061_v0, %v6321_v47  ;;  %2177 = vrot.lane.b32.xlu0 %v4315_v16, %s4473_s24  ;;  %v4317_v23 = vpop.eup %4316  ;;  %v6328_v50 = vld [vmem:[#allocation8_spill] sm:$0xff]  ;;  %v6329_v29 = vld [vmem:[#allocation29_spill] sm:$0xff] }
 0x766   :  { %v2122_v43 = vadd.f32 %v5486_v4, %v2097_v58  ;;  %v2271_v46 = vmul.f32 %v6328_v50, %v6327_v44  ;;  %v2272_v16 = vmul.f32 %v6330_v60, %v6329_v29 }
 0x767   :  { %v2123_v19 = vadd.f32 %v5486_v4, %v2098_v51  ;;  %v2063_v10 = vpop.permute.xlu1 %2062 }
 0x768   :  { %4330 = vtanh.f32 %v2122_v43  ;;  %v2099_v15 = vadd.f32 %v2063_v10, %v6322_v6  ;;  %v2065_v54 = vpop.permute.xlu0 %2064 }
 0x769   :  { %v4319_v57 = vpop.eup %4318  ;;  %4332 = vtanh.f32 %v2123_v19  ;;  %v2100_v55 = vadd.f32 %v2065_v54, %v6323_v30  ;;  %2181 = vrot.lane.b32.xlu0 %v4317_v23, %s4473_s24 }
 0x76a   :  { %v4321_v62 = vpop.eup %4320  ;;  %v2124_v42 = vadd.f32 %v5486_v4, %v2099_v15  ;;  %2183 = vrot.lane.b32.xlu1 %v4319_v57, %s4473_s24 }
 0x76b   :  { %v2125_v63 = vadd.f32 %v5486_v4, %v2100_v55  ;;  %v2067_v20 = vpop.permute.xlu1 %2066 }
 0x76c   :  { %4334 = vtanh.f32 %v2124_v42  ;;  %v2101_v28 = vadd.f32 %v2067_v20, %v6324_v59  ;;  %v2145_v42 = vsub.f32 1.0, %v5287_v38 }
 0x76d   :  { %v4323_v14 = vpop.eup %4322  ;;  %4336 = vtanh.f32 %v2125_v63  ;;  %2185 = vrot.lane.b32.xlu0 %v4321_v62, %s4473_s24  ;;  %v2146_v62 = vsub.f32 1.0, %v5281_v35 }
 0x76e   :  { %v4325_v61 = vpop.eup %4324  ;;  %v2126_v3 = vadd.f32 %v5486_v4, %v2101_v28  ;;  %v2069_v45 = vpop.permute.xlu0 %2068  ;;  %2187 = vrot.lane.b32.xlu1 %v4323_v14, %s4473_s24 }
 0x76f   :  { %v2102_v2 = vadd.f32 %v2069_v45, %v6325_v22  ;;  %v2071_v33 = vpop.permute.xlu1 %2070  ;;  %v2148_v22 = vsub.f32 1.0, %v5295_v18 }
 0x770   :  { %4338 = vtanh.f32 %v2126_v3  ;;  %v2103_v52 = vadd.f32 %v2071_v33, %v6326_v31  ;;  %v2147_v3 = vsub.f32 1.0, %v5301_v53  ;;  %v2149_v31 = vsub.f32 1.0, %v5313_v48 }
 0x771   :  { %v4327_v37 = vpop.eup %4326  ;;  %v2127_v24 = vadd.f32 %v5486_v4, %v2102_v2  ;;  %2189 = vrot.lane.b32.xlu0 %v4325_v61, %s4473_s24  ;;  %v2150_v53 = vsub.f32 1.0, %v5307_v7 }
 0x772   :  { %v4329_v11 = vpop.eup %4328  ;;  %v2128_v13 = vadd.f32 %v5486_v4, %v2103_v52  ;;  %2191 = vrot.lane.b32.xlu1 %v4327_v37, %s4473_s24  ;;  %v3741_v4 = vld [vmem:[%s6239_s5 + $0x58] sm:$0xff]  ;;  %v2290_v0 = vpop.permute.xlu0 %2289 }
 0x773   :  { %4340 = vtanh.f32 %v2127_v24  ;;  %4115 = vmatprep.subr.mxu0 %v3741_v4  ;;  %v2292_v58 = vpop.permute.xlu1 %2291 }
 0x774   :  { %4342 = vtanh.f32 %v2128_v13  ;;  %4116 = vmatpush3.msra.mxu0 %v3741_v4 }
 0x775   :  { %v4331_v39 = vpop.eup %4330  ;;  %2193 = vrot.lane.b32.xlu0 %v4329_v11, %s4473_s24  ;;  %4117 = vmatprep.subr.mxu0 %v3740_v1 }
 0x776   :  { %v4333_v34 = vpop.eup %4332  ;;  %2195 = vrot.lane.b32.xlu1 %v4331_v39, %s4473_s24  ;;  %4118 = vmatpush3.msra.mxu0 %v3740_v1  ;;  %v2294_v51 = vpop.permute.xlu0 %2293  ;;  %v2151_v39 = vsub.f32 1.0, %v5323_v49 }
 0x777   :  { %4119 = vmatprep.subr.mxu0 %v3739_v21  ;;  %v2296_v47 = vpop.permute.xlu1 %2295 }
 0x778   :  { %4120 = vmatpush3.msra.mxu0 %v3739_v21 }
 0x779   :  { %v4335_v36 = vpop.eup %4334  ;;  %2197 = vrot.lane.b32.xlu0 %v4333_v34, %s4473_s24  ;;  %4121 = vmatprep.subr.mxu0 %v3738_v26 }
 0x77a   :  { %v4337_v17 = vpop.eup %4336  ;;  %2199 = vrot.lane.b32.xlu1 %v4335_v36, %s4473_s24  ;;  %4122 = vmatpush3.msra.mxu0 %v3738_v26  ;;  %v2298_v43 = vpop.permute.xlu0 %2297  ;;  %v2152_v36 = vsub.f32 1.0, %v5318_v56  ;;  %v2154_v26 = vsub.f32 1.0, %v5329_v12 }
 0x77b   :  { %v2300_v23 = vpop.permute.xlu1 %2299 }
 0x77d   :  { %v4339_v27 = vpop.eup %4338  ;;  %2201 = vrot.lane.b32.xlu0 %v4337_v17, %s4473_s24 }
 0x77e   :  { %2203 = vrot.lane.b32.xlu1 %v4339_v27, %s4473_s24  ;;  %v2302_v10 = vpop.permute.xlu0 %2301  ;;  %v2153_v27 = vsub.f32 1.0, %v5334_v9 }
 0x77f   :  { %v2304_v19 = vpop.permute.xlu1 %2303 }
 0x780   :  { %v4341_v25 = vpop.eup %4340 }
 0x781   :  { %v4343_v32 = vpop.eup %4342  ;;  %2205 = vrot.lane.b32.xlu0 %v4341_v25, %s4473_s24 }
 0x782   :  { %2207 = vrot.lane.b32.xlu1 %v4343_v32, %s4473_s24  ;;  %v2306_v15 = vpop.permute.xlu0 %2305 }
 0x783   :  { %v2308_v6 = vpop.permute.xlu1 %2307 }
 0x785   :  { %2317 = vrot.lane.b32.xlu0 %v2271_v46, %s4475_s28  ;;  %v2155_v46 = vsub.f32 1.0, %v5342_v41 }
 0x786   :  { %2319 = vrot.lane.b32.xlu1 %v2272_v16, %s4475_s28  ;;  %v2310_v57 = vpop.permute.xlu0 %2309  ;;  %v2156_v16 = vsub.f32 1.0, %v5338_v40 }
 0x787   :  { %v2312_v54 = vpop.permute.xlu1 %2311 }
 0x78a   :  { %v5554_v55 = vpop.permute.xlu0 %2313 }
 0x78b   :  { %v5552_v30 = vpop.permute.xlu1 %2315 }
 0x7d6   :  { %v2180_v63 = vpop.permute.xlu1 %2179 }
 0x7d7   :  { %v2178_v20 = vpop.permute.xlu0 %2177  ;;  %v2226_v59 = vmul.f32 %v2180_v63, %v2146_v62 }
 0x7d8   :  { %v2225_v28 = vmul.f32 %v2178_v20, %v2145_v42 }
 0x7d9   :  { %v5558_v14 = vadd.f32 %v2292_v58, %v2226_v59 }
 0x7da   :  { %v5560_v61 = vadd.f32 %v2290_v0, %v2225_v28 }
 0x7db   :  { %v2182_v45 = vpop.permute.xlu0 %2181  ;;  %2376 = vrot.lane.b32.xlu1 %v5558_v14, %s4474_s25 }
 0x7dc   :  { %v2227_v2 = vmul.f32 %v2182_v45, %v2147_v3  ;;  %2374 = vrot.lane.b32.xlu0 %v5560_v61, %s4474_s25  ;;  %v2184_v35 = vpop.permute.xlu1 %2183 }
 0x7dd   :  { %v2228_v38 = vmul.f32 %v2184_v35, %v2148_v22 }
 0x7de   :  { %v5568_v33 = vadd.f32 %v2294_v51, %v2227_v2  ;;  %v2157_v51 = vsub.f32 1.0, %v5359_v5 }
 0x7df   :  { %v5571_v52 = vadd.f32 %v2296_v47, %v2228_v38  ;;  %v2186_v37 = vpop.permute.xlu0 %2185 }
 0x7e0   :  { %v2229_v24 = vmul.f32 %v2186_v37, %v2149_v31  ;;  %2378 = vrot.lane.b32.xlu0 %v5568_v33, %s4474_s25  ;;  %v2188_v18 = vpop.permute.xlu1 %2187 }
 0x7e1   :  { %v2230_v11 = vmul.f32 %v2188_v18, %v2150_v53  ;;  %2380 = vrot.lane.b32.xlu1 %v5571_v52, %s4474_s25 }
 0x7e2   :  { %v5578_v13 = vadd.f32 %v2298_v43, %v2229_v24  ;;  %v2158_v43 = vsub.f32 1.0, %v5352_v8  ;;  %v2159_v8 = vsub.f32 1.0, %v6328_v50 }
 0x7e3   :  { %v5581_v34 = vadd.f32 %v2300_v23, %v2230_v11  ;;  %v2190_v48 = vpop.permute.xlu0 %2189 }
 0x7e4   :  { %v2231_v17 = vmul.f32 %v2190_v48, %v2151_v39  ;;  %2382 = vrot.lane.b32.xlu0 %v5578_v13, %s4474_s25  ;;  %v2192_v7 = vpop.permute.xlu1 %2191  ;;  %v5705_v48 = vld [vmem:[%s6242_s7 + $0x2] ss:$0 sm:$0xff] }
 0x7e5   :  { %v2232_v4 = vmul.f32 %v2192_v7, %v2152_v36  ;;  %2384 = vrot.lane.b32.xlu1 %v5581_v34, %s4474_s25  ;;  %v6332_v36 = vld [vmem:[#allocation2_spill] sm:$0xff] }
 0x7e6   :  { %v5588_v1 = vadd.f32 %v2302_v10, %v2231_v17 }
 0x7e7   :  { %v5591_v21 = vadd.f32 %v2304_v19, %v2232_v4  ;;  %v2194_v49 = vpop.permute.xlu0 %2193 }
 0x7e8   :  { %v2233_v25 = vmul.f32 %v2194_v49, %v2153_v27  ;;  %2386 = vrot.lane.b32.xlu0 %v5588_v1, %s4474_s25  ;;  %v2196_v56 = vpop.permute.xlu1 %2195  ;;  %v6333_v27 = vld [vmem:[#allocation3_spill] sm:$0xff] }
 0x7e9   :  { %v2234_v32 = vmul.f32 %v2196_v56, %v2154_v26  ;;  %2388 = vrot.lane.b32.xlu1 %v5591_v21, %s4474_s25  ;;  %v6334_v56 = vld [vmem:[#allocation4_spill] sm:$0xff] }
 0x7ea   :  { %v5598_v44 = vadd.f32 %v2306_v15, %v2233_v25 }
 0x7eb   :  { %v5601_v29 = vadd.f32 %v2308_v6, %v2234_v32  ;;  %v2198_v9 = vpop.permute.xlu0 %2197 }
 0x7ec   :  { %v2235_v58 = vmul.f32 %v2198_v9, %v2155_v46  ;;  %2390 = vrot.lane.b32.xlu0 %v5598_v44, %s4474_s25  ;;  %v2200_v12 = vpop.permute.xlu1 %2199 }
 0x7ed   :  { %v2236_v0 = vmul.f32 %v2200_v12, %v2156_v16  ;;  %2392 = vrot.lane.b32.xlu1 %v5601_v29, %s4474_s25  ;;  %v6335_v16 = vld [vmem:[#allocation5_spill] sm:$0xff] }
 0x7ee   :  { %v5608_v47 = vadd.f32 %v2310_v57, %v2235_v58  ;;  %v2160_v57 = vsub.f32 1.0, %v6330_v60 }
 0x7ef   :  { %v5611_v23 = vadd.f32 %v2312_v54, %v2236_v0  ;;  %v2202_v41 = vpop.permute.xlu0 %2201 }
 0x7f0   :  { %v2237_v19 = vmul.f32 %v2202_v41, %v2157_v51  ;;  %2394 = vrot.lane.b32.xlu0 %v5608_v47, %s4474_s25  ;;  %v2204_v40 = vpop.permute.xlu1 %2203  ;;  %v6336_v51 = vld [vmem:[#allocation6_spill] sm:$0xff] }
 0x7f1   :  { %v2238_v10 = vmul.f32 %v2204_v40, %v2158_v43  ;;  %2396 = vrot.lane.b32.xlu1 %v5611_v23, %s4474_s25  ;;  %v6337_v40 = vld [vmem:[#allocation7_spill] sm:$0xff] }
 0x7f2   :  { %v5619_v6 = vadd.f32 %v5554_v55, %v2237_v19 }
 0x7f3   :  { %v5622_v15 = vadd.f32 %v5552_v30, %v2238_v10  ;;  %v2206_v5 = vpop.permute.xlu0 %2205 }
 0x7f4   :  { %2398 = vrot.lane.b32.xlu0 %v5619_v6, %s4474_s25  ;;  %v2208_v54 = vpop.permute.xlu1 %2207  ;;  %v2239_v62 = vmul.f32 %v2206_v5, %v2159_v8 }
 0x7f5   :  { %2400 = vrot.lane.b32.xlu1 %v5622_v15, %s4474_s25  ;;  %v2240_v42 = vmul.f32 %v2208_v54, %v2160_v57  ;;  %v6338_v54 = vld [vmem:[#allocation9_spill] sm:$0xff] }
 0x7f7   :  { %v2318_v63 = vpop.permute.xlu0 %2317 }
 0x7f8   :  { %v5630_v55 = vadd.f32 %v2318_v63, %v2239_v62  ;;  %v2320_v20 = vpop.permute.xlu1 %2319  ;;  %v6339_v63 = vld [vmem:[#allocation10_spill] sm:$0xff] }
 0x7f9   :  { %v5632_v30 = vadd.f32 %v2320_v20, %v2240_v42 }
 0x7fa   :  { %2402 = vrot.lane.b32.xlu0 %v5630_v55, %s4474_s25 }
 0x7fb   :  { %2404 = vrot.lane.b32.xlu1 %v5632_v30, %s4474_s25 }
 0x84d   :  { %v5638_v50 = vpop.permute.xlu1 %2376 }
 0x84e   :  { %v5640_v60 = vpop.permute.xlu0 %2374 }
 0x84f   :  { %4123 = vmatprep.mubr.msk.f32.mxu0 %vm594_vm2, %v5640_v60 }
 0x850   :  { %4124 = vmatmul.mubr.msk.f32.vlgmr.msra.gmra.mxu0 %vm594_vm2, %v5638_v50 }
 0x852   :  { %v5646_v59 = vpop.permute.xlu0 %2378 }
 0x853   :  { %4126 = vmatprep.mubr.msk.f32.mxu0 %vm594_vm2, %v5646_v59  ;;  %v5650_v28 = vpop.permute.xlu1 %2380 }
 0x854   :  { %4127 = vmatmul.mubr.msk.f32.gmra.mxu0 %vm594_vm2, %v5650_v28 }
 0x856   :  { %v5654_v3 = vpop.permute.xlu0 %2382 }
 0x857   :  { %4129 = vmatprep.mubr.msk.f32.mxu0 %vm594_vm2, %v5654_v3  ;;  %v5658_v45 = vpop.permute.xlu1 %2384 }
 0x858   :  { %4130 = vmatmul.mubr.msk.f32.gmra.mxu0 %vm594_vm2, %v5658_v45 }
 0x85a   :  { %v5662_v22 = vpop.permute.xlu0 %2386 }
 0x85b   :  { %4132 = vmatprep.mubr.msk.f32.mxu0 %vm594_vm2, %v5662_v22  ;;  %v5666_v2 = vpop.permute.xlu1 %2388 }
 0x85c   :  { %4133 = vmatmul.mubr.msk.f32.gmra.mxu0 %vm594_vm2, %v5666_v2 }
 0x85e   :  { %v5670_v35 = vpop.permute.xlu0 %2390 }
 0x85f   :  { %4135 = vmatprep.mubr.msk.f32.mxu0 %vm594_vm2, %v5670_v35  ;;  %v5674_v38 = vpop.permute.xlu1 %2392 }
 0x860   :  { %4136 = vmatmul.mubr.msk.f32.gmra.mxu0 %vm594_vm2, %v5674_v38 }
 0x862   :  { %v5678_v31 = vpop.permute.xlu0 %2394 }
 0x863   :  { %4138 = vmatprep.mubr.msk.f32.mxu0 %vm594_vm2, %v5678_v31  ;;  %v5682_v37 = vpop.permute.xlu1 %2396 }
 0x864   :  { %4139 = vmatmul.mubr.msk.f32.gmra.mxu0 %vm594_vm2, %v5682_v37 }
 0x866   :  { %v5686_v53 = vpop.permute.xlu0 %2398 }
 0x867   :  { %4141 = vmatprep.mubr.msk.f32.mxu0 %vm594_vm2, %v5686_v53  ;;  %v5690_v24 = vpop.permute.xlu1 %2400 }
 0x868   :  { %4142 = vmatmul.mubr.msk.f32.gmra.mxu0 %vm594_vm2, %v5690_v24 }
 0x86c   :  { %v5694_v18 = vpop.permute.xlu0 %2402 }
 0x86d   :  { %4144 = vmatprep.mubr.msk.f32.mxu0 %vm594_vm2, %v5694_v18  ;;  %v5698_v11 = vpop.permute.xlu1 %2404 }
 0x86e   :  { %6331 = vst [vmem:[#allocation17_spill] sm:$0xff] %v5698_v11  ;;  %4145 = vmatmul.mubr.msk.f32.gmra.mxu0 %vm594_vm2, %v5698_v11 }
 0x910   :  { %v4125_v39 = vpop.f32.mrf.mxu0 }
 0x911   :  { %v2584_v17 = vadd.f32 %v4125_v39, %v6332_v36 }
 0x912   :  { %v2504_v7 = vpop.f32.mrf.mxu0 }
 0x913   :  { %v2605_v4 = vadd.f32 %v5705_v48, %v2584_v17  ;;  %v2583_v49 = vadd.f32 %v2504_v7, %v6333_v27  ;;  %v6340_v7 = vld [vmem:[#allocation12_spill] sm:$0xff] }
 0x914   :  { %v4128_v26 = vpop.f32.mrf.mxu0 }
 0x915   :  { %4344 = vtanh.f32 %v2605_v4  ;;  %v2604_v25 = vadd.f32 %v5705_v48, %v2583_v49  ;;  %v2586_v32 = vadd.f32 %v4128_v26, %v6334_v56 }
 0x916   :  { %v2514_v46 = vpop.f32.mrf.mxu0 }
 0x917   :  { %4346 = vtanh.f32 %v2604_v25  ;;  %v2607_v9 = vadd.f32 %v5705_v48, %v2586_v32  ;;  %v2585_v58 = vadd.f32 %v2514_v46, %v6335_v16  ;;  %v6341_v32 = vld [vmem:[#allocation13_spill] sm:$0xff] }
 0x918   :  { %v4131_v12 = vpop.f32.mrf.mxu0 }
 0x919   :  { %4348 = vtanh.f32 %v2607_v9  ;;  %v2606_v0 = vadd.f32 %v5705_v48, %v2585_v58  ;;  %v2588_v41 = vadd.f32 %v4131_v12, %v6336_v51 }
 0x91a   :  { %v2524_v43 = vpop.f32.mrf.mxu0 }
 0x91b   :  { %4350 = vtanh.f32 %v2606_v0  ;;  %v2609_v19 = vadd.f32 %v5705_v48, %v2588_v41  ;;  %v2587_v10 = vadd.f32 %v2524_v43, %v6337_v40  ;;  %v6342_v0 = vld [vmem:[#allocation15_spill] sm:$0xff] }
 0x91c   :  { %v4134_v5 = vpop.f32.mrf.mxu0 }
 0x91d   :  { %4352 = vtanh.f32 %v2609_v19  ;;  %v2608_v8 = vadd.f32 %v5705_v48, %v2587_v10  ;;  %v2590_v57 = vadd.f32 %v4134_v5, %v6338_v54  ;;  %v6343_v5 = vld [vmem:[#allocation16_spill] sm:$0xff] }
 0x91e   :  { %v2534_v62 = vpop.f32.mrf.mxu0 }
 0x91f   :  { %4354 = vtanh.f32 %v2608_v8  ;;  %v2611_v42 = vadd.f32 %v5705_v48, %v2590_v57  ;;  %v2589_v20 = vadd.f32 %v2534_v62, %v6339_v63 }
 0x920   :  { %v4137_v39 = vpop.f32.mrf.mxu0 }
 0x921   :  { %4356 = vtanh.f32 %v2611_v42  ;;  %v2610_v17 = vadd.f32 %v5705_v48, %v2589_v20  ;;  %v2592_v4 = vadd.f32 %v4137_v39, %v6340_v7  ;;  %v6344_v20 = vld [vmem:[#allocation18_spill] sm:$0xff] }
 0x922   :  { %v5724_v49 = vpop.eup %4344  ;;  %v2544_v26 = vpop.f32.mrf.mxu0 }
 0x923   :  { %4358 = vtanh.f32 %v2610_v17  ;;  %v2613_v25 = vadd.f32 %v5705_v48, %v2592_v4  ;;  %2654 = vrot.lane.b32.xlu1 %v5724_v49, %s4474_s25  ;;  %v2591_v46 = vadd.f32 %v2544_v26, %v6341_v32 }
 0x924   :  { %v5730_v9 = vpop.eup %4346  ;;  %v4140_v58 = vpop.f32.mrf.mxu0 }
 0x925   :  { %4360 = vtanh.f32 %v2613_v25  ;;  %v2612_v12 = vadd.f32 %v5705_v48, %v2591_v46  ;;  %2652 = vrot.lane.b32.xlu0 %v5730_v9, %s4474_s25  ;;  %v2594_v41 = vadd.f32 %v4140_v58, %v6342_v0  ;;  %v6345_v25 = vld [vmem:[#allocation19_spill] sm:$0xff] }
 0x926   :  { %v5736_v43 = vpop.eup %4348  ;;  %v2554_v19 = vpop.f32.mrf.mxu0 }
 0x927   :  { %4362 = vtanh.f32 %v2612_v12  ;;  %v2615_v10 = vadd.f32 %v5705_v48, %v2594_v41  ;;  %v2593_v8 = vadd.f32 %v2554_v19, %v6343_v5  ;;  %2658 = vrot.lane.b32.xlu1 %v5736_v43, %s4474_s25 }
 0x928   :  { %v5742_v57 = vpop.eup %4350  ;;  %v4143_v62 = vpop.f32.mrf.mxu0 }
 0x929   :  { %4364 = vtanh.f32 %v2615_v10  ;;  %v2614_v42 = vadd.f32 %v5705_v48, %v2593_v8  ;;  %v2596_v39 = vadd.f32 %v4143_v62, %v6344_v20  ;;  %2656 = vrot.lane.b32.xlu0 %v5742_v57, %s4474_s25  ;;  %v6346_v10 = vld [vmem:[#allocation21_spill] sm:$0xff] }
 0x92a   :  { %v5748_v17 = vpop.eup %4352  ;;  %v2564_v4 = vpop.f32.mrf.mxu0 }
 0x92b   :  { %4366 = vtanh.f32 %v2614_v42  ;;  %v2617_v26 = vadd.f32 %v5705_v48, %v2596_v39  ;;  %v2595_v46 = vadd.f32 %v2564_v4, %v6345_v25  ;;  %2662 = vrot.lane.b32.xlu1 %v5748_v17, %s4474_s25  ;;  %v6347_v4 = vld [vmem:[#allocation22_spill] sm:$0xff] }
 0x92c   :  { %v5754_v58 = vpop.eup %4354 }
 0x92d   :  { %4368 = vtanh.f32 %v2617_v26  ;;  %v2616_v12 = vadd.f32 %v5705_v48, %v2595_v46  ;;  %2660 = vrot.lane.b32.xlu0 %v5754_v58, %s4474_s25 }
 0x92e   :  { %v5759_v41 = vpop.eup %4356  ;;  %v4146_v19 = vpop.f32.mrf.mxu0 }
 0x92f   :  { %4370 = vtanh.f32 %v2616_v12  ;;  %v2598_v8 = vadd.f32 %v4146_v19, %v6346_v10  ;;  %2666 = vrot.lane.b32.xlu1 %v5759_v41, %s4474_s25  ;;  %v3759_v10 = vld [vmem:[%s6241_s6 + $0x40] sm:$0xff] }
 0x930   :  { %v5764_v62 = vpop.eup %4358  ;;  %v2574_v42 = vpop.f32.mrf.mxu0 }
 0x931   :  { %v2619_v39 = vadd.f32 %v5705_v48, %v2598_v8  ;;  %v2597_v26 = vadd.f32 %v2574_v42, %v6347_v4  ;;  %2664 = vrot.lane.b32.xlu0 %v5764_v62, %s4474_s25 }
 0x932   :  { %v5770_v46 = vpop.eup %4360 }
 0x933   :  { %4372 = vtanh.f32 %v2619_v39  ;;  %v2618_v12 = vadd.f32 %v5705_v48, %v2597_v26  ;;  %2670 = vrot.lane.b32.xlu1 %v5770_v46, %s4474_s25  ;;  %v3762_v48 = vld [vmem:[%s6241_s6 + $0x58] sm:$0xff]  ;;  %v3761_v39 = vld [vmem:[%s6241_s6 + $0x50] sm:$0xff] }
 0x934   :  { %v5775_v19 = vpop.eup %4362  ;;  %4147 = vmatprep.subr.mxu1 %v3762_v48 }
 0x935   :  { %4374 = vtanh.f32 %v2618_v12  ;;  %2668 = vrot.lane.b32.xlu0 %v5775_v19, %s4474_s25  ;;  %4148 = vmatpush3.msra.mxu1 %v3762_v48  ;;  %v3760_v12 = vld [vmem:[%s6241_s6 + $0x48] sm:$0xff] }
 0x936   :  { %v5779_v8 = vpop.eup %4364  ;;  %4149 = vmatprep.subr.mxu1 %v3761_v39 }
 0x937   :  { %2674 = vrot.lane.b32.xlu1 %v5779_v8, %s4474_s25  ;;  %4150 = vmatpush3.msra.mxu1 %v3761_v39 }
 0x938   :  { %v5783_v42 = vpop.eup %4366  ;;  %4151 = vmatprep.subr.mxu1 %v3760_v12 }
 0x939   :  { %2672 = vrot.lane.b32.xlu0 %v5783_v42, %s4474_s25  ;;  %4152 = vmatpush3.msra.mxu1 %v3760_v12 }
 0x93a   :  { %v5793_v26 = vpop.eup %4368  ;;  %4153 = vmatprep.subr.mxu1 %v3759_v10 }
 0x93b   :  { %2678 = vrot.lane.b32.xlu1 %v5793_v26, %s4474_s25  ;;  %4154 = vmatpush3.msra.mxu1 %v3759_v10 }
 0x93c   :  { %v5800_v11 = vpop.eup %4370 }
 0x93d   :  { %2676 = vrot.lane.b32.xlu0 %v5800_v11, %s4474_s25 }
 0x940   :  { %v5807_v48 = vpop.eup %4372 }
 0x941   :  { %6348 = vst [vmem:[#allocation14_spill] sm:$0xff] %v5807_v48  ;;  %2682 = vrot.lane.b32.xlu1 %v5807_v48, %s4474_s25 }
 0x942   :  { %v5811_v4 = vpop.eup %4374 }
 0x943   :  { %2680 = vrot.lane.b32.xlu0 %v5811_v4, %s4474_s25 }
 0x995   :  { %v2655_v39 = vpop.permute.xlu1 %2654 }
 0x996   :  { %v2701_v20 = vmul.f32 %v2655_v39, %v5558_v14 }
 0x997   :  { %v2653_v25 = vpop.permute.xlu0 %2652 }
 0x998   :  { %v2700_v0 = vmul.f32 %v2653_v25, %v5560_v61  ;;  %2739 = vrot.lane.b32.xlu1 %v2701_v20, %s4474_s25 }
 0x999   :  { %v2659_v12 = vpop.permute.xlu1 %2658 }
 0x99a   :  { %2737 = vrot.lane.b32.xlu0 %v2700_v0, %s4474_s25  ;;  %v2703_v10 = vmul.f32 %v2659_v12, %v5571_v52 }
 0x99b   :  { %v2657_v5 = vpop.permute.xlu0 %2656 }
 0x99c   :  { %v2702_v48 = vmul.f32 %v2657_v5, %v5568_v33  ;;  %2743 = vrot.lane.b32.xlu1 %v2703_v10, %s4474_s25 }
 0x99d   :  { %v2663_v7 = vpop.permute.xlu1 %2662 }
 0x99e   :  { %v2705_v32 = vmul.f32 %v2663_v7, %v5581_v34  ;;  %2741 = vrot.lane.b32.xlu0 %v2702_v48, %s4474_s25 }
 0x99f   :  { %v2661_v14 = vpop.permute.xlu0 %2660 }
 0x9a0   :  { %v2704_v61 = vmul.f32 %v2661_v14, %v5578_v13  ;;  %2747 = vrot.lane.b32.xlu1 %v2705_v32, %s4474_s25 }
 0x9a1   :  { %v2667_v20 = vpop.permute.xlu1 %2666 }
 0x9a2   :  { %v2707_v0 = vmul.f32 %v2667_v20, %v5591_v21  ;;  %2745 = vrot.lane.b32.xlu0 %v2704_v61, %s4474_s25 }
 0x9a3   :  { %v2665_v52 = vpop.permute.xlu0 %2664 }
 0x9a4   :  { %v2706_v33 = vmul.f32 %v2665_v52, %v5588_v1  ;;  %2751 = vrot.lane.b32.xlu1 %v2707_v0, %s4474_s25 }
 0x9a5   :  { %v2671_v5 = vpop.permute.xlu1 %2670 }
 0x9a6   :  { %v2709_v34 = vmul.f32 %v2671_v5, %v5601_v29  ;;  %2749 = vrot.lane.b32.xlu0 %v2706_v33, %s4474_s25 }
 0x9a7   :  { %v2669_v7 = vpop.permute.xlu0 %2668 }
 0x9a8   :  { %v2708_v13 = vmul.f32 %v2669_v7, %v5598_v44  ;;  %2755 = vrot.lane.b32.xlu1 %v2709_v34, %s4474_s25 }
 0x9a9   :  { %v2675_v32 = vpop.permute.xlu1 %2674 }
 0x9aa   :  { %v2711_v21 = vmul.f32 %v2675_v32, %v5611_v23  ;;  %2753 = vrot.lane.b32.xlu0 %v2708_v13, %s4474_s25 }
 0x9ab   :  { %v2673_v25 = vpop.permute.xlu0 %2672 }
 0x9ac   :  { %v2710_v1 = vmul.f32 %v2673_v25, %v5608_v47  ;;  %2759 = vrot.lane.b32.xlu1 %v2711_v21, %s4474_s25 }
 0x9ad   :  { %v2679_v48 = vpop.permute.xlu1 %2678 }
 0x9ae   :  { %v2713_v29 = vmul.f32 %v2679_v48, %v5622_v15  ;;  %2757 = vrot.lane.b32.xlu0 %v2710_v1, %s4474_s25 }
 0x9af   :  { %v2677_v39 = vpop.permute.xlu0 %2676 }
 0x9b0   :  { %v2712_v44 = vmul.f32 %v2677_v39, %v5619_v6  ;;  %2763 = vrot.lane.b32.xlu1 %v2713_v29, %s4474_s25 }
 0x9b2   :  { %2761 = vrot.lane.b32.xlu0 %v2712_v44, %s4474_s25 }
 0x9b3   :  { %v2683_v23 = vpop.permute.xlu1 %2682 }
 0x9b4   :  { %v2715_v12 = vmul.f32 %v2683_v23, %v5632_v30 }
 0x9b5   :  { %v2681_v10 = vpop.permute.xlu0 %2680 }
 0x9b6   :  { %v2714_v47 = vmul.f32 %v2681_v10, %v5630_v55  ;;  %2767 = vrot.lane.b32.xlu1 %v2715_v12, %s4474_s25 }
 0x9b8   :  { %2765 = vrot.lane.b32.xlu0 %v2714_v47, %s4474_s25 }
 0xa0a   :  { %v2740_v15 = vpop.permute.xlu1 %2739 }
 0xa0c   :  { %v2738_v14 = vpop.permute.xlu0 %2737 }
 0xa0d   :  { %4155 = vmatprep.mubr.msk.f32.mxu1 %vm594_vm2, %v2738_v14 }
 0xa0e   :  { %4156 = vmatmul.mubr.msk.f32.vlgmr.msra.gmra.mxu1 %vm594_vm2, %v2740_v15  ;;  %v2744_v6 = vpop.permute.xlu1 %2743 }
 0xa10   :  { %v2742_v61 = vpop.permute.xlu0 %2741 }
 0xa11   :  { %4158 = vmatprep.mubr.msk.f32.mxu1 %vm594_vm2, %v2742_v61 }
 0xa12   :  { %4159 = vmatmul.mubr.msk.f32.gmra.mxu1 %vm594_vm2, %v2744_v6  ;;  %v2748_v30 = vpop.permute.xlu1 %2747 }
 0xa14   :  { %v2746_v20 = vpop.permute.xlu0 %2745 }
 0xa15   :  { %4161 = vmatprep.mubr.msk.f32.mxu1 %vm594_vm2, %v2746_v20 }
 0xa16   :  { %4162 = vmatmul.mubr.msk.f32.gmra.mxu1 %vm594_vm2, %v2748_v30  ;;  %v2752_v55 = vpop.permute.xlu1 %2751 }
 0xa18   :  { %v2750_v0 = vpop.permute.xlu0 %2749 }
 0xa19   :  { %4164 = vmatprep.mubr.msk.f32.mxu1 %vm594_vm2, %v2750_v0  ;;  %v3779_v0 = vld [vmem:[%s6243_s8 + $0x2] ss:$0 sm:$0xff] }
 0xa1a   :  { %4165 = vmatmul.mubr.msk.f32.gmra.mxu1 %vm594_vm2, %v2752_v55  ;;  %v2756_v52 = vpop.permute.xlu1 %2755  ;;  %v3179_v55 = vmul.f32 %v5730_v9, %v5640_v60  ;;  %v3183_v60 = vmul.f32 %v5754_v58, %v5654_v3  ;;  %v3187_v3 = vmul.f32 %v5775_v19, %v5670_v35  ;;  %v3191_v35 = vmul.f32 %v5800_v11, %v5686_v53 }
 0xa1c   :  { %v2754_v33 = vpop.permute.xlu0 %2753 }
 0xa1d   :  { %4167 = vmatprep.mubr.msk.f32.mxu1 %vm594_vm2, %v2754_v33  ;;  %v3180_v33 = vmul.f32 %v5724_v49, %v5638_v50  ;;  %v3184_v50 = vmul.f32 %v5748_v17, %v5658_v45  ;;  %v3188_v45 = vmul.f32 %v5770_v46, %v5674_v38  ;;  %v3192_v38 = vmul.f32 %v5793_v26, %v5690_v24 }
 0xa1e   :  { %4168 = vmatmul.mubr.msk.f32.gmra.mxu1 %vm594_vm2, %v2756_v52  ;;  %v2760_v5 = vpop.permute.xlu1 %2759  ;;  %v3181_v52 = vmul.f32 %v5742_v57, %v5646_v59  ;;  %v3185_v59 = vmul.f32 %v5764_v62, %v5662_v22  ;;  %v3189_v22 = vmul.f32 %v5783_v42, %v5678_v31  ;;  %v3193_v31 = vmul.f32 %v5811_v4, %v5694_v18 }
 0xa20   :  { %v2758_v34 = vpop.permute.xlu0 %2757 }
 0xa21   :  { %4170 = vmatprep.mubr.msk.f32.mxu1 %vm594_vm2, %v2758_v34 }
 0xa22   :  { %4171 = vmatmul.mubr.msk.f32.gmra.mxu1 %vm594_vm2, %v2760_v5  ;;  %v2764_v13 = vpop.permute.xlu1 %2763  ;;  %v3182_v5 = vmul.f32 %v5736_v43, %v5650_v28  ;;  %v3186_v28 = vmul.f32 %v5759_v41, %v5666_v2  ;;  %v3190_v2 = vmul.f32 %v5779_v8, %v5682_v37 }
 0xa24   :  { %v2762_v7 = vpop.permute.xlu0 %2761 }
 0xa25   :  { %4173 = vmatprep.mubr.msk.f32.mxu1 %vm594_vm2, %v2762_v7 }
 0xa26   :  { %4174 = vmatmul.mubr.msk.f32.gmra.mxu1 %vm594_vm2, %v2764_v13 }
 0xa28   :  { %v2768_v21 = vpop.permute.xlu1 %2767 }
 0xa2a   :  { %v2766_v32 = vpop.permute.xlu0 %2765 }
 0xa2b   :  { %4176 = vmatprep.mubr.msk.f32.mxu1 %vm594_vm2, %v2766_v32 }
 0xa2c   :  { %4177 = vmatmul.mubr.msk.f32.gmra.mxu1 %vm594_vm2, %v2768_v21 }
 0xace   :  { %v4157_v25 = vpop.f32.mrf.mxu1 }
 0xacf   :  { %2964 = vrot.lane.b32.xlu1 %v4157_v25, %s4474_s25 }
 0xad0   :  { %v2867_v1 = vpop.f32.mrf.mxu1 }
 0xad1   :  { %2962 = vrot.lane.b32.xlu0 %v2867_v1, %s4474_s25 }
 0xad2   :  { %v4160_v48 = vpop.f32.mrf.mxu1 }
 0xad3   :  { %2968 = vrot.lane.b32.xlu1 %v4160_v48, %s4474_s25 }
 0xad4   :  { %v2877_v29 = vpop.f32.mrf.mxu1 }
 0xad5   :  { %2966 = vrot.lane.b32.xlu0 %v2877_v29, %s4474_s25 }
 0xad6   :  { %v4163_v39 = vpop.f32.mrf.mxu1 }
 0xad7   :  { %2972 = vrot.lane.b32.xlu1 %v4163_v39, %s4474_s25 }
 0xad8   :  { %v2887_v44 = vpop.f32.mrf.mxu1 }
 0xad9   :  { %2970 = vrot.lane.b32.xlu0 %v2887_v44, %s4474_s25 }
 0xada   :  { %v4166_v23 = vpop.f32.mrf.mxu1 }
 0xadb   :  { %2976 = vrot.lane.b32.xlu1 %v4166_v23, %s4474_s25 }
 0xadc   :  { %v2897_v12 = vpop.f32.mrf.mxu1 }
 0xadd   :  { %2974 = vrot.lane.b32.xlu0 %v2897_v12, %s4474_s25 }
 0xade   :  { %v4169_v10 = vpop.f32.mrf.mxu1 }
 0xadf   :  { %2980 = vrot.lane.b32.xlu1 %v4169_v10, %s4474_s25 }
 0xae0   :  { %v2907_v47 = vpop.f32.mrf.mxu1 }
 0xae1   :  { %2978 = vrot.lane.b32.xlu0 %v2907_v47, %s4474_s25 }
 0xae2   :  { %v4172_v15 = vpop.f32.mrf.mxu1 }
 0xae3   :  { %2984 = vrot.lane.b32.xlu1 %v4172_v15, %s4474_s25 }
 0xae4   :  { %v2917_v14 = vpop.f32.mrf.mxu1 }
 0xae5   :  { %2982 = vrot.lane.b32.xlu0 %v2917_v14, %s4474_s25 }
 0xae6   :  { %v4175_v6 = vpop.f32.mrf.mxu1 }
 0xae7   :  { %2988 = vrot.lane.b32.xlu1 %v4175_v6, %s4474_s25 }
 0xae8   :  { %v2927_v61 = vpop.f32.mrf.mxu1 }
 0xae9   :  { %2986 = vrot.lane.b32.xlu0 %v2927_v61, %s4474_s25 }
 0xaec   :  { %v4178_v30 = vpop.f32.mrf.mxu1 }
 0xaed   :  { %2992 = vrot.lane.b32.xlu1 %v4178_v30, %s4474_s25 }
 0xaee   :  { %v2937_v20 = vpop.f32.mrf.mxu1 }
 0xaef   :  { %2990 = vrot.lane.b32.xlu0 %v2937_v20, %s4474_s25 }
 0xaf1   :  { %3211 = vrot.lane.b32.xlu1 %v3179_v55, %s4475_s28 }
 0xaf3   :  { %3032 = vrot.lane.b32.xlu0 %v3779_v0, %s4474_s25  ;;  %v6349_v0 = vld [vmem:[#allocation13_spill] sm:$0xff] }
 0xaf5   :  { %3215 = vrot.lane.b32.xlu1 %v3181_v52, %s4475_s28 }
 0xaf7   :  { %3213 = vrot.lane.b32.xlu0 %v3180_v33, %s4475_s28 }
 0xaf9   :  { %3219 = vrot.lane.b32.xlu1 %v3183_v60, %s4475_s28  ;;  %v6350_v60 = vld [vmem:[#allocation12_spill] sm:$0xff] }
 0xafb   :  { %3217 = vrot.lane.b32.xlu0 %v3182_v5, %s4475_s28 }
 0xafd   :  { %3223 = vrot.lane.b32.xlu1 %v3185_v59, %s4475_s28 }
 0xaff   :  { %3221 = vrot.lane.b32.xlu0 %v3184_v50, %s4475_s28 }
 0xb01   :  { %3227 = vrot.lane.b32.xlu1 %v3187_v3, %s4475_s28  ;;  %v6351_v3 = vld [vmem:[#allocation16_spill] sm:$0xff] }
 0xb03   :  { %3225 = vrot.lane.b32.xlu0 %v3186_v28, %s4475_s28 }
 0xb05   :  { %3231 = vrot.lane.b32.xlu1 %v3189_v22, %s4475_s28 }
 0xb07   :  { %3229 = vrot.lane.b32.xlu0 %v3188_v45, %s4475_s28 }
 0xb09   :  { %3235 = vrot.lane.b32.xlu1 %v3191_v35, %s4475_s28 }
 0xb0b   :  { %3233 = vrot.lane.b32.xlu0 %v3190_v2, %s4475_s28 }
 0xb0d   :  { %3239 = vrot.lane.b32.xlu1 %v3193_v31, %s4475_s28 }
 0xb0f   :  { %3237 = vrot.lane.b32.xlu0 %v3192_v38, %s4475_s28  ;;  %v6353_v38 = vld [vmem:[#allocation19_spill] sm:$0xff] }
 0xb41   :  { %v2965_v21 = vpop.permute.xlu1 %2964 }
 0xb42   :  { %v3011_v18 = vadd.f32 %v6332_v36, %v2965_v21 }
 0xb43   :  { %v2963_v34 = vpop.permute.xlu0 %2962 }
 0xb44   :  { %v3010_v39 = vadd.f32 %v2963_v34, %v6333_v27 }
 0xb45   :  { %v2969_v37 = vpop.permute.xlu1 %2968 }
 0xb46   :  { %v3013_v47 = vadd.f32 %v6334_v56, %v2969_v37 }
 0xb47   :  { %v2967_v7 = vpop.permute.xlu0 %2966 }
 0xb48   :  { %v3012_v24 = vadd.f32 %v2967_v7, %v6335_v16  ;;  %v6354_v7 = vld [vmem:[#allocation18_spill] sm:$0xff] }
 0xb49   :  { %v2973_v48 = vpop.permute.xlu1 %2972 }
 0xb4a   :  { %v3015_v61 = vadd.f32 %v6336_v51, %v2973_v48  ;;  %v6355_v48 = vld [vmem:[#allocation22_spill] sm:$0xff] }
 0xb4b   :  { %v2971_v53 = vpop.permute.xlu0 %2970 }
 0xb4c   :  { %v3014_v6 = vadd.f32 %v2971_v53, %v6337_v40 }
 0xb4d   :  { %v2977_v23 = vpop.permute.xlu1 %2976 }
 0xb4e   :  { %v3017_v20 = vadd.f32 %v6338_v54, %v2977_v23  ;;  %v6352_v54 = vld [vmem:[#allocation15_spill] sm:$0xff] }
 0xb4f   :  { %v2975_v13 = vpop.permute.xlu0 %2974 }
 0xb50   :  { %v3016_v16 = vadd.f32 %v2975_v13, %v6339_v63 }
 0xb51   :  { %v2981_v30 = vpop.permute.xlu1 %2980 }
 0xb52   :  { %v3019_v40 = vadd.f32 %v6350_v60, %v2981_v30 }
 0xb53   :  { %v2979_v32 = vpop.permute.xlu0 %2978 }
 0xb54   :  { %v3018_v52 = vadd.f32 %v2979_v32, %v6349_v0 }
 0xb55   :  { %v2985_v33 = vpop.permute.xlu1 %2984 }
 0xb56   :  { %v3021_v63 = vadd.f32 %v6352_v54, %v2985_v33 }
 0xb57   :  { %v2983_v25 = vpop.permute.xlu0 %2982 }
 0xb58   :  { %v3020_v28 = vadd.f32 %v2983_v25, %v6351_v3 }
 0xb59   :  { %v2989_v22 = vpop.permute.xlu1 %2988 }
 0xb5a   :  { %v3023_v53 = vadd.f32 %v6354_v7, %v2989_v22 }
 0xb5b   :  { %v2987_v1 = vpop.permute.xlu0 %2986 }
 0xb5c   :  { %v3022_v34 = vadd.f32 %v2987_v1, %v6353_v38 }
 0xb5f   :  { %v2993_v13 = vpop.permute.xlu1 %2992 }
 0xb61   :  { %v2991_v29 = vpop.permute.xlu0 %2990 }
 0xb65   :  { %v3033_v44 = vpop.permute.xlu0 %3032 }
 0xb66   :  { %v3035_v12 = vadd.f32 %v3033_v44, %v3010_v39  ;;  %v3036_v10 = vadd.f32 %v3033_v44, %v3011_v18  ;;  %v3037_v15 = vadd.f32 %v3033_v44, %v3012_v24  ;;  %v3038_v14 = vadd.f32 %v3033_v44, %v3013_v47  ;;  %v6356_v39 = vld [vmem:[#allocation21_spill] sm:$0xff] }
 0xb67   :  { %v3039_v36 = vadd.f32 %v3033_v44, %v3014_v6  ;;  %v3040_v27 = vadd.f32 %v3033_v44, %v3015_v61  ;;  %v3041_v55 = vadd.f32 %v3033_v44, %v3016_v16  ;;  %v3042_v56 = vadd.f32 %v3033_v44, %v3017_v20  ;;  %v6358_v16 = vld [vmem:[#allocation14_spill] sm:$0xff] }
 0xb68   :  { %4376 = vtanh.f32 %v3035_v12  ;;  %v3043_v51 = vadd.f32 %v3033_v44, %v3018_v52  ;;  %v3044_v59 = vadd.f32 %v3033_v44, %v3019_v40  ;;  %v3045_v45 = vadd.f32 %v3033_v44, %v3020_v28 }
 0xb69   :  { %4378 = vtanh.f32 %v3036_v10  ;;  %v3046_v2 = vadd.f32 %v3033_v44, %v3021_v63  ;;  %v3047_v32 = vadd.f32 %v3033_v44, %v3022_v34  ;;  %v3048_v25 = vadd.f32 %v3033_v44, %v3023_v53  ;;  %v3214_v0 = vpop.permute.xlu0 %3213 }
 0xb6a   :  { %4380 = vtanh.f32 %v3037_v15  ;;  %v3024_v18 = vadd.f32 %v2991_v29, %v6355_v48  ;;  %v3025_v24 = vadd.f32 %v6356_v39, %v2993_v13 }
 0xb6b   :  { %4382 = vtanh.f32 %v3038_v14 }
 0xb6c   :  { %4384 = vtanh.f32 %v3039_v36  ;;  %v3049_v1 = vadd.f32 %v3033_v44, %v3024_v18  ;;  %v3050_v12 = vadd.f32 %v3033_v44, %v3025_v24  ;;  %v3780_v36 = vld [vmem:[%s6244_s9] ss:$0 sm:$0xff]  ;;  %v3069_v18 = vsub.f32 1.0, %v5742_v57 }
 0xb6d   :  { %4386 = vtanh.f32 %v3040_v27  ;;  %v6357_v27 = vld [vmem:[#allocation17_spill] sm:$0xff]  ;;  %v3218_v33 = vpop.permute.xlu0 %3217  ;;  %v3070_v24 = vsub.f32 1.0, %v5736_v43  ;;  %v3073_v43 = vsub.f32 1.0, %v5764_v62 }
 0xb6e   :  { %4388 = vtanh.f32 %v3041_v55  ;;  %v3194_v20 = vmul.f32 %v6358_v16, %v6357_v27  ;;  %v3212_v55 = vpop.permute.xlu1 %3211 }
 0xb6f   :  { %4390 = vtanh.f32 %v3042_v56 }
 0xb70   :  { %4392 = vtanh.f32 %v3043_v51 }
 0xb71   :  { %4394 = vtanh.f32 %v3044_v59  ;;  %v3222_v40 = vpop.permute.xlu0 %3221 }
 0xb72   :  { %4396 = vtanh.f32 %v3045_v45  ;;  %v3216_v56 = vpop.permute.xlu1 %3215 }
 0xb73   :  { %4398 = vtanh.f32 %v3046_v2 }
 0xb74   :  { %4400 = vtanh.f32 %v3047_v32 }
 0xb75   :  { %v4377_v5 = vpop.eup %4376  ;;  %4402 = vtanh.f32 %v3048_v25  ;;  %v3067_v25 = vsub.f32 1.0, %v5730_v9 }
 0xb76   :  { %v4379_v50 = vpop.eup %4378  ;;  %3099 = vrot.lane.b32.xlu1 %v4377_v5, %s4473_s24  ;;  %4404 = vtanh.f32 %v3049_v1  ;;  %v3220_v52 = vpop.permute.xlu1 %3219 }
 0xb77   :  { %3101 = vrot.lane.b32.xlu0 %v4379_v50, %s4473_s24  ;;  %v4381_v35 = vpop.eup %4380  ;;  %4406 = vtanh.f32 %v3050_v12  ;;  %v3226_v5 = vpop.permute.xlu0 %3225 }
 0xb78   :  { %v4383_v31 = vpop.eup %4382 }
 0xb79   :  { %v4385_v21 = vpop.eup %4384 }
 0xb7a   :  { %3103 = vrot.lane.b32.xlu1 %v4381_v35, %s4473_s24  ;;  %v4387_v37 = vpop.eup %4386  ;;  %v3224_v60 = vpop.permute.xlu1 %3223 }
 0xb7b   :  { %3105 = vrot.lane.b32.xlu0 %v4383_v31, %s4473_s24  ;;  %v4389_v23 = vpop.eup %4388  ;;  %v5971_v50 = vpop.permute.xlu0 %3229 }
 0xb7c   :  { %v4391_v10 = vpop.eup %4390 }
 0xb7d   :  { %v4393_v47 = vpop.eup %4392 }
 0xb7e   :  { %3107 = vrot.lane.b32.xlu1 %v4385_v21, %s4473_s24  ;;  %v4395_v29 = vpop.eup %4394  ;;  %v5967_v51 = vpop.permute.xlu1 %3227  ;;  %v3068_v21 = vsub.f32 1.0, %v5724_v49  ;;  %v3071_v49 = vsub.f32 1.0, %v5754_v58 }
 0xb7f   :  { %3109 = vrot.lane.b32.xlu0 %v4387_v37, %s4473_s24  ;;  %v4397_v15 = vpop.eup %4396  ;;  %v5975_v28 = vpop.permute.xlu0 %3233 }
 0xb80   :  { %v4399_v14 = vpop.eup %4398 }
 0xb81   :  { %v4401_v44 = vpop.eup %4400 }
 0xb82   :  { %3111 = vrot.lane.b32.xlu1 %v4389_v23, %s4473_s24  ;;  %v4403_v6 = vpop.eup %4402  ;;  %v5969_v59 = vpop.permute.xlu1 %3231 }
 0xb83   :  { %3113 = vrot.lane.b32.xlu0 %v4391_v10, %s4473_s24  ;;  %v4405_v61 = vpop.eup %4404  ;;  %v5979_v22 = vpop.permute.xlu0 %3237 }
 0xb84   :  { %v4407_v30 = vpop.eup %4406 }
 0xb86   :  { %3115 = vrot.lane.b32.xlu1 %v4393_v47, %s4473_s24  ;;  %v5973_v3 = vpop.permute.xlu1 %3235 }
 0xb87   :  { %3117 = vrot.lane.b32.xlu0 %v4395_v29, %s4473_s24 }
 0xb8a   :  { %3119 = vrot.lane.b32.xlu1 %v4397_v15, %s4473_s24  ;;  %v5977_v54 = vpop.permute.xlu1 %3239  ;;  %v3072_v15 = vsub.f32 1.0, %v5748_v17 }
 0xb8b   :  { %3121 = vrot.lane.b32.xlu0 %v4399_v14, %s4473_s24 }
 0xb8e   :  { %3123 = vrot.lane.b32.xlu1 %v4401_v44, %s4473_s24 }
 0xb8f   :  { %3125 = vrot.lane.b32.xlu0 %v4403_v6, %s4473_s24 }
 0xb92   :  { %3127 = vrot.lane.b32.xlu1 %v4405_v61, %s4473_s24 }
 0xb93   :  { %3129 = vrot.lane.b32.xlu0 %v4407_v30, %s4473_s24 }
 0xb96   :  { %3281 = vrot.lane.b32.xlu1 %v3780_v36, %s4475_s28  ;;  %v3074_v36 = vsub.f32 1.0, %v5759_v41 }
 0xb97   :  { %3241 = vrot.lane.b32.xlu0 %v3194_v20, %s4475_s28 }
 0xbe8   :  { %v3100_v63 = vpop.permute.xlu1 %3099 }
 0xbe9   :  { %v3102_v35 = vpop.permute.xlu0 %3101  ;;  %v3147_v48 = vmul.f32 %v3100_v63, %v3067_v25 }
 0xbea   :  { %v3148_v37 = vmul.f32 %v3102_v35, %v3068_v21 }
 0xbeb   :  { %v3259_v10 = vadd.f32 %v3212_v55, %v3147_v48 }
 0xbec   :  { %v3104_v45 = vpop.permute.xlu1 %3103  ;;  %v3260_v12 = vadd.f32 %v3214_v0, %v3148_v37  ;;  %v3076_v0 = vsub.f32 1.0, %v5770_v46  ;;  %v3081_v37 = vsub.f32 1.0, %v5811_v4 }
 0xbed   :  { %v3106_v31 = vpop.permute.xlu0 %3105  ;;  %v3149_v1 = vmul.f32 %v3104_v45, %v3069_v18 }
 0xbee   :  { %v3150_v47 = vmul.f32 %v3106_v31, %v3070_v24 }
 0xbef   :  { %v3261_v57 = vadd.f32 %v3216_v56, %v3149_v1 }
 0xbf0   :  { %v3108_v2 = vpop.permute.xlu1 %3107  ;;  %v3262_v44 = vadd.f32 %v3218_v33, %v3150_v47  ;;  %v3075_v33 = vsub.f32 1.0, %v5775_v19 }
 0xbf1   :  { %v3110_v7 = vpop.permute.xlu0 %3109  ;;  %v3151_v61 = vmul.f32 %v3108_v2, %v3071_v49 }
 0xbf2   :  { %v3152_v6 = vmul.f32 %v3110_v7, %v3072_v15 }
 0xbf3   :  { %v3263_v55 = vadd.f32 %v3220_v52, %v3151_v61  ;;  %v3077_v52 = vsub.f32 1.0, %v5783_v42  ;;  %v3079_v42 = vsub.f32 1.0, %v5800_v11 }
 0xbf4   :  { %v3112_v38 = vpop.permute.xlu1 %3111  ;;  %v3264_v20 = vadd.f32 %v3222_v40, %v3152_v6  ;;  %v3078_v40 = vsub.f32 1.0, %v5779_v8 }
 0xbf5   :  { %v3114_v13 = vpop.permute.xlu0 %3113  ;;  %v3153_v27 = vmul.f32 %v3112_v38, %v3073_v43 }
 0xbf6   :  { %v3154_v56 = vmul.f32 %v3114_v13, %v3074_v36  ;;  %v3080_v13 = vsub.f32 1.0, %v5793_v26  ;;  %v3082_v26 = vsub.f32 1.0, %v6358_v16 }
 0xbf7   :  { %v3265_v63 = vadd.f32 %v3224_v60, %v3153_v27 }
 0xbf8   :  { %v3116_v34 = vpop.permute.xlu1 %3115  ;;  %v3266_v35 = vadd.f32 %v3226_v5, %v3154_v56 }
 0xbf9   :  { %v3118_v23 = vpop.permute.xlu0 %3117  ;;  %v3155_v31 = vmul.f32 %v3116_v34, %v3075_v33 }
 0xbfa   :  { %v3156_v2 = vmul.f32 %v3118_v23, %v3076_v0 }
 0xbfb   :  { %v3267_v60 = vadd.f32 %v5967_v51, %v3155_v31 }
 0xbfc   :  { %v3120_v53 = vpop.permute.xlu1 %3119  ;;  %v3268_v7 = vadd.f32 %v5971_v50, %v3156_v2 }
 0xbfd   :  { %v3122_v30 = vpop.permute.xlu0 %3121  ;;  %v3157_v38 = vmul.f32 %v3120_v53, %v3077_v52 }
 0xbfe   :  { %v3158_v5 = vmul.f32 %v3122_v30, %v3078_v40 }
 0xbff   :  { %v3269_v53 = vadd.f32 %v5969_v59, %v3157_v38 }
 0xc00   :  { %v5981_v32 = vpop.permute.xlu1 %3123  ;;  %v3270_v50 = vadd.f32 %v5975_v28, %v3158_v5 }
 0xc01   :  { %v3126_v45 = vpop.permute.xlu0 %3125  ;;  %v3159_v51 = vmul.f32 %v5981_v32, %v3079_v42 }
 0xc02   :  { %v3160_v25 = vmul.f32 %v3126_v45, %v3080_v13 }
 0xc03   :  { %v3271_v24 = vadd.f32 %v5973_v3, %v3159_v51 }
 0xc04   :  { %v5986_v39 = vpop.permute.xlu1 %3127  ;;  %v3272_v28 = vadd.f32 %v5979_v22, %v3160_v25 }
 0xc05   :  { %v3130_v34 = vpop.permute.xlu0 %3129  ;;  %v3161_v11 = vmul.f32 %v5986_v39, %v3081_v37 }
 0xc06   :  { %v3162_v32 = vmul.f32 %v3130_v34, %v3082_v26 }
 0xc07   :  { %v3273_v4 = vadd.f32 %v5977_v54, %v3161_v11 }
 0xc08   :  { %v5989_v29 = vpop.permute.xlu1 %3281 }
 0xc09   :  { %v3285_v9 = vmul.f32 %v5989_v29, %v3260_v12  ;;  %v3284_v14 = vmul.f32 %v5989_v29, %v3259_v10  ;;  %v3287_v17 = vmul.f32 %v5989_v29, %v3262_v44  ;;  %v3286_v58 = vmul.f32 %v5989_v29, %v3261_v57  ;;  %v3242_v59 = vpop.permute.xlu0 %3241 }
 0xc0a   :  { %v3289_v62 = vmul.f32 %v5989_v29, %v3264_v20  ;;  %v3288_v41 = vmul.f32 %v5989_v29, %v3263_v55  ;;  %v3291_v46 = vmul.f32 %v5989_v29, %v3266_v35  ;;  %v3290_v19 = vmul.f32 %v5989_v29, %v3265_v63 }
 0xc0b   :  { %3318 = vrot.lane.b32.xlu1 %v3285_v9, %s4474_s25  ;;  %3316 = vrot.lane.b32.xlu0 %v3284_v14, %s4474_s25  ;;  %v3293_v8 = vmul.f32 %v5989_v29, %v3268_v7  ;;  %v3292_v21 = vmul.f32 %v5989_v29, %v3267_v60  ;;  %v3295_v48 = vmul.f32 %v5989_v29, %v3270_v50 }
 0xc0c   :  { %v3294_v18 = vmul.f32 %v5989_v29, %v3269_v53  ;;  %v3274_v1 = vadd.f32 %v3242_v59, %v3162_v32  ;;  %v3297_v16 = vmul.f32 %v5989_v29, %v3272_v28  ;;  %v3296_v39 = vmul.f32 %v5989_v29, %v3271_v24 }
 0xc0d   :  { %v3298_v3 = vmul.f32 %v5989_v29, %v3273_v4 }
 0xc0e   :  { %v3299_v22 = vmul.f32 %v5989_v29, %v3274_v1 }
 0xc0f   :  { %3322 = vrot.lane.b32.xlu1 %v3287_v17, %s4474_s25  ;;  %3320 = vrot.lane.b32.xlu0 %v3286_v58, %s4474_s25 }
 0xc13   :  { %3326 = vrot.lane.b32.xlu1 %v3289_v62, %s4474_s25  ;;  %3324 = vrot.lane.b32.xlu0 %v3288_v41, %s4474_s25 }
 0xc17   :  { %3330 = vrot.lane.b32.xlu1 %v3291_v46, %s4474_s25  ;;  %3328 = vrot.lane.b32.xlu0 %v3290_v19, %s4474_s25 }
 0xc1b   :  { %3334 = vrot.lane.b32.xlu1 %v3293_v8, %s4474_s25  ;;  %3332 = vrot.lane.b32.xlu0 %v3292_v21, %s4474_s25 }
 0xc1f   :  { %3338 = vrot.lane.b32.xlu1 %v3295_v48, %s4474_s25  ;;  %3336 = vrot.lane.b32.xlu0 %v3294_v18, %s4474_s25 }
 0xc23   :  { %3342 = vrot.lane.b32.xlu1 %v3297_v16, %s4474_s25  ;;  %3340 = vrot.lane.b32.xlu0 %v3296_v39, %s4474_s25 }
 0xc27   :  { %3346 = vrot.lane.b32.xlu1 %v3299_v22, %s4474_s25  ;;  %3344 = vrot.lane.b32.xlu0 %v3298_v3, %s4474_s25 }
 0xc7d   :  { %v3319_v23 = vpop.permute.xlu1 %3318  ;;  %v3317_v12 = vpop.permute.xlu0 %3316 }
 0xc7e   :  { %v3367_v54 = vsel %vm594_vm2, %v3319_v23, 0.0  ;;  %v3364_v10 = vsel %vm594_vm2, %v3317_v12, 0.0 }
 0xc7f   :  { %3368 = vadd.xlane.f32.xlu1 %v3367_v54  ;;  %3365 = vadd.xlane.f32.xlu0 %v3364_v10 }
 0xc81   :  { %v3323_v47 = vpop.permute.xlu1 %3322  ;;  %v3321_v15 = vpop.permute.xlu0 %3320 }
 0xc82   :  { %v3373_v49 = vsel %vm594_vm2, %v3323_v47, 0.0  ;;  %v3370_v29 = vsel %vm594_vm2, %v3321_v15, 0.0 }
 0xc83   :  { %3374 = vadd.xlane.f32.xlu0 %v3373_v49 }
 0xc85   :  { %v3327_v9 = vpop.permute.xlu1 %3326  ;;  %v3325_v14 = vpop.permute.xlu0 %3324 }
 0xc86   :  { %v3376_v57 = vsel %vm594_vm2, %v3325_v14, 0.0  ;;  %v3379_v61 = vsel %vm594_vm2, %v3327_v9, 0.0 }
 0xc87   :  { %3371 = vadd.xlane.f32.xlu0 %v3370_v29  ;;  %3377 = vadd.xlane.f32.xlu1 %v3376_v57 }
 0xc89   :  { %v3331_v44 = vpop.permute.xlu1 %3330  ;;  %v3329_v6 = vpop.permute.xlu0 %3328 }
 0xc8a   :  { %v3382_v43 = vsel %vm594_vm2, %v3329_v6, 0.0  ;;  %v3385_v17 = vsel %vm594_vm2, %v3331_v44, 0.0 }
 0xc8b   :  { %3380 = vadd.xlane.f32.xlu0 %v3379_v61  ;;  %3383 = vadd.xlane.f32.xlu1 %v3382_v43 }
 0xc8d   :  { %v3335_v30 = vpop.permute.xlu1 %3334  ;;  %v3333_v36 = vpop.permute.xlu0 %3332 }
 0xc8e   :  { %v3388_v58 = vsel %vm594_vm2, %v3333_v36, 0.0  ;;  %v3391_v55 = vsel %vm594_vm2, %v3335_v30, 0.0 }
 0xc8f   :  { %3386 = vadd.xlane.f32.xlu0 %v3385_v17  ;;  %3389 = vadd.xlane.f32.xlu1 %v3388_v58 }
 0xc91   :  { %v3339_v27 = vpop.permute.xlu1 %3338  ;;  %v3337_v20 = vpop.permute.xlu0 %3336 }
 0xc92   :  { %v3394_v56 = vsel %vm594_vm2, %v3337_v20, 0.0  ;;  %v3397_v62 = vsel %vm594_vm2, %v3339_v27, 0.0 }
 0xc93   :  { %3392 = vadd.xlane.f32.xlu0 %v3391_v55  ;;  %3395 = vadd.xlane.f32.xlu1 %v3394_v56 }
 0xc95   :  { %v3343_v0 = vpop.permute.xlu1 %3342  ;;  %v3341_v33 = vpop.permute.xlu0 %3340 }
 0xc96   :  { %v3400_v41 = vsel %vm594_vm2, %v3341_v33, 0.0  ;;  %v3403_v45 = vsel %vm594_vm2, %v3343_v0, 0.0 }
 0xc97   :  { %3398 = vadd.xlane.f32.xlu0 %v3397_v62  ;;  %3401 = vadd.xlane.f32.xlu1 %v3400_v41 }
 0xc99   :  { %v3345_v63 = vpop.permute.xlu0 %3344  ;;  %v3347_v2 = vpop.permute.xlu1 %3346 }
 0xc9a   :  { %v3406_v35 = vsel %vm594_vm2, %v3345_v63, 0.0  ;;  %v3409_v31 = vsel %vm594_vm2, %v3347_v2, 0.0 }
 0xc9b   :  { %3404 = vadd.xlane.f32.xlu0 %v3403_v45  ;;  %3407 = vadd.xlane.f32.xlu1 %v3406_v35 }
 0xc9f   :  { %3410 = vadd.xlane.f32.xlu0 %v3409_v31 }
 0xd08   :  { %v6060_v52 = vpop.xlane.xlu1 %3368  ;;  %v6062_v40 = vpop.xlane.xlu0 %3365 }
 0xd09   :  { %v3429_v46 = vand.u32 2147483647, %v6060_v52  ;;  %v3428_v19 = vand.u32 2147483647, %v6062_v40 }
 0xd0b   :  { %v3445_v38 = vsub.f32 0.0, %v3429_v46  ;;  %v3444_v7 = vsub.f32 0.0, %v3428_v19 }
 0xd0c   :  { %v6066_v60 = vpop.xlane.xlu0 %3374 }
 0xd0d   :  { %v3462_v5 = vmul.f32 1.442695, %v3445_v38  ;;  %v3460_v34 = vmul.f32 1.442695, %v3444_v7  ;;  %v3431_v13 = vand.u32 2147483647, %v6066_v60 }
 0xd0f   :  { %4408 = vpow2.f32 %v3462_v5  ;;  %v3447_v42 = vsub.f32 0.0, %v3431_v13 }
 0xd10   :  { %4410 = vpow2.f32 %v3460_v34  ;;  %v6069_v8 = vpop.xlane.xlu1 %3377  ;;  %v6071_v21 = vpop.xlane.xlu0 %3371 }
 0xd11   :  { %v3432_v53 = vand.u32 2147483647, %v6069_v8  ;;  %v3430_v50 = vand.u32 2147483647, %v6071_v21  ;;  %v3466_v25 = vmul.f32 1.442695, %v3447_v42 }
 0xd13   :  { %v3448_v51 = vsub.f32 0.0, %v3432_v53  ;;  %v3446_v37 = vsub.f32 0.0, %v3430_v50  ;;  %4412 = vpow2.f32 %v3466_v25 }
 0xd14   :  { %v6075_v26 = vpop.xlane.xlu1 %3383  ;;  %v6077_v11 = vpop.xlane.xlu0 %3380 }
 0xd15   :  { %v3468_v48 = vmul.f32 1.442695, %v3448_v51  ;;  %v3464_v18 = vmul.f32 1.442695, %v3446_v37  ;;  %v3434_v59 = vand.u32 2147483647, %v6075_v26 }
 0xd16   :  { %v3433_v28 = vand.u32 2147483647, %v6077_v11 }
 0xd17   :  { %4414 = vpow2.f32 %v3468_v48  ;;  %v3450_v24 = vsub.f32 0.0, %v3434_v59  ;;  %v3413_v59 = vmax.f32 %v6060_v52, 0.0 }
 0xd18   :  { %4416 = vpow2.f32 %v3464_v18  ;;  %v3449_v32 = vsub.f32 0.0, %v3433_v28  ;;  %v6081_v4 = vpop.xlane.xlu1 %3389  ;;  %v6083_v1 = vpop.xlane.xlu0 %3386 }
 0xd19   :  { %v3436_v16 = vand.u32 2147483647, %v6081_v4  ;;  %v3435_v39 = vand.u32 2147483647, %v6083_v1  ;;  %v3472_v22 = vmul.f32 1.442695, %v3450_v24 }
 0xd1a   :  { %v3470_v3 = vmul.f32 1.442695, %v3449_v32 }
 0xd1b   :  { %v3452_v23 = vsub.f32 0.0, %v3436_v16  ;;  %v3451_v12 = vsub.f32 0.0, %v3435_v39  ;;  %4418 = vpow2.f32 %v3472_v22  ;;  %v3557_v16 = vld [vmem:[%s6245_s1 + $0x8] sm:$0xff]  ;;  %v3412_v39 = vmax.f32 %v6062_v40, 0.0 }
 0xd1c   :  { %v4409_v54 = vpop.eup %4408  ;;  %v6087_v10 = vpop.xlane.xlu1 %3395  ;;  %4420 = vpow2.f32 %v3470_v3  ;;  %v3415_v40 = vmax.f32 %v6066_v60, 0.0 }
 0xd1d   :  { %v6089_v47 = vpop.xlane.xlu0 %3392  ;;  %v4411_v15 = vpop.eup %4410  ;;  %v3493_v49 = vadd.f32 1.0, %v4409_v54  ;;  %v3476_v9 = vmul.f32 1.442695, %v3452_v23  ;;  %v3474_v29 = vmul.f32 1.442695, %v3451_v12  ;;  %v3556_v12 = vld [vmem:[%s6245_s1] sm:$0xff] }
 0xd1e   :  { %v3492_v14 = vadd.f32 1.0, %v4411_v15  ;;  %v3438_v57 = vand.u32 2147483647, %v6087_v10  ;;  %v3437_v44 = vand.u32 2147483647, %v6089_v47 }
 0xd1f   :  { %4422 = vlog2.f32 %v3493_v49 }
 0xd20   :  { %4424 = vlog2.f32 %v3492_v14  ;;  %v3454_v6 = vsub.f32 0.0, %v3438_v57  ;;  %v6093_v61 = vpop.xlane.xlu1 %3401  ;;  %v4413_v30 = vpop.eup %4412  ;;  %v3453_v36 = vsub.f32 0.0, %v3437_v44 }
 0xd21   :  { %v6095_v43 = vpop.xlane.xlu0 %3398  ;;  %4426 = vpow2.f32 %v3476_v9  ;;  %v3440_v17 = vand.u32 2147483647, %v6093_v61  ;;  %v3495_v58 = vadd.f32 1.0, %v4413_v30 }
 0xd22   :  { %4428 = vpow2.f32 %v3474_v29  ;;  %v3480_v27 = vmul.f32 1.442695, %v3454_v6  ;;  %v3478_v20 = vmul.f32 1.442695, %v3453_v36  ;;  %v3439_v56 = vand.u32 2147483647, %v6095_v43 }
 0xd23   :  { %v3456_v55 = vsub.f32 0.0, %v3440_v17  ;;  %4430 = vlog2.f32 %v3495_v58  ;;  %v3559_v6 = vld [vmem:[%s6245_s1 + $0x18] sm:$0xff] }
 0xd24   :  { %v4415_v0 = vpop.eup %4414  ;;  %v6099_v33 = vpop.xlane.xlu1 %3407  ;;  %4432 = vpow2.f32 %v3480_v27  ;;  %v3455_v35 = vsub.f32 0.0, %v3439_v56  ;;  %v3416_v27 = vmax.f32 %v6069_v8, 0.0 }
 0xd25   :  { %v6101_v62 = vpop.xlane.xlu0 %3404  ;;  %v4417_v41 = vpop.eup %4416  ;;  %v3496_v63 = vadd.f32 1.0, %v4415_v0  ;;  %v3484_v45 = vmul.f32 1.442695, %v3456_v55  ;;  %4434 = vpow2.f32 %v3478_v20  ;;  %v3442_v31 = vand.u32 2147483647, %v6099_v33  ;;  %v3560_v0 = vld [vmem:[%s6245_s1 + $0x20] sm:$0xff] }
 0xd26   :  { %v3494_v2 = vadd.f32 1.0, %v4417_v41  ;;  %v3482_v46 = vmul.f32 1.442695, %v3455_v35  ;;  %v3441_v19 = vand.u32 2147483647, %v6101_v62  ;;  %v3414_v41 = vmax.f32 %v6071_v21, 0.0 }
 0xd27   :  { %4436 = vlog2.f32 %v3496_v63  ;;  %v3458_v38 = vsub.f32 0.0, %v3442_v31 }
 0xd28   :  { %4438 = vlog2.f32 %v3494_v2  ;;  %v4419_v5 = vpop.eup %4418  ;;  %v3457_v34 = vsub.f32 0.0, %v3441_v19  ;;  %v3558_v2 = vld [vmem:[%s6245_s1 + $0x10] sm:$0xff] }
 0xd29   :  { %v6105_v7 = vpop.xlane.xlu0 %3410  ;;  %4440 = vpow2.f32 %v3484_v45  ;;  %v4421_v42 = vpop.eup %4420  ;;  %v3498_v53 = vadd.f32 1.0, %v4419_v5  ;;  %v3488_v50 = vmul.f32 1.442695, %v3458_v38 }
 0xd2a   :  { %v3443_v13 = vand.u32 2147483647, %v6105_v7  ;;  %4442 = vpow2.f32 %v3482_v46  ;;  %v3497_v25 = vadd.f32 1.0, %v4421_v42  ;;  %v3486_v51 = vmul.f32 1.442695, %v3457_v34 }
 0xd2b   :  { %4444 = vlog2.f32 %v3498_v53  ;;  %v3418_v34 = vmax.f32 %v6075_v26, 0.0  ;;  %v3562_v53 = vld [vmem:[%s6245_s1 + $0x30] sm:$0xff] }
 0xd2c   :  { %v3459_v37 = vsub.f32 0.0, %v3443_v13  ;;  %v4423_v48 = vpop.eup %4422  ;;  %4446 = vlog2.f32 %v3497_v25 }
 0xd2d   :  { %v4425_v18 = vpop.eup %4424  ;;  %v3511_v28 = vmul.f32 0.6931472, %v4423_v48  ;;  %4448 = vpow2.f32 %v3488_v50  ;;  %v3417_v50 = vmax.f32 %v6077_v11, 0.0 }
 0xd2e   :  { %v3490_v24 = vmul.f32 1.442695, %v3459_v37  ;;  %v4427_v32 = vpop.eup %4426  ;;  %v3509_v22 = vmul.f32 0.6931472, %v4425_v18  ;;  %4450 = vpow2.f32 %v3486_v51  ;;  %v3561_v37 = vld [vmem:[%s6245_s1 + $0x28] sm:$0xff] }
 0xd2f   :  { %v4429_v3 = vpop.eup %4428  ;;  %v3541_v23 = vadd.f32 %v3511_v28, %v3413_v59  ;;  %v3500_v54 = vadd.f32 1.0, %v4427_v32 }
 0xd30   :  { %v3540_v52 = vadd.f32 %v3509_v22, %v3412_v39  ;;  %v3499_v15 = vadd.f32 1.0, %v4429_v3  ;;  %4452 = vpow2.f32 %v3490_v24  ;;  %v4431_v49 = vpop.eup %4430  ;;  %v3420_v22 = vmax.f32 %v6081_v4, 0.0 }
 0xd31   :  { %v3573_v9 = vadd.f32 %v3557_v16, %v3541_v23  ;;  %4454 = vlog2.f32 %v3500_v54  ;;  %v4433_v14 = vpop.eup %4432  ;;  %v3515_v57 = vmul.f32 0.6931472, %v4431_v49  ;;  %v3564_v23 = vld [vmem:[%s6245_s1 + $0x40] sm:$0xff] }
 0xd32   :  { %v3572_v29 = vadd.f32 %v3556_v12, %v3540_v52  ;;  %4456 = vlog2.f32 %v3499_v15  ;;  %v4435_v44 = vpop.eup %4434  ;;  %v3502_v30 = vadd.f32 1.0, %v4433_v14  ;;  %v3419_v12 = vmax.f32 %v6083_v1, 0.0  ;;  %v3563_v52 = vld [vmem:[%s6245_s1 + $0x38] sm:$0xff] }
 0xd33   :  { %3590 = vst.msk [vmem:[%s6246_s10 + $0x8] sm:$0xff] %vm3588_vm3, %v3573_v9  ;;  %v3543_v60 = vadd.f32 %v3515_v57, %v3415_v40  ;;  %v3501_v17 = vadd.f32 1.0, %v4435_v44  ;;  %v3566_v57 = vld [vmem:[%s6245_s1 + $0x50] sm:$0xff]  ;;  %v3421_v44 = vmax.f32 %v6089_v47, 0.0 }
 0xd34   :  { %v4437_v36 = vpop.eup %4436  ;;  %3589 = vst.msk [vmem:[%s6246_s10] sm:$0xff] %vm3588_vm3, %v3572_v29  ;;  %4458 = vlog2.f32 %v3502_v30  ;;  %v3422_v29 = vmax.f32 %v6087_v10, 0.0 }
 0xd35   :  { %v4439_v58 = vpop.eup %4438  ;;  %v3517_v20 = vmul.f32 0.6931472, %v4437_v36  ;;  %v3575_v56 = vadd.f32 %v3559_v6, %v3543_v60  ;;  %4460 = vlog2.f32 %v3501_v17  ;;  %v3565_v36 = vld [vmem:[%s6245_s1 + $0x48] sm:$0xff] }
 0xd36   :  { %v4441_v55 = vpop.eup %4440  ;;  %v3513_v63 = vmul.f32 0.6931472, %v4439_v58  ;;  %v3424_v58 = vmax.f32 %v6093_v61, 0.0 }
 0xd37   :  { %v4443_v45 = vpop.eup %4442  ;;  %v3544_v35 = vadd.f32 %v3517_v20, %v3416_v27  ;;  %v3504_v31 = vadd.f32 1.0, %v4441_v55  ;;  %3592 = vst.msk [vmem:[%s6246_s10 + $0x18] sm:$0xff] %vm3588_vm3, %v3575_v56  ;;  %v3568_v55 = vld [vmem:[%s6245_s1 + $0x60] sm:$0xff]  ;;  %v3423_v56 = vmax.f32 %v6095_v43, 0.0 }
 0xd38   :  { %v3542_v8 = vadd.f32 %v3513_v63, %v3414_v41  ;;  %v3503_v46 = vadd.f32 1.0, %v4443_v45  ;;  %v4445_v19 = vpop.eup %4444  ;;  %v3567_v63 = vld [vmem:[%s6245_s1 + $0x58] sm:$0xff] }
 0xd39   :  { %v3576_v38 = vadd.f32 %v3560_v0, %v3544_v35  ;;  %4462 = vlog2.f32 %v3504_v31  ;;  %v4447_v21 = vpop.eup %4446  ;;  %v3521_v13 = vmul.f32 0.6931472, %v4445_v19  ;;  %v3426_v31 = vmax.f32 %v6099_v33, 0.0  ;;  %v3570_v19 = vld [vmem:[%s6245_s1 + $0x70] sm:$0xff] }
 0xd3a   :  { %v3574_v5 = vadd.f32 %v3558_v2, %v3542_v8  ;;  %4464 = vlog2.f32 %v3503_v46  ;;  %v4449_v42 = vpop.eup %4448  ;;  %v3519_v25 = vmul.f32 0.6931472, %v4447_v21 }
 0xd3b   :  { %3593 = vst.msk [vmem:[%s6246_s10 + $0x20] sm:$0xff] %vm3588_vm3, %v3576_v38  ;;  %v4451_v51 = vpop.eup %4450  ;;  %v3546_v26 = vadd.f32 %v3521_v13, %v3418_v34  ;;  %v3506_v48 = vadd.f32 1.0, %v4449_v42  ;;  %v3425_v38 = vmax.f32 %v6101_v62, 0.0  ;;  %v3427_v34 = vmax.f32 %v6105_v7, 0.0 }
 0xd3c   :  { %3591 = vst.msk [vmem:[%s6246_s10 + $0x10] sm:$0xff] %vm3588_vm3, %v3574_v5  ;;  %v3545_v59 = vadd.f32 %v3519_v25, %v3417_v50  ;;  %v3505_v28 = vadd.f32 1.0, %v4451_v51  ;;  %v3569_v5 = vld [vmem:[%s6245_s1 + $0x68] sm:$0xff] }
 0xd3d   :  { %v4453_v18 = vpop.eup %4452  ;;  %v3578_v32 = vadd.f32 %v3562_v53, %v3546_v26  ;;  %4466 = vlog2.f32 %v3506_v48  ;;  %v3571_v53 = vld [vmem:[%s6245_s1 + $0x78] sm:$0xff] }
 0xd3e   :  { %v4455_v24 = vpop.eup %4454  ;;  %v3507_v11 = vadd.f32 1.0, %v4453_v18  ;;  %v3577_v39 = vadd.f32 %v3561_v37, %v3545_v59  ;;  %4468 = vlog2.f32 %v3505_v28 }
 0xd3f   :  { %v4457_v16 = vpop.eup %4456  ;;  %v3525_v3 = vmul.f32 0.6931472, %v4455_v24  ;;  %3595 = vst.msk [vmem:[%s6246_s10 + $0x30] sm:$0xff] %vm3588_vm3, %v3578_v32 }
 0xd40   :  { %v3523_v54 = vmul.f32 0.6931472, %v4457_v16  ;;  %4470 = vlog2.f32 %v3507_v11  ;;  %3594 = vst.msk [vmem:[%s6246_s10 + $0x28] sm:$0xff] %vm3588_vm3, %v3577_v39 }
 0xd41   :  { %v3548_v4 = vadd.f32 %v3525_v3, %v3420_v22  ;;  %v4459_v15 = vpop.eup %4458 }
 0xd42   :  { %v3547_v49 = vadd.f32 %v3523_v54, %v3419_v12  ;;  %v4461_v9 = vpop.eup %4460  ;;  %v3529_v40 = vmul.f32 0.6931472, %v4459_v15 }
 0xd43   :  { %v3580_v14 = vadd.f32 %v3564_v23, %v3548_v4  ;;  %v3527_v6 = vmul.f32 0.6931472, %v4461_v9 }
 0xd44   :  { %v3579_v1 = vadd.f32 %v3563_v52, %v3547_v49  ;;  %v3550_v30 = vadd.f32 %v3529_v40, %v3422_v29 }
 0xd45   :  { %3597 = vst.msk [vmem:[%s6246_s10 + $0x40] sm:$0xff] %vm3588_vm3, %v3580_v14  ;;  %v3549_v60 = vadd.f32 %v3527_v6, %v3421_v44 }
 0xd46   :  { %v4463_v10 = vpop.eup %4462  ;;  %3596 = vst.msk [vmem:[%s6246_s10 + $0x38] sm:$0xff] %vm3588_vm3, %v3579_v1  ;;  %v3582_v47 = vadd.f32 %v3566_v57, %v3550_v30 }
 0xd47   :  { %v4465_v17 = vpop.eup %4464  ;;  %v3533_v27 = vmul.f32 0.6931472, %v4463_v10  ;;  %v3581_v20 = vadd.f32 %v3565_v36, %v3549_v60 }
 0xd48   :  { %v3531_v0 = vmul.f32 0.6931472, %v4465_v17  ;;  %3599 = vst.msk [vmem:[%s6246_s10 + $0x50] sm:$0xff] %vm3588_vm3, %v3582_v47 }
 0xd49   :  { %v3552_v41 = vadd.f32 %v3533_v27, %v3424_v58  ;;  %3598 = vst.msk [vmem:[%s6246_s10 + $0x48] sm:$0xff] %vm3588_vm3, %v3581_v20 }
 0xd4a   :  { %v3551_v61 = vadd.f32 %v3531_v0, %v3423_v56  ;;  %v4467_v45 = vpop.eup %4466 }
 0xd4b   :  { %v3584_v35 = vadd.f32 %v3568_v55, %v3552_v41  ;;  %v4469_v43 = vpop.eup %4468  ;;  %v3537_v8 = vmul.f32 0.6931472, %v4467_v45 }
 0xd4c   :  { %v3583_v2 = vadd.f32 %v3567_v63, %v3551_v61  ;;  %v3535_v21 = vmul.f32 0.6931472, %v4469_v43 }
 0xd4d   :  { %v4471_v46 = vpop.eup %4470  ;;  %3601 = vst.msk [vmem:[%s6246_s10 + $0x60] sm:$0xff] %vm3588_vm3, %v3584_v35  ;;  %v3554_v33 = vadd.f32 %v3537_v8, %v3426_v31 }
 0xd4e   :  { %3600 = vst.msk [vmem:[%s6246_s10 + $0x58] sm:$0xff] %vm3588_vm3, %v3583_v2  ;;  %v3539_v13 = vmul.f32 0.6931472, %v4471_v46  ;;  %v3553_v42 = vadd.f32 %v3535_v21, %v3425_v38 }
 0xd4f   :  { %v3586_v62 = vadd.f32 %v3570_v19, %v3554_v33 }
 0xd50   :  { %v3555_v50 = vadd.f32 %v3539_v13, %v3427_v34  ;;  %v3585_v25 = vadd.f32 %v3569_v5, %v3553_v42 }
 0xd51   :  { %3603 = vst.msk [vmem:[%s6246_s10 + $0x70] sm:$0xff] %vm3588_vm3, %v3586_v62 }
 0xd52   :  { %v3587_v51 = vadd.f32 %v3571_v53, %v3555_v50  ;;  %3602 = vst.msk [vmem:[%s6246_s10 + $0x68] sm:$0xff] %vm3588_vm3, %v3585_v25 }
 0xd54   :  { %3604 = vst.msk [vmem:[%s6246_s10 + $0x78] sm:$0xff] %vm3588_vm3, %v3587_v51 }

</bundles_post_ra>
